<compile_context>
chip_gen: v7x
topology: tpu7x:2x2x1
jax: 0.10.0
libtpu: 0.0.40
codegen_flags: <defaults>
</compile_context>

<pallas_src>
import math

import jax
import jax.numpy as jnp
from jax.experimental import pallas as pl
from jax.experimental.pallas import tpu as pltpu

# ---- small, deterministic config (mirrors the Config fields used by the module) ----
VOCAB_SIZE = 64
VOCAB_PAD = 128          # lane-dense padded vocab for the output projection
EMBED_DIM = 32
NUM_HEADS = 4
HEAD_DIM = EMBED_DIM // NUM_HEADS
FEED_FORWARD = 64
NUM_LAYERS = 2
SEQ_LEN = 8
PADDING_IDX = 0
BATCH = 2
LN_EPS = 1e-5            # PyTorch LayerNorm default


# ---------------- in-kernel helpers ----------------
def _layer_norm(y, gamma, beta):
    # one-pass LN: mean and E[x^2] are independent reductions -> shorter dependency chain
    mean = jnp.mean(y, axis=-1, keepdims=True)
    ex2 = jnp.mean(y * y, axis=-1, keepdims=True)
    var = ex2 - mean * mean
    return (y - mean) * jax.lax.rsqrt(var + LN_EPS) * gamma + beta


def _gelu(h):
    # TODO(synk): PyTorch F.gelu default is the exact erf-GELU; tanh approximation used since
    # lax.erf is not guaranteed to lower in Mosaic.
    return 0.5 * h * (1.0 + jnp.tanh(0.7978845608028654 * (h + 0.044715 * h * h * h)))


def _attention(q, k, v, attn_bias):
    """Head-batched scaled-dot-product attention on the batch-folded (N, D) activations.

    q, k, v: (N, D) f32 (the 1/sqrt(dh) scale is pre-folded into the Q weights).
    attn_bias: (N, N) f32 additive mask (0 within a batch element, -1e30 across batch elements).
    Returns (N, D) f32.
    """
    N, D = q.shape
    H, DH = NUM_HEADS, HEAD_DIM
    # Head split through a transpose: (N, D) -> (D, N) -> (H, dh, N).  The reshape only unfolds
    # the sublane dim in multiples of 8, i.e. it is a layout no-op (no lane shuffles).
    qt = q.T.reshape(H, DH, N)
    kt = k.T.reshape(H, DH, N)
    vt = v.T.reshape(H, DH, N)
    qh = jnp.swapaxes(qt, 1, 2).astype(jnp.bfloat16)                    # (H, N, dh)

    s = jnp.einsum('hqd,hdk->hqk', qh, kt.astype(jnp.bfloat16),
                   preferred_element_type=jnp.float32)                  # (H, N, N)
    s = s + attn_bias                                                   # block cross-batch keys
    s = s - jnp.max(s, axis=-1, keepdims=True)
    p = jnp.exp(s)
    p = p * pl.reciprocal(jnp.sum(p, axis=-1, keepdims=True), approx=True)

    # out^T per head: contract over keys (last dim of both operands)
    ot = jnp.einsum('hdk,hqk->hdq', vt.astype(jnp.bfloat16), p.astype(jnp.bfloat16),
                    preferred_element_type=jnp.float32)                 # (H, dh, N)
    return ot.reshape(D, N).T                                           # (N, D); no-op fold + 2D transpose


# ---------------- the single fused kernel (one invocation == whole batch) ----------------
def _gpt_kernel(ids_ref, emb_ref, pe_ref, bias_ref, lnf_g_ref, lnf_b_ref, wout_ref,
                wqkv_sa_ref, bqkv_sa_ref, wo_sa_ref, bo_sa_ref,
                wq_ca_ref, bq_ca_ref, wkv_ca_ref, bkv_ca_ref, wo_ca_ref, bo_ca_ref,
                w1_ref, b1_ref, w2_ref, b2_ref,
                ln1_g_ref, ln1_b_ref, ln2_g_ref, ln2_b_ref, ln3_g_ref, ln3_b_ref,
                out_ref):
    N, D = pe_ref.shape                     # N = B * S
    V = emb_ref.shape[0]
    attn_bias = bias_ref[...]               # (N, N) additive cross-batch mask

    # ---- embedding gather (bf16 one-hot matmul) + positional encoding; dropout is identity ----
    ids = ids_ref[...]                                                   # (N, 1) int32
    onehot = (ids == jax.lax.broadcasted_iota(jnp.int32, (N, V), 1)).astype(jnp.bfloat16)
    h = jnp.dot(onehot, emb_ref[...], preferred_element_type=jnp.float32) + pe_ref[...]

    # static layer loop (L=2).  TODO(synk): switch to lax.fori_loop with dynamic leading-axis
    # weight indexing if NUM_LAYERS is ever scaled up (code-size / vreg live-range protection).
    for l in range(NUM_LAYERS):
        x_in = h
        # --- self-attention (fused QKV) + residual + norm1 (post-norm, no mask) ---
        # TODO(synk): no causal mask applied (the reference passes none to the decoder layer).
        hb = h.astype(jnp.bfloat16)
        qkv = jnp.dot(hb, wqkv_sa_ref[l], preferred_element_type=jnp.float32) + bqkv_sa_ref[l]
        attn = _attention(qkv[:, :D], qkv[:, D:2 * D], qkv[:, 2 * D:], attn_bias)
        attn = jnp.dot(attn.astype(jnp.bfloat16), wo_sa_ref[l],
                       preferred_element_type=jnp.float32) + bo_sa_ref[l]
        h = _layer_norm(h + attn, ln1_g_ref[l], ln1_b_ref[l])

        # --- cross-attention + residual + norm2 ---
        # TODO(synk): TransformerDecoderWrapper source unavailable; memory assumed == layer input.
        hb = h.astype(jnp.bfloat16)
        mb = x_in.astype(jnp.bfloat16)
        q = jnp.dot(hb, wq_ca_ref[l], preferred_element_type=jnp.float32) + bq_ca_ref[l]
        kv = jnp.dot(mb, wkv_ca_ref[l], preferred_element_type=jnp.float32) + bkv_ca_ref[l]
        attn = _attention(q, kv[:, :D], kv[:, D:], attn_bias)
        attn = jnp.dot(attn.astype(jnp.bfloat16), wo_ca_ref[l],
                       preferred_element_type=jnp.float32) + bo_ca_ref[l]
        h = _layer_norm(h + attn, ln2_g_ref[l], ln2_b_ref[l])

        # --- feed-forward + residual + norm3 ---
        f1 = jnp.dot(h.astype(jnp.bfloat16), w1_ref[l],
                     preferred_element_type=jnp.float32) + b1_ref[l]
        ff = jnp.dot(_gelu(f1).astype(jnp.bfloat16), w2_ref[l],
                     preferred_element_type=jnp.float32) + b2_ref[l]
        h = _layer_norm(h + ff, ln3_g_ref[l], ln3_b_ref[l])

    # ---- final LayerNorm + lane-dense (vocab padded to 128) output projection ----
    xn = _layer_norm(h, lnf_g_ref[...], lnf_b_ref[...])
    out_ref[...] = jnp.dot(xn.astype(jnp.bfloat16), wout_ref[...],
                           preferred_element_type=jnp.float32)           # (N, VOCAB_PAD)


# ---------------- parameters & glue ----------------
def sinusoidal_pe(seq_len, d_model):
    position = jnp.arange(seq_len, dtype=jnp.float32)[:, None]
    div_term = jnp.exp(
        jnp.arange(0, d_model, 2, dtype=jnp.float32) * (-math.log(10000.0) / d_model))
    pe = jnp.zeros((seq_len, d_model), jnp.float32)
    pe = pe.at[:, 0::2].set(jnp.sin(position * div_term))
    pe = pe.at[:, 1::2].set(jnp.cos(position * div_term))
    return pe


def init_params(key):
    D, FF, V, L = EMBED_DIM, FEED_FORWARD, VOCAB_SIZE, NUM_LAYERS
    scale = 1.0 / math.sqrt(HEAD_DIM)

    def nrm(k, shape, s=0.02):
        return s * jax.random.normal(k, shape, dtype=jnp.float32)

    k_emb, k_out, k_layers = jax.random.split(key, 3)
    emb = nrm(k_emb, (V, D), 1.0).at[PADDING_IDX].set(0.0)   # nn.Embedding padding_idx row zero

    w_out = nrm(k_out, (D, V))                               # output Linear (in, out), bias=False
    w_out_pad = jnp.zeros((D, VOCAB_PAD), jnp.float32).at[:, :V].set(w_out)

    layer_keys = jax.random.split(k_layers, L)

    def stack(idx, shape, q_cols=None):
        ws = []
        for l in range(L):
            w = nrm(jax.random.fold_in(layer_keys[l], idx), shape)
            if q_cols is not None:            # fold 1/sqrt(dh) into the Q output columns
                w = w.at[:, :q_cols].multiply(scale)
            ws.append(w)
        return jnp.stack(ws).astype(jnp.bfloat16)            # matmul weights stored bf16

    # NOTE: Q biases are zero here; with non-zero Q biases the scale must be folded there too.
    params = {
        "embedding": emb.astype(jnp.bfloat16),
        "w_out_pad": w_out_pad.astype(jnp.bfloat16),
        "ln_f_g": jnp.ones((1, D), jnp.float32),
        "ln_f_b": jnp.zeros((1, D), jnp.float32),
        # weights pre-transposed to (in_features, out_features), stacked over layers
        "wqkv_sa": stack(0, (D, 3 * D), q_cols=D), "bqkv_sa": jnp.zeros((L, 1, 3 * D), jnp.float32),
        "wo_sa": stack(1, (D, D)),                 "bo_sa": jnp.zeros((L, 1, D), jnp.float32),
        "wq_ca": stack(2, (D, D), q_cols=D),       "bq_ca": jnp.zeros((L, 1, D), jnp.float32),
        "wkv_ca": stack(3, (D, 2 * D)),            "bkv_ca": jnp.zeros((L, 1, 2 * D), jnp.float32),
        "wo_ca": stack(4, (D, D)),                 "bo_ca": jnp.zeros((L, 1, D), jnp.float32),
        "w1": stack(5, (D, FF)),                   "b1": jnp.zeros((L, 1, FF), jnp.float32),
        "w2": stack(6, (FF, D)),                   "b2": jnp.zeros((L, 1, D), jnp.float32),
        "ln1_g": jnp.ones((L, 1, D), jnp.float32), "ln1_b": jnp.zeros((L, 1, D), jnp.float32),
        "ln2_g": jnp.ones((L, 1, D), jnp.float32), "ln2_b": jnp.zeros((L, 1, D), jnp.float32),
        "ln3_g": jnp.ones((L, 1, D), jnp.float32), "ln3_b": jnp.zeros((L, 1, D), jnp.float32),
    }
    return params


def gpt_forward(params, ids):
    B, S = ids.shape
    D, V = EMBED_DIM, VOCAB_SIZE
    N = B * S

    pe_tiled = jnp.tile(sinusoidal_pe(S, D), (B, 1))          # (N, D)
    ids2 = ids.astype(jnp.int32).reshape(N, 1)
    rows = jnp.arange(N) // S                                  # batch id per folded token
    attn_bias = jnp.where(rows[:, None] == rows[None, :], 0.0, -1e30).astype(jnp.float32)

    inputs = [
        ids2, params["embedding"], pe_tiled, attn_bias,
        params["ln_f_g"], params["ln_f_b"], params["w_out_pad"],
        params["wqkv_sa"], params["bqkv_sa"], params["wo_sa"], params["bo_sa"],
        params["wq_ca"], params["bq_ca"], params["wkv_ca"], params["bkv_ca"],
        params["wo_ca"], params["bo_ca"],
        params["w1"], params["b1"], params["w2"], params["b2"],
        params["ln1_g"], params["ln1_b"], params["ln2_g"], params["ln2_b"],
        params["ln3_g"], params["ln3_b"],
    ]

    # Grid-less call: everything (weights + the tiny batch-folded activations) is VMEM-resident,
    # no per-grid-step overhead, no pipelining needed at this footprint (<1 MiB on any chip).
    vmem = pl.BlockSpec(memory_space=pltpu.MemorySpace.VMEM)
    logits_pad = pl.pallas_call(
        _gpt_kernel,
        out_shape=jax.ShapeDtypeStruct((N, VOCAB_PAD), jnp.float32),
        in_specs=[vmem] * len(inputs),
        out_specs=vmem,
    )(*inputs)

    # results.view(-1, vocab_size): drop the lane padding
    return logits_pad[:, :V]


if __name__ == "__main__":
    key = jax.random.PRNGKey(0)
    k_param, k_ids = jax.random.split(key)
    params = init_params(k_param)
    ids = jax.random.randint(k_ids, (BATCH, SEQ_LEN), 0, VOCAB_SIZE, dtype=jnp.int32)

    logits = jax.jit(gpt_forward)(params, ids)
    logits = jax.block_until_ready(logits)

    assert logits.shape == (BATCH * SEQ_LEN, VOCAB_SIZE), logits.shape
    assert logits.dtype == jnp.float32
    assert bool(jnp.all(jnp.isfinite(logits)))
    print("KERNEL_OK")
</pallas_src>

<mosaic_0001>
module attributes {stable_mosaic.version = 11 : i64} {
  func.func @_gpt_kernel(%arg0: memref<16x1xi32, #tpu.memory_space<vmem>>, %arg1: memref<64x32xbf16, #tpu.memory_space<vmem>>, %arg2: memref<16x32xf32, #tpu.memory_space<vmem>>, %arg3: memref<16x16xf32, #tpu.memory_space<vmem>>, %arg4: memref<1x32xf32, #tpu.memory_space<vmem>>, %arg5: memref<1x32xf32, #tpu.memory_space<vmem>>, %arg6: memref<32x128xbf16, #tpu.memory_space<vmem>>, %arg7: memref<2x32x96xbf16, #tpu.memory_space<vmem>>, %arg8: memref<2x1x96xf32, #tpu.memory_space<vmem>>, %arg9: memref<2x32x32xbf16, #tpu.memory_space<vmem>>, %arg10: memref<2x1x32xf32, #tpu.memory_space<vmem>>, %arg11: memref<2x32x32xbf16, #tpu.memory_space<vmem>>, %arg12: memref<2x1x32xf32, #tpu.memory_space<vmem>>, %arg13: memref<2x32x64xbf16, #tpu.memory_space<vmem>>, %arg14: memref<2x1x64xf32, #tpu.memory_space<vmem>>, %arg15: memref<2x32x32xbf16, #tpu.memory_space<vmem>>, %arg16: memref<2x1x32xf32, #tpu.memory_space<vmem>>, %arg17: memref<2x32x64xbf16, #tpu.memory_space<vmem>>, %arg18: memref<2x1x64xf32, #tpu.memory_space<vmem>>, %arg19: memref<2x64x32xbf16, #tpu.memory_space<vmem>>, %arg20: memref<2x1x32xf32, #tpu.memory_space<vmem>>, %arg21: memref<2x1x32xf32, #tpu.memory_space<vmem>>, %arg22: memref<2x1x32xf32, #tpu.memory_space<vmem>>, %arg23: memref<2x1x32xf32, #tpu.memory_space<vmem>>, %arg24: memref<2x1x32xf32, #tpu.memory_space<vmem>>, %arg25: memref<2x1x32xf32, #tpu.memory_space<vmem>>, %arg26: memref<2x1x32xf32, #tpu.memory_space<vmem>>, %arg27: memref<16x128xf32, #tpu.memory_space<vmem>>) attributes {dimension_semantics = [], scalar_prefetch = 0 : i64, scratch_operands = 0 : i64, tpu.core_type = #tpu.core_type<tc>} {
    %c0 = arith.constant 0 : index
    %c0_0 = arith.constant 0 : index
    %0 = vector.load %arg3[%c0, %c0_0] : memref<16x16xf32, #tpu.memory_space<vmem>>, vector<16x16xf32>
    %c0_1 = arith.constant 0 : index
    %c0_2 = arith.constant 0 : index
    %1 = vector.load %arg0[%c0_1, %c0_2] : memref<16x1xi32, #tpu.memory_space<vmem>>, vector<16x1xi32>
    %2 = tpu.iota {dimensions = array<i32: 1>} : vector<16x64xi32>
    %3 = vector.broadcast %1 : vector<16x1xi32> to vector<16x64xi32>
    %4 = arith.cmpi eq, %3, %2 : vector<16x64xi32>
    %5 = arith.extui %4 : vector<16x64xi1> to vector<16x64xi32>
    %6 = arith.sitofp %5 : vector<16x64xi32> to vector<16x64xf32>
    %7 = arith.truncf %6 : vector<16x64xf32> to vector<16x64xbf16>
    %c0_3 = arith.constant 0 : index
    %c0_4 = arith.constant 0 : index
    %8 = vector.load %arg1[%c0_3, %c0_4] : memref<64x32xbf16, #tpu.memory_space<vmem>>, vector<64x32xbf16>
    %cst = arith.constant dense<0.000000e+00> : vector<16x32xf32>
    %9 = tpu.matmul %7, %8, %cst {dimension_numbers = #tpu.dot_dimension_numbers<[1], [0], [0], [1], [0, 0, 1, 1], [], []>} : vector<16x64xbf16>, vector<64x32xbf16>, vector<16x32xf32> -> vector<16x32xf32>
    %c0_5 = arith.constant 0 : index
    %c0_6 = arith.constant 0 : index
    %10 = vector.load %arg2[%c0_5, %c0_6] : memref<16x32xf32, #tpu.memory_space<vmem>>, vector<16x32xf32>
    %11 = arith.addf %9, %10 : vector<16x32xf32>
    %12 = arith.truncf %11 : vector<16x32xf32> to vector<16x32xbf16>
    %c0_7 = arith.constant 0 : index
    %c0_8 = arith.constant 0 : index
    %c0_9 = arith.constant 0 : index
    %13 = vector.load %arg7[%c0_7, %c0_8, %c0_9] : memref<2x32x96xbf16, #tpu.memory_space<vmem>>, vector<1x32x96xbf16>
    %14 = vector.shape_cast %13 : vector<1x32x96xbf16> to vector<32x96xbf16>
    %cst_10 = arith.constant dense<0.000000e+00> : vector<16x96xf32>
    %15 = tpu.matmul %12, %14, %cst_10 {dimension_numbers = #tpu.dot_dimension_numbers<[1], [0], [0], [1], [0, 0, 1, 1], [], []>} : vector<16x32xbf16>, vector<32x96xbf16>, vector<16x96xf32> -> vector<16x96xf32>
    %c0_11 = arith.constant 0 : index
    %c0_12 = arith.constant 0 : index
    %c0_13 = arith.constant 0 : index
    %16 = vector.load %arg8[%c0_11, %c0_12, %c0_13] : memref<2x1x96xf32, #tpu.memory_space<vmem>>, vector<1x1x96xf32>
    %17 = vector.shape_cast %16 : vector<1x1x96xf32> to vector<1x96xf32>
    %18 = vector.broadcast %17 : vector<1x96xf32> to vector<16x96xf32>
    %19 = arith.addf %15, %18 : vector<16x96xf32>
    %20 = vector.extract_strided_slice %19 {offsets = [0, 0], sizes = [16, 32], strides = [1, 1]} : vector<16x96xf32> to vector<16x32xf32>
    %21 = vector.extract_strided_slice %19 {offsets = [0, 32], sizes = [16, 32], strides = [1, 1]} : vector<16x96xf32> to vector<16x32xf32>
    %22 = vector.extract_strided_slice %19 {offsets = [0, 64], sizes = [16, 32], strides = [1, 1]} : vector<16x96xf32> to vector<16x32xf32>
    %23 = tpu.transpose %20, [1, 0] : vector<16x32xf32> -> vector<32x16xf32>
    %24 = vector.shape_cast %23 : vector<32x16xf32> to vector<4x8x16xf32>
    %25 = tpu.transpose %21, [1, 0] : vector<16x32xf32> -> vector<32x16xf32>
    %26 = vector.shape_cast %25 : vector<32x16xf32> to vector<4x8x16xf32>
    %27 = tpu.transpose %22, [1, 0] : vector<16x32xf32> -> vector<32x16xf32>
    %28 = vector.shape_cast %27 : vector<32x16xf32> to vector<4x8x16xf32>
    %29 = tpu.transpose %24, [0, 2, 1] : vector<4x8x16xf32> -> vector<4x16x8xf32>
    %30 = arith.truncf %29 : vector<4x16x8xf32> to vector<4x16x8xbf16>
    %31 = arith.truncf %26 : vector<4x8x16xf32> to vector<4x8x16xbf16>
    "tpu.trace_start"() <{level = 10 : i32, message = "hqd,hdk->hqk"}> : () -> ()
    %cst_14 = arith.constant dense<0.000000e+00> : vector<4x16x16xf32>
    %32 = tpu.matmul %30, %31, %cst_14 {dimension_numbers = #tpu.dot_dimension_numbers<[2], [1], [1], [2], [0, 0, 0, 1, 1, 2], [0], [0]>} : vector<4x16x8xbf16>, vector<4x8x16xbf16>, vector<4x16x16xf32> -> vector<4x16x16xf32>
    "tpu.trace_stop"() : () -> ()
    %33 = vector.shape_cast %0 : vector<16x16xf32> to vector<1x16x16xf32>
    %34 = vector.broadcast %33 : vector<1x16x16xf32> to vector<4x16x16xf32>
    %35 = arith.addf %32, %34 : vector<4x16x16xf32>
    %cst_15 = arith.constant dense<0xFF800000> : vector<4x16xf32>
    %36 = vector.multi_reduction <maximumf>, %35, %cst_15 [2] : vector<4x16x16xf32> to vector<4x16xf32>
    %37 = vector.shape_cast %36 : vector<4x16xf32> to vector<4x16x1xf32>
    %38 = vector.broadcast %37 : vector<4x16x1xf32> to vector<4x16x16xf32>
    %39 = arith.subf %35, %38 : vector<4x16x16xf32>
    %40 = math.exp %39 : vector<4x16x16xf32>
    %cst_16 = arith.constant dense<0.000000e+00> : vector<4x16xf32>
    %41 = vector.multi_reduction <add>, %40, %cst_16 [2] : vector<4x16x16xf32> to vector<4x16xf32>
    %42 = vector.shape_cast %41 : vector<4x16xf32> to vector<4x16x1xf32>
    %43 = tpu.reciprocal %42 {approx = true} : vector<4x16x1xf32> -> vector<4x16x1xf32>
    %44 = vector.broadcast %43 : vector<4x16x1xf32> to vector<4x16x16xf32>
    %45 = arith.mulf %40, %44 : vector<4x16x16xf32>
    %46 = arith.truncf %28 : vector<4x8x16xf32> to vector<4x8x16xbf16>
    %47 = arith.truncf %45 : vector<4x16x16xf32> to vector<4x16x16xbf16>
    "tpu.trace_start"() <{level = 10 : i32, message = "hdk,hqk->hdq"}> : () -> ()
    %cst_17 = arith.constant dense<0.000000e+00> : vector<4x8x16xf32>
    %48 = tpu.matmul %46, %47, %cst_17 {dimension_numbers = #tpu.dot_dimension_numbers<[2], [2], [1], [1], [0, 0, 0, 1, 1, 1], [0], [0]>} : vector<4x8x16xbf16>, vector<4x16x16xbf16>, vector<4x8x16xf32> -> vector<4x8x16xf32>
    "tpu.trace_stop"() : () -> ()
    %49 = vector.shape_cast %48 : vector<4x8x16xf32> to vector<32x16xf32>
    %50 = tpu.transpose %49, [1, 0] : vector<32x16xf32> -> vector<16x32xf32>
    %51 = arith.truncf %50 : vector<16x32xf32> to vector<16x32xbf16>
    %c0_18 = arith.constant 0 : index
    %c0_19 = arith.constant 0 : index
    %c0_20 = arith.constant 0 : index
    %52 = vector.load %arg9[%c0_18, %c0_19, %c0_20] : memref<2x32x32xbf16, #tpu.memory_space<vmem>>, vector<1x32x32xbf16>
    %53 = vector.shape_cast %52 : vector<1x32x32xbf16> to vector<32x32xbf16>
    %cst_21 = arith.constant dense<0.000000e+00> : vector<16x32xf32>
    %54 = tpu.matmul %51, %53, %cst_21 {dimension_numbers = #tpu.dot_dimension_numbers<[1], [0], [0], [1], [0, 0, 1, 1], [], []>} : vector<16x32xbf16>, vector<32x32xbf16>, vector<16x32xf32> -> vector<16x32xf32>
    %c0_22 = arith.constant 0 : index
    %c0_23 = arith.constant 0 : index
    %c0_24 = arith.constant 0 : index
    %55 = vector.load %arg10[%c0_22, %c0_23, %c0_24] : memref<2x1x32xf32, #tpu.memory_space<vmem>>, vector<1x1x32xf32>
    %56 = vector.shape_cast %55 : vector<1x1x32xf32> to vector<1x32xf32>
    %57 = vector.broadcast %56 : vector<1x32xf32> to vector<16x32xf32>
    %58 = arith.addf %54, %57 : vector<16x32xf32>
    %59 = arith.addf %11, %58 : vector<16x32xf32>
    %c0_25 = arith.constant 0 : index
    %c0_26 = arith.constant 0 : index
    %c0_27 = arith.constant 0 : index
    %60 = vector.load %arg21[%c0_25, %c0_26, %c0_27] : memref<2x1x32xf32, #tpu.memory_space<vmem>>, vector<1x1x32xf32>
    %61 = vector.shape_cast %60 : vector<1x1x32xf32> to vector<1x32xf32>
    %c0_28 = arith.constant 0 : index
    %c0_29 = arith.constant 0 : index
    %c0_30 = arith.constant 0 : index
    %62 = vector.load %arg22[%c0_28, %c0_29, %c0_30] : memref<2x1x32xf32, #tpu.memory_space<vmem>>, vector<1x1x32xf32>
    %63 = vector.shape_cast %62 : vector<1x1x32xf32> to vector<1x32xf32>
    %cst_31 = arith.constant dense<0.000000e+00> : vector<16xf32>
    %64 = vector.multi_reduction <add>, %59, %cst_31 [1] : vector<16x32xf32> to vector<16xf32>
    %65 = vector.shape_cast %64 : vector<16xf32> to vector<16x1xf32>
    %cst_32 = arith.constant 3.200000e+01 : f32
    %66 = vector.broadcast %cst_32 : f32 to vector<16x1xf32>
    %67 = arith.divf %65, %66 : vector<16x1xf32>
    %68 = arith.mulf %59, %59 : vector<16x32xf32>
    %cst_33 = arith.constant dense<0.000000e+00> : vector<16xf32>
    %69 = vector.multi_reduction <add>, %68, %cst_33 [1] : vector<16x32xf32> to vector<16xf32>
    %70 = vector.shape_cast %69 : vector<16xf32> to vector<16x1xf32>
    %cst_34 = arith.constant 3.200000e+01 : f32
    %71 = vector.broadcast %cst_34 : f32 to vector<16x1xf32>
    %72 = arith.divf %70, %71 : vector<16x1xf32>
    %73 = arith.mulf %67, %67 : vector<16x1xf32>
    %74 = arith.subf %72, %73 : vector<16x1xf32>
    %75 = vector.broadcast %67 : vector<16x1xf32> to vector<16x32xf32>
    %76 = arith.subf %59, %75 : vector<16x32xf32>
    %cst_35 = arith.constant 9.99999974E-6 : f32
    %77 = vector.broadcast %cst_35 : f32 to vector<16x1xf32>
    %78 = arith.addf %74, %77 : vector<16x1xf32>
    %79 = math.rsqrt %78 : vector<16x1xf32>
    %80 = vector.broadcast %79 : vector<16x1xf32> to vector<16x32xf32>
    %81 = arith.mulf %76, %80 : vector<16x32xf32>
    %82 = vector.broadcast %61 : vector<1x32xf32> to vector<16x32xf32>
    %83 = arith.mulf %81, %82 : vector<16x32xf32>
    %84 = vector.broadcast %63 : vector<1x32xf32> to vector<16x32xf32>
    %85 = arith.addf %83, %84 : vector<16x32xf32>
    %86 = arith.truncf %85 : vector<16x32xf32> to vector<16x32xbf16>
    %87 = arith.truncf %11 : vector<16x32xf32> to vector<16x32xbf16>
    %c0_36 = arith.constant 0 : index
    %c0_37 = arith.constant 0 : index
    %c0_38 = arith.constant 0 : index
    %88 = vector.load %arg11[%c0_36, %c0_37, %c0_38] : memref<2x32x32xbf16, #tpu.memory_space<vmem>>, vector<1x32x32xbf16>
    %89 = vector.shape_cast %88 : vector<1x32x32xbf16> to vector<32x32xbf16>
    %cst_39 = arith.constant dense<0.000000e+00> : vector<16x32xf32>
    %90 = tpu.matmul %86, %89, %cst_39 {dimension_numbers = #tpu.dot_dimension_numbers<[1], [0], [0], [1], [0, 0, 1, 1], [], []>} : vector<16x32xbf16>, vector<32x32xbf16>, vector<16x32xf32> -> vector<16x32xf32>
    %c0_40 = arith.constant 0 : index
    %c0_41 = arith.constant 0 : index
    %c0_42 = arith.constant 0 : index
    %91 = vector.load %arg12[%c0_40, %c0_41, %c0_42] : memref<2x1x32xf32, #tpu.memory_space<vmem>>, vector<1x1x32xf32>
    %92 = vector.shape_cast %91 : vector<1x1x32xf32> to vector<1x32xf32>
    %93 = vector.broadcast %92 : vector<1x32xf32> to vector<16x32xf32>
    %94 = arith.addf %90, %93 : vector<16x32xf32>
    %c0_43 = arith.constant 0 : index
    %c0_44 = arith.constant 0 : index
    %c0_45 = arith.constant 0 : index
    %95 = vector.load %arg13[%c0_43, %c0_44, %c0_45] : memref<2x32x64xbf16, #tpu.memory_space<vmem>>, vector<1x32x64xbf16>
    %96 = vector.shape_cast %95 : vector<1x32x64xbf16> to vector<32x64xbf16>
    %cst_46 = arith.constant dense<0.000000e+00> : vector<16x64xf32>
    %97 = tpu.matmul %87, %96, %cst_46 {dimension_numbers = #tpu.dot_dimension_numbers<[1], [0], [0], [1], [0, 0, 1, 1], [], []>} : vector<16x32xbf16>, vector<32x64xbf16>, vector<16x64xf32> -> vector<16x64xf32>
    %c0_47 = arith.constant 0 : index
    %c0_48 = arith.constant 0 : index
    %c0_49 = arith.constant 0 : index
    %98 = vector.load %arg14[%c0_47, %c0_48, %c0_49] : memref<2x1x64xf32, #tpu.memory_space<vmem>>, vector<1x1x64xf32>
    %99 = vector.shape_cast %98 : vector<1x1x64xf32> to vector<1x64xf32>
    %100 = vector.broadcast %99 : vector<1x64xf32> to vector<16x64xf32>
    %101 = arith.addf %97, %100 : vector<16x64xf32>
    %102 = vector.extract_strided_slice %101 {offsets = [0, 0], sizes = [16, 32], strides = [1, 1]} : vector<16x64xf32> to vector<16x32xf32>
    %103 = vector.extract_strided_slice %101 {offsets = [0, 32], sizes = [16, 32], strides = [1, 1]} : vector<16x64xf32> to vector<16x32xf32>
    %104 = tpu.transpose %94, [1, 0] : vector<16x32xf32> -> vector<32x16xf32>
    %105 = vector.shape_cast %104 : vector<32x16xf32> to vector<4x8x16xf32>
    %106 = tpu.transpose %102, [1, 0] : vector<16x32xf32> -> vector<32x16xf32>
    %107 = vector.shape_cast %106 : vector<32x16xf32> to vector<4x8x16xf32>
    %108 = tpu.transpose %103, [1, 0] : vector<16x32xf32> -> vector<32x16xf32>
    %109 = vector.shape_cast %108 : vector<32x16xf32> to vector<4x8x16xf32>
    %110 = tpu.transpose %105, [0, 2, 1] : vector<4x8x16xf32> -> vector<4x16x8xf32>
    %111 = arith.truncf %110 : vector<4x16x8xf32> to vector<4x16x8xbf16>
    %112 = arith.truncf %107 : vector<4x8x16xf32> to vector<4x8x16xbf16>
    "tpu.trace_start"() <{level = 10 : i32, message = "hqd,hdk->hqk"}> : () -> ()
    %cst_50 = arith.constant dense<0.000000e+00> : vector<4x16x16xf32>
    %113 = tpu.matmul %111, %112, %cst_50 {dimension_numbers = #tpu.dot_dimension_numbers<[2], [1], [1], [2], [0, 0, 0, 1, 1, 2], [0], [0]>} : vector<4x16x8xbf16>, vector<4x8x16xbf16>, vector<4x16x16xf32> -> vector<4x16x16xf32>
    "tpu.trace_stop"() : () -> ()
    %114 = vector.shape_cast %0 : vector<16x16xf32> to vector<1x16x16xf32>
    %115 = vector.broadcast %114 : vector<1x16x16xf32> to vector<4x16x16xf32>
    %116 = arith.addf %113, %115 : vector<4x16x16xf32>
    %cst_51 = arith.constant dense<0xFF800000> : vector<4x16xf32>
    %117 = vector.multi_reduction <maximumf>, %116, %cst_51 [2] : vector<4x16x16xf32> to vector<4x16xf32>
    %118 = vector.shape_cast %117 : vector<4x16xf32> to vector<4x16x1xf32>
    %119 = vector.broadcast %118 : vector<4x16x1xf32> to vector<4x16x16xf32>
    %120 = arith.subf %116, %119 : vector<4x16x16xf32>
    %121 = math.exp %120 : vector<4x16x16xf32>
    %cst_52 = arith.constant dense<0.000000e+00> : vector<4x16xf32>
    %122 = vector.multi_reduction <add>, %121, %cst_52 [2] : vector<4x16x16xf32> to vector<4x16xf32>
    %123 = vector.shape_cast %122 : vector<4x16xf32> to vector<4x16x1xf32>
    %124 = tpu.reciprocal %123 {approx = true} : vector<4x16x1xf32> -> vector<4x16x1xf32>
    %125 = vector.broadcast %124 : vector<4x16x1xf32> to vector<4x16x16xf32>
    %126 = arith.mulf %121, %125 : vector<4x16x16xf32>
    %127 = arith.truncf %109 : vector<4x8x16xf32> to vector<4x8x16xbf16>
    %128 = arith.truncf %126 : vector<4x16x16xf32> to vector<4x16x16xbf16>
    "tpu.trace_start"() <{level = 10 : i32, message = "hdk,hqk->hdq"}> : () -> ()
    %cst_53 = arith.constant dense<0.000000e+00> : vector<4x8x16xf32>
    %129 = tpu.matmul %127, %128, %cst_53 {dimension_numbers = #tpu.dot_dimension_numbers<[2], [2], [1], [1], [0, 0, 0, 1, 1, 1], [0], [0]>} : vector<4x8x16xbf16>, vector<4x16x16xbf16>, vector<4x8x16xf32> -> vector<4x8x16xf32>
    "tpu.trace_stop"() : () -> ()
    %130 = vector.shape_cast %129 : vector<4x8x16xf32> to vector<32x16xf32>
    %131 = tpu.transpose %130, [1, 0] : vector<32x16xf32> -> vector<16x32xf32>
    %132 = arith.truncf %131 : vector<16x32xf32> to vector<16x32xbf16>
    %c0_54 = arith.constant 0 : index
    %c0_55 = arith.constant 0 : index
    %c0_56 = arith.constant 0 : index
    %133 = vector.load %arg15[%c0_54, %c0_55, %c0_56] : memref<2x32x32xbf16, #tpu.memory_space<vmem>>, vector<1x32x32xbf16>
    %134 = vector.shape_cast %133 : vector<1x32x32xbf16> to vector<32x32xbf16>
    %cst_57 = arith.constant dense<0.000000e+00> : vector<16x32xf32>
    %135 = tpu.matmul %132, %134, %cst_57 {dimension_numbers = #tpu.dot_dimension_numbers<[1], [0], [0], [1], [0, 0, 1, 1], [], []>} : vector<16x32xbf16>, vector<32x32xbf16>, vector<16x32xf32> -> vector<16x32xf32>
    %c0_58 = arith.constant 0 : index
    %c0_59 = arith.constant 0 : index
    %c0_60 = arith.constant 0 : index
    %136 = vector.load %arg16[%c0_58, %c0_59, %c0_60] : memref<2x1x32xf32, #tpu.memory_space<vmem>>, vector<1x1x32xf32>
    %137 = vector.shape_cast %136 : vector<1x1x32xf32> to vector<1x32xf32>
    %138 = vector.broadcast %137 : vector<1x32xf32> to vector<16x32xf32>
    %139 = arith.addf %135, %138 : vector<16x32xf32>
    %140 = arith.addf %85, %139 : vector<16x32xf32>
    %c0_61 = arith.constant 0 : index
    %c0_62 = arith.constant 0 : index
    %c0_63 = arith.constant 0 : index
    %141 = vector.load %arg23[%c0_61, %c0_62, %c0_63] : memref<2x1x32xf32, #tpu.memory_space<vmem>>, vector<1x1x32xf32>
    %142 = vector.shape_cast %141 : vector<1x1x32xf32> to vector<1x32xf32>
    %c0_64 = arith.constant 0 : index
    %c0_65 = arith.constant 0 : index
    %c0_66 = arith.constant 0 : index
    %143 = vector.load %arg24[%c0_64, %c0_65, %c0_66] : memref<2x1x32xf32, #tpu.memory_space<vmem>>, vector<1x1x32xf32>
    %144 = vector.shape_cast %143 : vector<1x1x32xf32> to vector<1x32xf32>
    %cst_67 = arith.constant dense<0.000000e+00> : vector<16xf32>
    %145 = vector.multi_reduction <add>, %140, %cst_67 [1] : vector<16x32xf32> to vector<16xf32>
    %146 = vector.shape_cast %145 : vector<16xf32> to vector<16x1xf32>
    %cst_68 = arith.constant 3.200000e+01 : f32
    %147 = vector.broadcast %cst_68 : f32 to vector<16x1xf32>
    %148 = arith.divf %146, %147 : vector<16x1xf32>
    %149 = arith.mulf %140, %140 : vector<16x32xf32>
    %cst_69 = arith.constant dense<0.000000e+00> : vector<16xf32>
    %150 = vector.multi_reduction <add>, %149, %cst_69 [1] : vector<16x32xf32> to vector<16xf32>
    %151 = vector.shape_cast %150 : vector<16xf32> to vector<16x1xf32>
    %cst_70 = arith.constant 3.200000e+01 : f32
    %152 = vector.broadcast %cst_70 : f32 to vector<16x1xf32>
    %153 = arith.divf %151, %152 : vector<16x1xf32>
    %154 = arith.mulf %148, %148 : vector<16x1xf32>
    %155 = arith.subf %153, %154 : vector<16x1xf32>
    %156 = vector.broadcast %148 : vector<16x1xf32> to vector<16x32xf32>
    %157 = arith.subf %140, %156 : vector<16x32xf32>
    %cst_71 = arith.constant 9.99999974E-6 : f32
    %158 = vector.broadcast %cst_71 : f32 to vector<16x1xf32>
    %159 = arith.addf %155, %158 : vector<16x1xf32>
    %160 = math.rsqrt %159 : vector<16x1xf32>
    %161 = vector.broadcast %160 : vector<16x1xf32> to vector<16x32xf32>
    %162 = arith.mulf %157, %161 : vector<16x32xf32>
    %163 = vector.broadcast %142 : vector<1x32xf32> to vector<16x32xf32>
    %164 = arith.mulf %162, %163 : vector<16x32xf32>
    %165 = vector.broadcast %144 : vector<1x32xf32> to vector<16x32xf32>
    %166 = arith.addf %164, %165 : vector<16x32xf32>
    %167 = arith.truncf %166 : vector<16x32xf32> to vector<16x32xbf16>
    %c0_72 = arith.constant 0 : index
    %c0_73 = arith.constant 0 : index
    %c0_74 = arith.constant 0 : index
    %168 = vector.load %arg17[%c0_72, %c0_73, %c0_74] : memref<2x32x64xbf16, #tpu.memory_space<vmem>>, vector<1x32x64xbf16>
    %169 = vector.shape_cast %168 : vector<1x32x64xbf16> to vector<32x64xbf16>
    %cst_75 = arith.constant dense<0.000000e+00> : vector<16x64xf32>
    %170 = tpu.matmul %167, %169, %cst_75 {dimension_numbers = #tpu.dot_dimension_numbers<[1], [0], [0], [1], [0, 0, 1, 1], [], []>} : vector<16x32xbf16>, vector<32x64xbf16>, vector<16x64xf32> -> vector<16x64xf32>
    %c0_76 = arith.constant 0 : index
    %c0_77 = arith.constant 0 : index
    %c0_78 = arith.constant 0 : index
    %171 = vector.load %arg18[%c0_76, %c0_77, %c0_78] : memref<2x1x64xf32, #tpu.memory_space<vmem>>, vector<1x1x64xf32>
    %172 = vector.shape_cast %171 : vector<1x1x64xf32> to vector<1x64xf32>
    %173 = vector.broadcast %172 : vector<1x64xf32> to vector<16x64xf32>
    %174 = arith.addf %170, %173 : vector<16x64xf32>
    %cst_79 = arith.constant 5.000000e-01 : f32
    %175 = vector.broadcast %cst_79 : f32 to vector<16x64xf32>
    %176 = arith.mulf %175, %174 : vector<16x64xf32>
    %cst_80 = arith.constant 4.471500e-02 : f32
    %177 = vector.broadcast %cst_80 : f32 to vector<16x64xf32>
    %178 = arith.mulf %177, %174 : vector<16x64xf32>
    %179 = arith.mulf %178, %174 : vector<16x64xf32>
    %180 = arith.mulf %179, %174 : vector<16x64xf32>
    %181 = arith.addf %174, %180 : vector<16x64xf32>
    %cst_81 = arith.constant 0.797884583 : f32
    %182 = vector.broadcast %cst_81 : f32 to vector<16x64xf32>
    %183 = arith.mulf %182, %181 : vector<16x64xf32>
    %184 = math.tanh %183 : vector<16x64xf32>
    %cst_82 = arith.constant 1.000000e+00 : f32
    %185 = vector.broadcast %cst_82 : f32 to vector<16x64xf32>
    %186 = arith.addf %185, %184 : vector<16x64xf32>
    %187 = arith.mulf %176, %186 : vector<16x64xf32>
    %188 = arith.truncf %187 : vector<16x64xf32> to vector<16x64xbf16>
    %c0_83 = arith.constant 0 : index
    %c0_84 = arith.constant 0 : index
    %c0_85 = arith.constant 0 : index
    %189 = vector.load %arg19[%c0_83, %c0_84, %c0_85] : memref<2x64x32xbf16, #tpu.memory_space<vmem>>, vector<1x64x32xbf16>
    %190 = vector.shape_cast %189 : vector<1x64x32xbf16> to vector<64x32xbf16>
    %cst_86 = arith.constant dense<0.000000e+00> : vector<16x32xf32>
    %191 = tpu.matmul %188, %190, %cst_86 {dimension_numbers = #tpu.dot_dimension_numbers<[1], [0], [0], [1], [0, 0, 1, 1], [], []>} : vector<16x64xbf16>, vector<64x32xbf16>, vector<16x32xf32> -> vector<16x32xf32>
    %c0_87 = arith.constant 0 : index
    %c0_88 = arith.constant 0 : index
    %c0_89 = arith.constant 0 : index
    %192 = vector.load %arg20[%c0_87, %c0_88, %c0_89] : memref<2x1x32xf32, #tpu.memory_space<vmem>>, vector<1x1x32xf32>
    %193 = vector.shape_cast %192 : vector<1x1x32xf32> to vector<1x32xf32>
    %194 = vector.broadcast %193 : vector<1x32xf32> to vector<16x32xf32>
    %195 = arith.addf %191, %194 : vector<16x32xf32>
    %196 = arith.addf %166, %195 : vector<16x32xf32>
    %c0_90 = arith.constant 0 : index
    %c0_91 = arith.constant 0 : index
    %c0_92 = arith.constant 0 : index
    %197 = vector.load %arg25[%c0_90, %c0_91, %c0_92] : memref<2x1x32xf32, #tpu.memory_space<vmem>>, vector<1x1x32xf32>
    %198 = vector.shape_cast %197 : vector<1x1x32xf32> to vector<1x32xf32>
    %c0_93 = arith.constant 0 : index
    %c0_94 = arith.constant 0 : index
    %c0_95 = arith.constant 0 : index
    %199 = vector.load %arg26[%c0_93, %c0_94, %c0_95] : memref<2x1x32xf32, #tpu.memory_space<vmem>>, vector<1x1x32xf32>
    %200 = vector.shape_cast %199 : vector<1x1x32xf32> to vector<1x32xf32>
    %cst_96 = arith.constant dense<0.000000e+00> : vector<16xf32>
    %201 = vector.multi_reduction <add>, %196, %cst_96 [1] : vector<16x32xf32> to vector<16xf32>
    %202 = vector.shape_cast %201 : vector<16xf32> to vector<16x1xf32>
    %cst_97 = arith.constant 3.200000e+01 : f32
    %203 = vector.broadcast %cst_97 : f32 to vector<16x1xf32>
    %204 = arith.divf %202, %203 : vector<16x1xf32>
    %205 = arith.mulf %196, %196 : vector<16x32xf32>
    %cst_98 = arith.constant dense<0.000000e+00> : vector<16xf32>
    %206 = vector.multi_reduction <add>, %205, %cst_98 [1] : vector<16x32xf32> to vector<16xf32>
    %207 = vector.shape_cast %206 : vector<16xf32> to vector<16x1xf32>
    %cst_99 = arith.constant 3.200000e+01 : f32
    %208 = vector.broadcast %cst_99 : f32 to vector<16x1xf32>
    %209 = arith.divf %207, %208 : vector<16x1xf32>
    %210 = arith.mulf %204, %204 : vector<16x1xf32>
    %211 = arith.subf %209, %210 : vector<16x1xf32>
    %212 = vector.broadcast %204 : vector<16x1xf32> to vector<16x32xf32>
    %213 = arith.subf %196, %212 : vector<16x32xf32>
    %cst_100 = arith.constant 9.99999974E-6 : f32
    %214 = vector.broadcast %cst_100 : f32 to vector<16x1xf32>
    %215 = arith.addf %211, %214 : vector<16x1xf32>
    %216 = math.rsqrt %215 : vector<16x1xf32>
    %217 = vector.broadcast %216 : vector<16x1xf32> to vector<16x32xf32>
    %218 = arith.mulf %213, %217 : vector<16x32xf32>
    %219 = vector.broadcast %198 : vector<1x32xf32> to vector<16x32xf32>
    %220 = arith.mulf %218, %219 : vector<16x32xf32>
    %221 = vector.broadcast %200 : vector<1x32xf32> to vector<16x32xf32>
    %222 = arith.addf %220, %221 : vector<16x32xf32>
    %223 = arith.truncf %222 : vector<16x32xf32> to vector<16x32xbf16>
    %c1 = arith.constant 1 : index
    %c0_101 = arith.constant 0 : index
    %c0_102 = arith.constant 0 : index
    %224 = vector.load %arg7[%c1, %c0_101, %c0_102] : memref<2x32x96xbf16, #tpu.memory_space<vmem>>, vector<1x32x96xbf16>
    %225 = vector.shape_cast %224 : vector<1x32x96xbf16> to vector<32x96xbf16>
    %cst_103 = arith.constant dense<0.000000e+00> : vector<16x96xf32>
    %226 = tpu.matmul %223, %225, %cst_103 {dimension_numbers = #tpu.dot_dimension_numbers<[1], [0], [0], [1], [0, 0, 1, 1], [], []>} : vector<16x32xbf16>, vector<32x96xbf16>, vector<16x96xf32> -> vector<16x96xf32>
    %c1_104 = arith.constant 1 : index
    %c0_105 = arith.constant 0 : index
    %c0_106 = arith.constant 0 : index
    %227 = vector.load %arg8[%c1_104, %c0_105, %c0_106] : memref<2x1x96xf32, #tpu.memory_space<vmem>>, vector<1x1x96xf32>
    %228 = vector.shape_cast %227 : vector<1x1x96xf32> to vector<1x96xf32>
    %229 = vector.broadcast %228 : vector<1x96xf32> to vector<16x96xf32>
    %230 = arith.addf %226, %229 : vector<16x96xf32>
    %231 = vector.extract_strided_slice %230 {offsets = [0, 0], sizes = [16, 32], strides = [1, 1]} : vector<16x96xf32> to vector<16x32xf32>
    %232 = vector.extract_strided_slice %230 {offsets = [0, 32], sizes = [16, 32], strides = [1, 1]} : vector<16x96xf32> to vector<16x32xf32>
    %233 = vector.extract_strided_slice %230 {offsets = [0, 64], sizes = [16, 32], strides = [1, 1]} : vector<16x96xf32> to vector<16x32xf32>
    %234 = tpu.transpose %231, [1, 0] : vector<16x32xf32> -> vector<32x16xf32>
    %235 = vector.shape_cast %234 : vector<32x16xf32> to vector<4x8x16xf32>
    %236 = tpu.transpose %232, [1, 0] : vector<16x32xf32> -> vector<32x16xf32>
    %237 = vector.shape_cast %236 : vector<32x16xf32> to vector<4x8x16xf32>
    %238 = tpu.transpose %233, [1, 0] : vector<16x32xf32> -> vector<32x16xf32>
    %239 = vector.shape_cast %238 : vector<32x16xf32> to vector<4x8x16xf32>
    %240 = tpu.transpose %235, [0, 2, 1] : vector<4x8x16xf32> -> vector<4x16x8xf32>
    %241 = arith.truncf %240 : vector<4x16x8xf32> to vector<4x16x8xbf16>
    %242 = arith.truncf %237 : vector<4x8x16xf32> to vector<4x8x16xbf16>
    "tpu.trace_start"() <{level = 10 : i32, message = "hqd,hdk->hqk"}> : () -> ()
    %cst_107 = arith.constant dense<0.000000e+00> : vector<4x16x16xf32>
    %243 = tpu.matmul %241, %242, %cst_107 {dimension_numbers = #tpu.dot_dimension_numbers<[2], [1], [1], [2], [0, 0, 0, 1, 1, 2], [0], [0]>} : vector<4x16x8xbf16>, vector<4x8x16xbf16>, vector<4x16x16xf32> -> vector<4x16x16xf32>
    "tpu.trace_stop"() : () -> ()
    %244 = vector.shape_cast %0 : vector<16x16xf32> to vector<1x16x16xf32>
    %245 = vector.broadcast %244 : vector<1x16x16xf32> to vector<4x16x16xf32>
    %246 = arith.addf %243, %245 : vector<4x16x16xf32>
    %cst_108 = arith.constant dense<0xFF800000> : vector<4x16xf32>
    %247 = vector.multi_reduction <maximumf>, %246, %cst_108 [2] : vector<4x16x16xf32> to vector<4x16xf32>
    %248 = vector.shape_cast %247 : vector<4x16xf32> to vector<4x16x1xf32>
    %249 = vector.broadcast %248 : vector<4x16x1xf32> to vector<4x16x16xf32>
    %250 = arith.subf %246, %249 : vector<4x16x16xf32>
    %251 = math.exp %250 : vector<4x16x16xf32>
    %cst_109 = arith.constant dense<0.000000e+00> : vector<4x16xf32>
    %252 = vector.multi_reduction <add>, %251, %cst_109 [2] : vector<4x16x16xf32> to vector<4x16xf32>
    %253 = vector.shape_cast %252 : vector<4x16xf32> to vector<4x16x1xf32>
    %254 = tpu.reciprocal %253 {approx = true} : vector<4x16x1xf32> -> vector<4x16x1xf32>
    %255 = vector.broadcast %254 : vector<4x16x1xf32> to vector<4x16x16xf32>
    %256 = arith.mulf %251, %255 : vector<4x16x16xf32>
    %257 = arith.truncf %239 : vector<4x8x16xf32> to vector<4x8x16xbf16>
    %258 = arith.truncf %256 : vector<4x16x16xf32> to vector<4x16x16xbf16>
    "tpu.trace_start"() <{level = 10 : i32, message = "hdk,hqk->hdq"}> : () -> ()
    %cst_110 = arith.constant dense<0.000000e+00> : vector<4x8x16xf32>
    %259 = tpu.matmul %257, %258, %cst_110 {dimension_numbers = #tpu.dot_dimension_numbers<[2], [2], [1], [1], [0, 0, 0, 1, 1, 1], [0], [0]>} : vector<4x8x16xbf16>, vector<4x16x16xbf16>, vector<4x8x16xf32> -> vector<4x8x16xf32>
    "tpu.trace_stop"() : () -> ()
    %260 = vector.shape_cast %259 : vector<4x8x16xf32> to vector<32x16xf32>
    %261 = tpu.transpose %260, [1, 0] : vector<32x16xf32> -> vector<16x32xf32>
    %262 = arith.truncf %261 : vector<16x32xf32> to vector<16x32xbf16>
    %c1_111 = arith.constant 1 : index
    %c0_112 = arith.constant 0 : index
    %c0_113 = arith.constant 0 : index
    %263 = vector.load %arg9[%c1_111, %c0_112, %c0_113] : memref<2x32x32xbf16, #tpu.memory_space<vmem>>, vector<1x32x32xbf16>
    %264 = vector.shape_cast %263 : vector<1x32x32xbf16> to vector<32x32xbf16>
    %cst_114 = arith.constant dense<0.000000e+00> : vector<16x32xf32>
    %265 = tpu.matmul %262, %264, %cst_114 {dimension_numbers = #tpu.dot_dimension_numbers<[1], [0], [0], [1], [0, 0, 1, 1], [], []>} : vector<16x32xbf16>, vector<32x32xbf16>, vector<16x32xf32> -> vector<16x32xf32>
    %c1_115 = arith.constant 1 : index
    %c0_116 = arith.constant 0 : index
    %c0_117 = arith.constant 0 : index
    %266 = vector.load %arg10[%c1_115, %c0_116, %c0_117] : memref<2x1x32xf32, #tpu.memory_space<vmem>>, vector<1x1x32xf32>
    %267 = vector.shape_cast %266 : vector<1x1x32xf32> to vector<1x32xf32>
    %268 = vector.broadcast %267 : vector<1x32xf32> to vector<16x32xf32>
    %269 = arith.addf %265, %268 : vector<16x32xf32>
    %270 = arith.addf %222, %269 : vector<16x32xf32>
    %c1_118 = arith.constant 1 : index
    %c0_119 = arith.constant 0 : index
    %c0_120 = arith.constant 0 : index
    %271 = vector.load %arg21[%c1_118, %c0_119, %c0_120] : memref<2x1x32xf32, #tpu.memory_space<vmem>>, vector<1x1x32xf32>
    %272 = vector.shape_cast %271 : vector<1x1x32xf32> to vector<1x32xf32>
    %c1_121 = arith.constant 1 : index
    %c0_122 = arith.constant 0 : index
    %c0_123 = arith.constant 0 : index
    %273 = vector.load %arg22[%c1_121, %c0_122, %c0_123] : memref<2x1x32xf32, #tpu.memory_space<vmem>>, vector<1x1x32xf32>
    %274 = vector.shape_cast %273 : vector<1x1x32xf32> to vector<1x32xf32>
    %cst_124 = arith.constant dense<0.000000e+00> : vector<16xf32>
    %275 = vector.multi_reduction <add>, %270, %cst_124 [1] : vector<16x32xf32> to vector<16xf32>
    %276 = vector.shape_cast %275 : vector<16xf32> to vector<16x1xf32>
    %cst_125 = arith.constant 3.200000e+01 : f32
    %277 = vector.broadcast %cst_125 : f32 to vector<16x1xf32>
    %278 = arith.divf %276, %277 : vector<16x1xf32>
    %279 = arith.mulf %270, %270 : vector<16x32xf32>
    %cst_126 = arith.constant dense<0.000000e+00> : vector<16xf32>
    %280 = vector.multi_reduction <add>, %279, %cst_126 [1] : vector<16x32xf32> to vector<16xf32>
    %281 = vector.shape_cast %280 : vector<16xf32> to vector<16x1xf32>
    %cst_127 = arith.constant 3.200000e+01 : f32
    %282 = vector.broadcast %cst_127 : f32 to vector<16x1xf32>
    %283 = arith.divf %281, %282 : vector<16x1xf32>
    %284 = arith.mulf %278, %278 : vector<16x1xf32>
    %285 = arith.subf %283, %284 : vector<16x1xf32>
    %286 = vector.broadcast %278 : vector<16x1xf32> to vector<16x32xf32>
    %287 = arith.subf %270, %286 : vector<16x32xf32>
    %cst_128 = arith.constant 9.99999974E-6 : f32
    %288 = vector.broadcast %cst_128 : f32 to vector<16x1xf32>
    %289 = arith.addf %285, %288 : vector<16x1xf32>
    %290 = math.rsqrt %289 : vector<16x1xf32>
    %291 = vector.broadcast %290 : vector<16x1xf32> to vector<16x32xf32>
    %292 = arith.mulf %287, %291 : vector<16x32xf32>
    %293 = vector.broadcast %272 : vector<1x32xf32> to vector<16x32xf32>
    %294 = arith.mulf %292, %293 : vector<16x32xf32>
    %295 = vector.broadcast %274 : vector<1x32xf32> to vector<16x32xf32>
    %296 = arith.addf %294, %295 : vector<16x32xf32>
    %297 = arith.truncf %296 : vector<16x32xf32> to vector<16x32xbf16>
    %298 = arith.truncf %222 : vector<16x32xf32> to vector<16x32xbf16>
    %c1_129 = arith.constant 1 : index
    %c0_130 = arith.constant 0 : index
    %c0_131 = arith.constant 0 : index
    %299 = vector.load %arg11[%c1_129, %c0_130, %c0_131] : memref<2x32x32xbf16, #tpu.memory_space<vmem>>, vector<1x32x32xbf16>
    %300 = vector.shape_cast %299 : vector<1x32x32xbf16> to vector<32x32xbf16>
    %cst_132 = arith.constant dense<0.000000e+00> : vector<16x32xf32>
    %301 = tpu.matmul %297, %300, %cst_132 {dimension_numbers = #tpu.dot_dimension_numbers<[1], [0], [0], [1], [0, 0, 1, 1], [], []>} : vector<16x32xbf16>, vector<32x32xbf16>, vector<16x32xf32> -> vector<16x32xf32>
    %c1_133 = arith.constant 1 : index
    %c0_134 = arith.constant 0 : index
    %c0_135 = arith.constant 0 : index
    %302 = vector.load %arg12[%c1_133, %c0_134, %c0_135] : memref<2x1x32xf32, #tpu.memory_space<vmem>>, vector<1x1x32xf32>
    %303 = vector.shape_cast %302 : vector<1x1x32xf32> to vector<1x32xf32>
    %304 = vector.broadcast %303 : vector<1x32xf32> to vector<16x32xf32>
    %305 = arith.addf %301, %304 : vector<16x32xf32>
    %c1_136 = arith.constant 1 : index
    %c0_137 = arith.constant 0 : index
    %c0_138 = arith.constant 0 : index
    %306 = vector.load %arg13[%c1_136, %c0_137, %c0_138] : memref<2x32x64xbf16, #tpu.memory_space<vmem>>, vector<1x32x64xbf16>
    %307 = vector.shape_cast %306 : vector<1x32x64xbf16> to vector<32x64xbf16>
    %cst_139 = arith.constant dense<0.000000e+00> : vector<16x64xf32>
    %308 = tpu.matmul %298, %307, %cst_139 {dimension_numbers = #tpu.dot_dimension_numbers<[1], [0], [0], [1], [0, 0, 1, 1], [], []>} : vector<16x32xbf16>, vector<32x64xbf16>, vector<16x64xf32> -> vector<16x64xf32>
    %c1_140 = arith.constant 1 : index
    %c0_141 = arith.constant 0 : index
    %c0_142 = arith.constant 0 : index
    %309 = vector.load %arg14[%c1_140, %c0_141, %c0_142] : memref<2x1x64xf32, #tpu.memory_space<vmem>>, vector<1x1x64xf32>
    %310 = vector.shape_cast %309 : vector<1x1x64xf32> to vector<1x64xf32>
    %311 = vector.broadcast %310 : vector<1x64xf32> to vector<16x64xf32>
    %312 = arith.addf %308, %311 : vector<16x64xf32>
    %313 = vector.extract_strided_slice %312 {offsets = [0, 0], sizes = [16, 32], strides = [1, 1]} : vector<16x64xf32> to vector<16x32xf32>
    %314 = vector.extract_strided_slice %312 {offsets = [0, 32], sizes = [16, 32], strides = [1, 1]} : vector<16x64xf32> to vector<16x32xf32>
    %315 = tpu.transpose %305, [1, 0] : vector<16x32xf32> -> vector<32x16xf32>
    %316 = vector.shape_cast %315 : vector<32x16xf32> to vector<4x8x16xf32>
    %317 = tpu.transpose %313, [1, 0] : vector<16x32xf32> -> vector<32x16xf32>
    %318 = vector.shape_cast %317 : vector<32x16xf32> to vector<4x8x16xf32>
    %319 = tpu.transpose %314, [1, 0] : vector<16x32xf32> -> vector<32x16xf32>
    %320 = vector.shape_cast %319 : vector<32x16xf32> to vector<4x8x16xf32>
    %321 = tpu.transpose %316, [0, 2, 1] : vector<4x8x16xf32> -> vector<4x16x8xf32>
    %322 = arith.truncf %321 : vector<4x16x8xf32> to vector<4x16x8xbf16>
    %323 = arith.truncf %318 : vector<4x8x16xf32> to vector<4x8x16xbf16>
    "tpu.trace_start"() <{level = 10 : i32, message = "hqd,hdk->hqk"}> : () -> ()
    %cst_143 = arith.constant dense<0.000000e+00> : vector<4x16x16xf32>
    %324 = tpu.matmul %322, %323, %cst_143 {dimension_numbers = #tpu.dot_dimension_numbers<[2], [1], [1], [2], [0, 0, 0, 1, 1, 2], [0], [0]>} : vector<4x16x8xbf16>, vector<4x8x16xbf16>, vector<4x16x16xf32> -> vector<4x16x16xf32>
    "tpu.trace_stop"() : () -> ()
    %325 = vector.shape_cast %0 : vector<16x16xf32> to vector<1x16x16xf32>
    %326 = vector.broadcast %325 : vector<1x16x16xf32> to vector<4x16x16xf32>
    %327 = arith.addf %324, %326 : vector<4x16x16xf32>
    %cst_144 = arith.constant dense<0xFF800000> : vector<4x16xf32>
    %328 = vector.multi_reduction <maximumf>, %327, %cst_144 [2] : vector<4x16x16xf32> to vector<4x16xf32>
    %329 = vector.shape_cast %328 : vector<4x16xf32> to vector<4x16x1xf32>
    %330 = vector.broadcast %329 : vector<4x16x1xf32> to vector<4x16x16xf32>
    %331 = arith.subf %327, %330 : vector<4x16x16xf32>
    %332 = math.exp %331 : vector<4x16x16xf32>
    %cst_145 = arith.constant dense<0.000000e+00> : vector<4x16xf32>
    %333 = vector.multi_reduction <add>, %332, %cst_145 [2] : vector<4x16x16xf32> to vector<4x16xf32>
    %334 = vector.shape_cast %333 : vector<4x16xf32> to vector<4x16x1xf32>
    %335 = tpu.reciprocal %334 {approx = true} : vector<4x16x1xf32> -> vector<4x16x1xf32>
    %336 = vector.broadcast %335 : vector<4x16x1xf32> to vector<4x16x16xf32>
    %337 = arith.mulf %332, %336 : vector<4x16x16xf32>
    %338 = arith.truncf %320 : vector<4x8x16xf32> to vector<4x8x16xbf16>
    %339 = arith.truncf %337 : vector<4x16x16xf32> to vector<4x16x16xbf16>
    "tpu.trace_start"() <{level = 10 : i32, message = "hdk,hqk->hdq"}> : () -> ()
    %cst_146 = arith.constant dense<0.000000e+00> : vector<4x8x16xf32>
    %340 = tpu.matmul %338, %339, %cst_146 {dimension_numbers = #tpu.dot_dimension_numbers<[2], [2], [1], [1], [0, 0, 0, 1, 1, 1], [0], [0]>} : vector<4x8x16xbf16>, vector<4x16x16xbf16>, vector<4x8x16xf32> -> vector<4x8x16xf32>
    "tpu.trace_stop"() : () -> ()
    %341 = vector.shape_cast %340 : vector<4x8x16xf32> to vector<32x16xf32>
    %342 = tpu.transpose %341, [1, 0] : vector<32x16xf32> -> vector<16x32xf32>
    %343 = arith.truncf %342 : vector<16x32xf32> to vector<16x32xbf16>
    %c1_147 = arith.constant 1 : index
    %c0_148 = arith.constant 0 : index
    %c0_149 = arith.constant 0 : index
    %344 = vector.load %arg15[%c1_147, %c0_148, %c0_149] : memref<2x32x32xbf16, #tpu.memory_space<vmem>>, vector<1x32x32xbf16>
    %345 = vector.shape_cast %344 : vector<1x32x32xbf16> to vector<32x32xbf16>
    %cst_150 = arith.constant dense<0.000000e+00> : vector<16x32xf32>
    %346 = tpu.matmul %343, %345, %cst_150 {dimension_numbers = #tpu.dot_dimension_numbers<[1], [0], [0], [1], [0, 0, 1, 1], [], []>} : vector<16x32xbf16>, vector<32x32xbf16>, vector<16x32xf32> -> vector<16x32xf32>
    %c1_151 = arith.constant 1 : index
    %c0_152 = arith.constant 0 : index
    %c0_153 = arith.constant 0 : index
    %347 = vector.load %arg16[%c1_151, %c0_152, %c0_153] : memref<2x1x32xf32, #tpu.memory_space<vmem>>, vector<1x1x32xf32>
    %348 = vector.shape_cast %347 : vector<1x1x32xf32> to vector<1x32xf32>
    %349 = vector.broadcast %348 : vector<1x32xf32> to vector<16x32xf32>
    %350 = arith.addf %346, %349 : vector<16x32xf32>
    %351 = arith.addf %296, %350 : vector<16x32xf32>
    %c1_154 = arith.constant 1 : index
    %c0_155 = arith.constant 0 : index
    %c0_156 = arith.constant 0 : index
    %352 = vector.load %arg23[%c1_154, %c0_155, %c0_156] : memref<2x1x32xf32, #tpu.memory_space<vmem>>, vector<1x1x32xf32>
    %353 = vector.shape_cast %352 : vector<1x1x32xf32> to vector<1x32xf32>
    %c1_157 = arith.constant 1 : index
    %c0_158 = arith.constant 0 : index
    %c0_159 = arith.constant 0 : index
    %354 = vector.load %arg24[%c1_157, %c0_158, %c0_159] : memref<2x1x32xf32, #tpu.memory_space<vmem>>, vector<1x1x32xf32>
    %355 = vector.shape_cast %354 : vector<1x1x32xf32> to vector<1x32xf32>
    %cst_160 = arith.constant dense<0.000000e+00> : vector<16xf32>
    %356 = vector.multi_reduction <add>, %351, %cst_160 [1] : vector<16x32xf32> to vector<16xf32>
    %357 = vector.shape_cast %356 : vector<16xf32> to vector<16x1xf32>
    %cst_161 = arith.constant 3.200000e+01 : f32
    %358 = vector.broadcast %cst_161 : f32 to vector<16x1xf32>
    %359 = arith.divf %357, %358 : vector<16x1xf32>
    %360 = arith.mulf %351, %351 : vector<16x32xf32>
    %cst_162 = arith.constant dense<0.000000e+00> : vector<16xf32>
    %361 = vector.multi_reduction <add>, %360, %cst_162 [1] : vector<16x32xf32> to vector<16xf32>
    %362 = vector.shape_cast %361 : vector<16xf32> to vector<16x1xf32>
    %cst_163 = arith.constant 3.200000e+01 : f32
    %363 = vector.broadcast %cst_163 : f32 to vector<16x1xf32>
    %364 = arith.divf %362, %363 : vector<16x1xf32>
    %365 = arith.mulf %359, %359 : vector<16x1xf32>
    %366 = arith.subf %364, %365 : vector<16x1xf32>
    %367 = vector.broadcast %359 : vector<16x1xf32> to vector<16x32xf32>
    %368 = arith.subf %351, %367 : vector<16x32xf32>
    %cst_164 = arith.constant 9.99999974E-6 : f32
    %369 = vector.broadcast %cst_164 : f32 to vector<16x1xf32>
    %370 = arith.addf %366, %369 : vector<16x1xf32>
    %371 = math.rsqrt %370 : vector<16x1xf32>
    %372 = vector.broadcast %371 : vector<16x1xf32> to vector<16x32xf32>
    %373 = arith.mulf %368, %372 : vector<16x32xf32>
    %374 = vector.broadcast %353 : vector<1x32xf32> to vector<16x32xf32>
    %375 = arith.mulf %373, %374 : vector<16x32xf32>
    %376 = vector.broadcast %355 : vector<1x32xf32> to vector<16x32xf32>
    %377 = arith.addf %375, %376 : vector<16x32xf32>
    %378 = arith.truncf %377 : vector<16x32xf32> to vector<16x32xbf16>
    %c1_165 = arith.constant 1 : index
    %c0_166 = arith.constant 0 : index
    %c0_167 = arith.constant 0 : index
    %379 = vector.load %arg17[%c1_165, %c0_166, %c0_167] : memref<2x32x64xbf16, #tpu.memory_space<vmem>>, vector<1x32x64xbf16>
    %380 = vector.shape_cast %379 : vector<1x32x64xbf16> to vector<32x64xbf16>
    %cst_168 = arith.constant dense<0.000000e+00> : vector<16x64xf32>
    %381 = tpu.matmul %378, %380, %cst_168 {dimension_numbers = #tpu.dot_dimension_numbers<[1], [0], [0], [1], [0, 0, 1, 1], [], []>} : vector<16x32xbf16>, vector<32x64xbf16>, vector<16x64xf32> -> vector<16x64xf32>
    %c1_169 = arith.constant 1 : index
    %c0_170 = arith.constant 0 : index
    %c0_171 = arith.constant 0 : index
    %382 = vector.load %arg18[%c1_169, %c0_170, %c0_171] : memref<2x1x64xf32, #tpu.memory_space<vmem>>, vector<1x1x64xf32>
    %383 = vector.shape_cast %382 : vector<1x1x64xf32> to vector<1x64xf32>
    %384 = vector.broadcast %383 : vector<1x64xf32> to vector<16x64xf32>
    %385 = arith.addf %381, %384 : vector<16x64xf32>
    %cst_172 = arith.constant 5.000000e-01 : f32
    %386 = vector.broadcast %cst_172 : f32 to vector<16x64xf32>
    %387 = arith.mulf %386, %385 : vector<16x64xf32>
    %cst_173 = arith.constant 4.471500e-02 : f32
    %388 = vector.broadcast %cst_173 : f32 to vector<16x64xf32>
    %389 = arith.mulf %388, %385 : vector<16x64xf32>
    %390 = arith.mulf %389, %385 : vector<16x64xf32>
    %391 = arith.mulf %390, %385 : vector<16x64xf32>
    %392 = arith.addf %385, %391 : vector<16x64xf32>
    %cst_174 = arith.constant 0.797884583 : f32
    %393 = vector.broadcast %cst_174 : f32 to vector<16x64xf32>
    %394 = arith.mulf %393, %392 : vector<16x64xf32>
    %395 = math.tanh %394 : vector<16x64xf32>
    %cst_175 = arith.constant 1.000000e+00 : f32
    %396 = vector.broadcast %cst_175 : f32 to vector<16x64xf32>
    %397 = arith.addf %396, %395 : vector<16x64xf32>
    %398 = arith.mulf %387, %397 : vector<16x64xf32>
    %399 = arith.truncf %398 : vector<16x64xf32> to vector<16x64xbf16>
    %c1_176 = arith.constant 1 : index
    %c0_177 = arith.constant 0 : index
    %c0_178 = arith.constant 0 : index
    %400 = vector.load %arg19[%c1_176, %c0_177, %c0_178] : memref<2x64x32xbf16, #tpu.memory_space<vmem>>, vector<1x64x32xbf16>
    %401 = vector.shape_cast %400 : vector<1x64x32xbf16> to vector<64x32xbf16>
    %cst_179 = arith.constant dense<0.000000e+00> : vector<16x32xf32>
    %402 = tpu.matmul %399, %401, %cst_179 {dimension_numbers = #tpu.dot_dimension_numbers<[1], [0], [0], [1], [0, 0, 1, 1], [], []>} : vector<16x64xbf16>, vector<64x32xbf16>, vector<16x32xf32> -> vector<16x32xf32>
    %c1_180 = arith.constant 1 : index
    %c0_181 = arith.constant 0 : index
    %c0_182 = arith.constant 0 : index
    %403 = vector.load %arg20[%c1_180, %c0_181, %c0_182] : memref<2x1x32xf32, #tpu.memory_space<vmem>>, vector<1x1x32xf32>
    %404 = vector.shape_cast %403 : vector<1x1x32xf32> to vector<1x32xf32>
    %405 = vector.broadcast %404 : vector<1x32xf32> to vector<16x32xf32>
    %406 = arith.addf %402, %405 : vector<16x32xf32>
    %407 = arith.addf %377, %406 : vector<16x32xf32>
    %c1_183 = arith.constant 1 : index
    %c0_184 = arith.constant 0 : index
    %c0_185 = arith.constant 0 : index
    %408 = vector.load %arg25[%c1_183, %c0_184, %c0_185] : memref<2x1x32xf32, #tpu.memory_space<vmem>>, vector<1x1x32xf32>
    %409 = vector.shape_cast %408 : vector<1x1x32xf32> to vector<1x32xf32>
    %c1_186 = arith.constant 1 : index
    %c0_187 = arith.constant 0 : index
    %c0_188 = arith.constant 0 : index
    %410 = vector.load %arg26[%c1_186, %c0_187, %c0_188] : memref<2x1x32xf32, #tpu.memory_space<vmem>>, vector<1x1x32xf32>
    %411 = vector.shape_cast %410 : vector<1x1x32xf32> to vector<1x32xf32>
    %cst_189 = arith.constant dense<0.000000e+00> : vector<16xf32>
    %412 = vector.multi_reduction <add>, %407, %cst_189 [1] : vector<16x32xf32> to vector<16xf32>
    %413 = vector.shape_cast %412 : vector<16xf32> to vector<16x1xf32>
    %cst_190 = arith.constant 3.200000e+01 : f32
    %414 = vector.broadcast %cst_190 : f32 to vector<16x1xf32>
    %415 = arith.divf %413, %414 : vector<16x1xf32>
    %416 = arith.mulf %407, %407 : vector<16x32xf32>
    %cst_191 = arith.constant dense<0.000000e+00> : vector<16xf32>
    %417 = vector.multi_reduction <add>, %416, %cst_191 [1] : vector<16x32xf32> to vector<16xf32>
    %418 = vector.shape_cast %417 : vector<16xf32> to vector<16x1xf32>
    %cst_192 = arith.constant 3.200000e+01 : f32
    %419 = vector.broadcast %cst_192 : f32 to vector<16x1xf32>
    %420 = arith.divf %418, %419 : vector<16x1xf32>
    %421 = arith.mulf %415, %415 : vector<16x1xf32>
    %422 = arith.subf %420, %421 : vector<16x1xf32>
    %423 = vector.broadcast %415 : vector<16x1xf32> to vector<16x32xf32>
    %424 = arith.subf %407, %423 : vector<16x32xf32>
    %cst_193 = arith.constant 9.99999974E-6 : f32
    %425 = vector.broadcast %cst_193 : f32 to vector<16x1xf32>
    %426 = arith.addf %422, %425 : vector<16x1xf32>
    %427 = math.rsqrt %426 : vector<16x1xf32>
    %428 = vector.broadcast %427 : vector<16x1xf32> to vector<16x32xf32>
    %429 = arith.mulf %424, %428 : vector<16x32xf32>
    %430 = vector.broadcast %409 : vector<1x32xf32> to vector<16x32xf32>
    %431 = arith.mulf %429, %430 : vector<16x32xf32>
    %432 = vector.broadcast %411 : vector<1x32xf32> to vector<16x32xf32>
    %433 = arith.addf %431, %432 : vector<16x32xf32>
    %c0_194 = arith.constant 0 : index
    %c0_195 = arith.constant 0 : index
    %434 = vector.load %arg4[%c0_194, %c0_195] : memref<1x32xf32, #tpu.memory_space<vmem>>, vector<1x32xf32>
    %c0_196 = arith.constant 0 : index
    %c0_197 = arith.constant 0 : index
    %435 = vector.load %arg5[%c0_196, %c0_197] : memref<1x32xf32, #tpu.memory_space<vmem>>, vector<1x32xf32>
    %cst_198 = arith.constant dense<0.000000e+00> : vector<16xf32>
    %436 = vector.multi_reduction <add>, %433, %cst_198 [1] : vector<16x32xf32> to vector<16xf32>
    %437 = vector.shape_cast %436 : vector<16xf32> to vector<16x1xf32>
    %cst_199 = arith.constant 3.200000e+01 : f32
    %438 = vector.broadcast %cst_199 : f32 to vector<16x1xf32>
    %439 = arith.divf %437, %438 : vector<16x1xf32>
    %440 = arith.mulf %433, %433 : vector<16x32xf32>
    %cst_200 = arith.constant dense<0.000000e+00> : vector<16xf32>
    %441 = vector.multi_reduction <add>, %440, %cst_200 [1] : vector<16x32xf32> to vector<16xf32>
    %442 = vector.shape_cast %441 : vector<16xf32> to vector<16x1xf32>
    %cst_201 = arith.constant 3.200000e+01 : f32
    %443 = vector.broadcast %cst_201 : f32 to vector<16x1xf32>
    %444 = arith.divf %442, %443 : vector<16x1xf32>
    %445 = arith.mulf %439, %439 : vector<16x1xf32>
    %446 = arith.subf %444, %445 : vector<16x1xf32>
    %447 = vector.broadcast %439 : vector<16x1xf32> to vector<16x32xf32>
    %448 = arith.subf %433, %447 : vector<16x32xf32>
    %cst_202 = arith.constant 9.99999974E-6 : f32
    %449 = vector.broadcast %cst_202 : f32 to vector<16x1xf32>
    %450 = arith.addf %446, %449 : vector<16x1xf32>
    %451 = math.rsqrt %450 : vector<16x1xf32>
    %452 = vector.broadcast %451 : vector<16x1xf32> to vector<16x32xf32>
    %453 = arith.mulf %448, %452 : vector<16x32xf32>
    %454 = vector.broadcast %434 : vector<1x32xf32> to vector<16x32xf32>
    %455 = arith.mulf %453, %454 : vector<16x32xf32>
    %456 = vector.broadcast %435 : vector<1x32xf32> to vector<16x32xf32>
    %457 = arith.addf %455, %456 : vector<16x32xf32>
    %458 = arith.truncf %457 : vector<16x32xf32> to vector<16x32xbf16>
    %c0_203 = arith.constant 0 : index
    %c0_204 = arith.constant 0 : index
    %459 = vector.load %arg6[%c0_203, %c0_204] : memref<32x128xbf16, #tpu.memory_space<vmem>>, vector<32x128xbf16>
    %cst_205 = arith.constant dense<0.000000e+00> : vector<16x128xf32>
    %460 = tpu.matmul %458, %459, %cst_205 {dimension_numbers = #tpu.dot_dimension_numbers<[1], [0], [0], [1], [0, 0, 1, 1], [], []>} : vector<16x32xbf16>, vector<32x128xbf16>, vector<16x128xf32> -> vector<16x128xf32>
    %c0_206 = arith.constant 0 : index
    %c0_207 = arith.constant 0 : index
    %461 = vector.load %arg27[%c0_206, %c0_207] : memref<16x128xf32, #tpu.memory_space<vmem>>, vector<16x128xf32>
    tpu.vector_store %arg27[%c0_206, %c0_207], %460 {strides = array<i32>} : memref<16x128xf32, #tpu.memory_space<vmem>>, vector<16x128xf32>,
    return
  }
}

</mosaic_0001>

<bundles_post_ra>
// kernel: gpt_forward.1
= control target key start
LH: loop header
LB: loop body
LE: loop exit
PB: predicated region body
PF: predicated region fallthrough
CT: control target
= control target key end

     0   :  { %s6444_s0 = inlined_call_operand.vmem [shape: s32[16,1], index: 0, kind: input, shape index: {}]   ;;  %s6445_s1 = inlined_call_operand.vmem [shape: bf16[64,32], index: 1, kind: input, shape index: {}]   ;;  %s6446_s2 = inlined_call_operand.vmem [shape: f32[16,32], index: 2, kind: input, shape index: {}]   ;;  %s6447_s3 = inlined_call_operand.vmem [shape: f32[16,16], index: 3, kind: input, shape index: {}]   ;;  %s6448_s4 = inlined_call_operand.vmem [shape: f32[1,32], index: 4, kind: input, shape index: {}]   ;;  %s6449_s5 = inlined_call_operand.vmem [shape: f32[1,32], index: 5, kind: input, shape index: {}]   ;;  %s6450_s6 = inlined_call_operand.vmem [shape: bf16[32,128], index: 6, kind: input, shape index: {}]   ;;  %s6451_s7 = inlined_call_operand.vmem [shape: bf16[2,32,96], index: 7, kind: input, shape index: {}]   ;;  %s6452_s8 = inlined_call_operand.vmem [shape: f32[2,1,96], index: 8, kind: input, shape index: {}]   ;;  %s6453_s9 = inlined_call_operand.vmem [shape: bf16[2,32,32], index: 9, kind: input, shape index: {}]   ;;  %s6454_s10 = inlined_call_operand.vmem [shape: f32[2,1,32], index: 10, kind: input, shape index: {}]   ;;  %s6455_s11 = inlined_call_operand.vmem [shape: bf16[2,32,32], index: 11, kind: input, shape index: {}]   ;;  %s6456_s12 = inlined_call_operand.vmem [shape: f32[2,1,32], index: 12, kind: input, shape index: {}]   ;;  %s6457_s13 = inlined_call_operand.vmem [shape: bf16[2,32,64], index: 13, kind: input, shape index: {}]   ;;  %s6458_s14 = inlined_call_operand.vmem [shape: f32[2,1,64], index: 14, kind: input, shape index: {}]   ;;  %s6459_s15 = inlined_call_operand.vmem [shape: bf16[2,32,32], index: 15, kind: input, shape index: {}]   ;;  %s6460_s16 = inlined_call_operand.vmem [shape: f32[2,1,32], index: 16, kind: input, shape index: {}]   ;;  %s6461_s17 = inlined_call_operand.vmem [shape: bf16[2,32,64], index: 17, kind: input, shape index: {}]   ;;  %s6462_s18 = inlined_call_operand.vmem [shape: f32[2,1,64], index: 18, kind: input, shape index: {}]   ;;  %s6463_s19 = inlined_call_operand.vmem [shape: bf16[2,64,32], index: 19, kind: input, shape index: {}]   ;;  %s6464_s20 = inlined_call_operand.vmem [shape: f32[2,1,32], index: 20, kind: input, shape index: {}]   ;;  %s6465_s21 = inlined_call_operand.vmem [shape: f32[2,1,32], index: 21, kind: input, shape index: {}]   ;;  %s6466_s22 = inlined_call_operand.vmem [shape: f32[2,1,32], index: 22, kind: input, shape index: {}]   ;;  %s6467_s23 = inlined_call_operand.vmem [shape: f32[2,1,32], index: 23, kind: input, shape index: {}]   ;;  %s6468_s24 = inlined_call_operand.vmem [shape: f32[2,1,32], index: 24, kind: input, shape index: {}]   ;;  %s6469_s25 = inlined_call_operand.vmem [shape: f32[2,1,32], index: 25, kind: input, shape index: {}]   ;;  %s6470_s26 = inlined_call_operand.vmem [shape: f32[2,1,32], index: 26, kind: input, shape index: {}]   ;;  %s6471_s27 = inlined_call_operand.hbm [shape: f32[16,128], index: 27, kind: output, shape index: {}]  }
   0x1   :  { %6483 = sst [smem:[#allocation5_spill]] %s6444_s0 }
   0x2   :  { %6484 = sst [smem:[#allocation6_spill]] %s6445_s1 }
   0x3   :  { %6485 = sst [smem:[#allocation7_spill]] %s6446_s2 }
   0x4   :  { %6486 = sst [smem:[#allocation8_spill]] %s6447_s3 }
   0x5   :  { %6487 = sst [smem:[#allocation9_spill]] %s6448_s4 }
   0x6   :  { %6488 = sst [smem:[#allocation10_spill]] %s6449_s5 }
   0x7   :  { %6489 = sst [smem:[#allocation11_spill]] %s6450_s6 }
   0x8   :  { %6490 = sst [smem:[#allocation12_spill]] %s6451_s7 }
   0x9   :  { %6491 = sst [smem:[#allocation13_spill]] %s6452_s8 }
   0xa   :  { %6492 = sst [smem:[#allocation14_spill]] %s6453_s9 }
   0xb   :  { %6493 = sst [smem:[#allocation15_spill]] %s6454_s10 }
   0xc   :  { %6494 = sst [smem:[#allocation16_spill]] %s6455_s11 }
   0xd   :  { %s6495_s8 = sld [smem:[#allocation5_spill]]  ;;  %v5586_v1 = vmov 0   ;;  %v5587_v2 = vmov 0.0   ;;  %s6496_s5 = sld [smem:[#allocation6_spill]]  ;;  %vm5588_vm0 = vmmov 0  }
   0xe   :  { %5241 = vset.pattern.permute.xlu0 %v5586_v1  ;;  %4901 = vmatprep.subr.bf16.mxu0 %v5587_v2 }
   0xf   :  { %4913 = vmatprep.subr.bf16.mxu1 %v5587_v2  ;;  %4909 = vmatprep.mubr.msk.bf16.mxu0 %vm5588_vm0, %v5587_v2 }
  0x10   :  { %4917 = vmatprep.mubr.msk.bf16.mxu1 %vm5588_vm0, %v5587_v2 }
  0x13   :  { %v90_v0 = vld [vmem:[%s6495_s8] sm:$0xff]  ;;  %v91_v4 = vld [vmem:[%s6495_s8 + $0x8] sm:$0xff]  ;;  %v5360_v6 = vld [vmem:[%s6496_s5 + $0x10] sm:$0xff]  }
  0x14   :  { %v5358_v3 = vld [vmem:[%s6496_s5] sm:$0xff]   ;;  %95 = vperm.xlu0 %5241, %v90_v0   ;;  %v5359_v5 = vld [vmem:[%s6496_s5 + $0x8] sm:$0xff]   ;;  %v5361_v7 = vld [vmem:[%s6496_s5 + $0x18] sm:$0xff]  }
  0x15   :  { %4902 = vmatpush3.bf16.msra.mxu0 %v5358_v3 }
  0x16   :  { %4903 = vmatprep.subr.bf16.mxu0 %v5587_v2 }
  0x18   :  { %98 = vperm.xlu0 %5241, %v91_v4  }
  0x19   :  { %4904 = vmatpush3.bf16.msra.mxu0 %v5359_v5 }
  0x1a   :  { %4905 = vmatprep.subr.bf16.mxu0 %v5587_v2 }
  0x1d   :  { %4906 = vmatpush3.bf16.msra.mxu0 %v5360_v6 }
  0x1e   :  { %4907 = vmatprep.subr.bf16.mxu0 %v5587_v2 }
  0x21   :  { %4908 = vmatpush3.bf16.msra.mxu0 %v5361_v7 }
  0x22   :  { %4927 = vmatprep.subr.bf16.mxu0 %v5587_v2 }
  0x23   :  { %32 = vsyncpa [#allocation3], 0  ;;  %v92_v8 = vlaneseq  ;;  %vm141_vm3 = vcmask 523264   ;;  %s6497_s4 = sld [smem:[#allocation12_spill]]  ;;  %s6498_s28 = sld [smem:[#allocation7_spill]]  ;;  %vm210_vm4 = vcmask 261120  }
  0x24   :  { %s6499_s6 = sld [smem:[#allocation13_spill]]  ;;  %s5589_s11 = smov 96   ;;  %vm505_vm5 = vcmask 1043456   ;;  %vm501_vm6 = vcmask 64512   ;;  %vm691_vm7 = vcmask 130048  }
  0x25   :  { %v93_v9 = vand.u32 127, %v92_v8  ;;  %s6500_s7 = sld [smem:[#allocation8_spill]]  ;;  %s6482_s9 = smov 64  }
  0x26   :  { %s6501_s0 = sld [smem:[#allocation14_spill]]  ;;  %s6503_s3 = sld [smem:[#allocation16_spill]] }
  0x29   :  { %v5362_v15 = vld [vmem:[%s6497_s4] sm:$0xff]   ;;  %v5363_v16 = vld [vmem:[%s6497_s4 + $0x8] sm:$0xff]  }
  0x2a   :  { %4914 = vmatpush3.bf16.msra.mxu1 %v5362_v15  ;;  %v115_v17 = vld [vmem:[%s6498_s28] sm:$0xff]  ;;  %v116_v19 = vld [vmem:[%s6498_s28 + $0x8] sm:$0xff]  ;;  %s6502_s28 = sld [smem:[#allocation15_spill]] }
  0x2b   :  { %4915 = vmatprep.subr.bf16.mxu1 %v5587_v2  ;;  %v4629_v26 = vld [vmem:[%s6499_s6] ss:$0 sm:$0xff] }
  0x2c   :  { %v5831_v7 = vld [vmem:[%s6500_s7] sm:$0xff] }
  0x2e   :  { %4916 = vmatpush3.bf16.msra.mxu1 %v5363_v16 }
  0x2f   :  { %4921 = vmatprep.subr.bf16.mxu1 %v5587_v2 }
  0x93   :  { %v96_v10 = vpop.permute.xlu0 %95 }
  0x94   :  { %vm100_vm1 = vcmp.eq.s32.totalorder %v96_v10, %v93_v9  ;;  %v5836_v10 = vld [vmem:[%s6500_s7 + $0x8] sm:$0xff] }
  0x95   :  { %v4622_v12 = vsel %vm100_vm1, 1.0, %v5587_v2 }
  0x97   :  { %v99_v11 = vpop.permute.xlu0 %98 }
  0x98   :  { %vm101_vm2 = vcmp.eq.s32.totalorder %v99_v11, %v93_v9 }
  0x99   :  { %v4623_v13 = vsel %vm101_vm2, 1.0, %v5587_v2 }
  0x9a   :  { %v106_v14 = vpack.c.bf16 %v4623_v13, %v4622_v12 }
  0x9c   :  { %4910 = vmatmul.mubr.msk.bf16.vlgmr.msra.gmra.mrb[0].mxu0 %vm141_vm3, %v106_v14 }
  0x9d   :  { %4929 = vmatprep.mubr.msk.bf16.mxu0 %vm5588_vm0, %v5587_v2 }
 0x16f   :  { %v179_v18 = vpop.f32.mrb[0].mxu0 }
 0x170   :  { %v4911_v20 = vpop.f32.mrb[1].mxu0  ;;  %v5781_v22 = vadd.f32 %v179_v18, %v115_v17 }
 0x171   :  { %v182_v21 = vpop.f32.mrb[2].mxu0 }
 0x172   :  { %v5783_v23 = vadd.f32 %v182_v21, %v116_v19  ;;  %v4912_v24 = vpop.f32.mrb[3].mxu0 }
 0x174   :  { %v5787_v25 = vpack.c.bf16 %v5783_v23, %v5781_v22 }
 0x176   :  { %4918 = vmatmul.mubr.msk.bf16.vlgmr.msra.gmra.mrb[0].mxu1 %vm210_vm4, %v5787_v25 }
 0x177   :  { %4923 = vmatprep.mubr.msk.bf16.mxu1 %vm5588_vm0, %v5587_v2 }
 0x249   :  { %v248_v27 = vpop.f32.mrb[0].mxu1 }
 0x24a   :  { %v5796_v28 = vadd.f32 %v4629_v26, %v248_v27  ;;  %v4919_v29 = vpop.f32.mrb[1].mxu1 }
 0x24b   :  { %v251_v30 = vpop.f32.mrb[2].mxu1 }
 0x24c   :  { %v5798_v31 = vadd.f32 %v4629_v26, %v251_v30  ;;  %255 = vxpose.xlu0.b32.start [1/2] (short) (narrow) %v5796_v28, 32  ;;  %289 = vrot.lane.b32.xlu1 %v5796_v28, %s5589_s11  ;;  %v4920_v32 = vpop.f32.mrb[3].mxu1 }
 0x24e   :  { %v5266_v33 = vpack.i.bf16 %v5798_v31, %v5796_v28 }
 0x250   :  { %256 = vxpose.xlu0.b32.end [2/2] (short) (narrow) %v5798_v31, 32  ;;  %291 = vrot.lane.b32.xlu1 %v5798_v31, %s5589_s11 }
 0x2be   :  { %v290_v34 = vpop.permute.xlu1 %289 }
 0x2bf   :  { %295 = vxpose.xlu1.b32.start [1/2] (short) (narrow) %v290_v34, 32 }
 0x2c2   :  { %v292_v35 = vpop.permute.xlu1 %291 }
 0x2c3   :  { %296 = vxpose.xlu1.b32.end [2/2] (short) (narrow) %v292_v35, 32 }
 0x2cc   :  { %v271_v36 = vpop.trf.xlu0 }
 0x2d0   :  { %v272_v37 = vpop.trf.xlu0 }
 0x2d1   :  { %v5242_v38 = vpack.i.bf16 %v272_v37, %v271_v36 }
 0x2d3   :  { %5243 = vxpose.xlu0.b32.start.end [1/1] (short) (narrow) %v5242_v38, 16 }
 0x2d4   :  { %v273_v39 = vpop.trf.xlu0 }
 0x2d8   :  { %v274_v40 = vpop.trf.xlu0 }
 0x2d9   :  { %v5254_v41 = vpack.i.bf16 %v274_v40, %v273_v39 }
 0x2db   :  { %5255 = vxpose.xlu0.b32.start.end [1/1] (short) (narrow) %v5254_v41, 16 }
 0x33f   :  { %v311_v42 = vpop.trf.xlu1 }
 0x340   :  { %v497_v43 = vpack.c.bf16 %v311_v42, %v311_v42 }
 0x342   :  { %v507_v44 = vsel %vm505_vm5, %v497_v43, 0 }
 0x343   :  { %4922 = vmatpush3.bf16.msra.mxu1 %v507_v44  ;;  %v312_v45 = vpop.trf.xlu1 }
 0x344   :  { %v498_v46 = vpack.c.bf16 %v312_v45, %v312_v45  ;;  %4933 = vmatprep.subr.bf16.mxu1 %v5587_v2 }
 0x346   :  { %v554_v47 = vsel %vm505_vm5, %v498_v46, 0 }
 0x347   :  { %4928 = vmatpush3.bf16.msra.mxu0 %v554_v47  ;;  %v313_v48 = vpop.trf.xlu1 }
 0x348   :  { %4939 = vmatprep.subr.bf16.mxu0 %v5587_v2  ;;  %v499_v51 = vpack.c.bf16 %v313_v48, %v313_v48 }
 0x34a   :  { %v601_v60 = vsel %vm505_vm5, %v499_v51, 0 }
 0x34b   :  { %v314_v50 = vpop.trf.xlu1 }
 0x34c   :  { %v500_v52 = vpack.c.bf16 %v314_v50, %v314_v50 }
 0x34e   :  { %v648_v61 = vsel %vm505_vm5, %v500_v52, 0 }
 0x353   :  { %v5244_v49 = vpop.trf.xlu0 }
 0x354   :  { %v5248_v53 = vunpack.i.h.bf16 %v5244_v49  ;;  %v5245_v54 = vunpack.i.l.bf16 %v5244_v49 }
 0x357   :  { %v5249_v55 = vpop.trf.xlu0 }
 0x358   :  { %v5253_v56 = vunpack.i.h.bf16 %v5249_v55  ;;  %v5250_v57 = vunpack.i.l.bf16 %v5249_v55 }
 0x35a   :  { %v493_v58 = vpack.c.bf16 %v5250_v57, %v5245_v54  ;;  %v494_v59 = vpack.c.bf16 %v5253_v56, %v5248_v53 }
 0x35b   :  { %v5256_v62 = vpop.trf.xlu0 }
 0x35c   :  { %4924 = vmatmul.mubr.msk.bf16.vlgmr.msra.gmra.mrb[4].mxu1 %vm501_vm6, %v493_v58  ;;  %4930 = vmatmul.mubr.msk.bf16.vlgmr.msra.gmra.mrb[4].mxu0 %vm501_vm6, %v494_v59  ;;  %v5260_v63 = vunpack.i.h.bf16 %v5256_v62  ;;  %v5257_v0 = vunpack.i.l.bf16 %v5256_v62 }
 0x35d   :  { %4934 = vmatpush3.bf16.msra.mxu1 %v601_v60  ;;  %4940 = vmatpush3.bf16.msra.mxu0 %v648_v61 }
 0x35e   :  { %4935 = vmatprep.mubr.msk.bf16.mxu1 %vm5588_vm0, %v5587_v2  ;;  %4941 = vmatprep.mubr.msk.bf16.mxu0 %vm5588_vm0, %v5587_v2 }
 0x35f   :  { %v5261_v1 = vpop.trf.xlu0  ;;  %4945 = vmatprep.subr.bf16.mxu1 %v5587_v2  ;;  %4951 = vmatprep.subr.bf16.mxu0 %v5587_v2 }
 0x360   :  { %v5265_v3 = vunpack.i.h.bf16 %v5261_v1  ;;  %v5262_v4 = vunpack.i.l.bf16 %v5261_v1 }
 0x362   :  { %v495_v5 = vpack.c.bf16 %v5262_v4, %v5257_v0  ;;  %v496_v6 = vpack.c.bf16 %v5265_v3, %v5260_v63 }
 0x364   :  { %4936 = vmatmul.mubr.msk.bf16.vlgmr.msra.gmra.mrb[8].mxu1 %vm501_vm6, %v495_v5  ;;  %4942 = vmatmul.mubr.msk.bf16.vlgmr.msra.gmra.mrb[8].mxu0 %vm501_vm6, %v496_v6 }
 0x365   :  { %4947 = vmatprep.mubr.msk.bf16.mxu1 %vm5588_vm0, %v5587_v2  ;;  %4953 = vmatprep.mubr.msk.bf16.mxu0 %vm5588_vm0, %v5587_v2 }
 0x42f   :  { %v543_v8 = vpop.f32.mrb[4].mxu1  ;;  %v590_v9 = vpop.f32.mrb[4].mxu0 }
 0x430   :  { %v544_v11 = vadd.f32 %v543_v8, %v5831_v7  ;;  %v4925_v12 = vpop.f32.mrb[5].mxu1  ;;  %v4931_v13 = vpop.f32.mrb[5].mxu0  ;;  %v591_v16 = vadd.f32 %v590_v9, %v5831_v7 }
 0x431   :  { %v546_v14 = vpop.f32.mrb[6].mxu1  ;;  %v593_v15 = vpop.f32.mrb[6].mxu0 }
 0x432   :  { %v547_v17 = vadd.f32 %v546_v14, %v5836_v10  ;;  %v4926_v18 = vpop.f32.mrb[7].mxu1  ;;  %v4932_v19 = vpop.f32.mrb[7].mxu0  ;;  %v692_v20 = vsel %vm691_vm7, %v544_v11, -inf  ;;  %v594_v24 = vadd.f32 %v593_v15, %v5836_v10  ;;  %v698_v26 = vsel %vm691_vm7, %v591_v16, -inf }
 0x433   :  { %693 = vmax.xlane.f32.xlu1 %v692_v20 }
 0x434   :  { %v695_v21 = vsel %vm691_vm7, %v547_v17, -inf  ;;  %v701_v42 = vsel %vm691_vm7, %v594_v24, -inf }
 0x435   :  { %696 = vmax.xlane.f32.xlu0 %v695_v21 }
 0x437   :  { %v637_v27 = vpop.f32.mrb[8].mxu1  ;;  %699 = vmax.xlane.f32.xlu1 %v698_v26  ;;  %v684_v29 = vpop.f32.mrb[8].mxu0 }
 0x438   :  { %v638_v30 = vadd.f32 %v637_v27, %v5831_v7  ;;  %v685_v32 = vadd.f32 %v684_v29, %v5831_v7  ;;  %v4937_v34 = vpop.f32.mrb[9].mxu1  ;;  %v4943_v35 = vpop.f32.mrb[9].mxu0 }
 0x439   :  { %v640_v36 = vpop.f32.mrb[10].mxu1  ;;  %v687_v37 = vpop.f32.mrb[10].mxu0 }
 0x43a   :  { %v641_v38 = vadd.f32 %v640_v36, %v5836_v10  ;;  %v4938_v39 = vpop.f32.mrb[11].mxu1  ;;  %v4944_v40 = vpop.f32.mrb[11].mxu0  ;;  %v704_v41 = vsel %vm691_vm7, %v638_v30, -inf  ;;  %v710_v43 = vsel %vm691_vm7, %v685_v32, -inf  ;;  %v688_v45 = vadd.f32 %v687_v37, %v5836_v10 }
 0x43b   :  { %705 = vmax.xlane.f32.xlu0 %v704_v41  ;;  %702 = vmax.xlane.f32.xlu1 %v701_v42 }
 0x43c   :  { %v707_v44 = vsel %vm691_vm7, %v641_v38, -inf  ;;  %v713_v46 = vsel %vm691_vm7, %v688_v45, -inf }
 0x43f   :  { %711 = vmax.xlane.f32.xlu0 %v710_v43  ;;  %708 = vmax.xlane.f32.xlu1 %v707_v44 }
 0x443   :  { %714 = vmax.xlane.f32.xlu1 %v713_v46 }
 0x455   :  { %5267 = vrot.lane.b32.xlu0 %v5266_v33, %s6482_s9 }
 0x4c0   :  { %v694_v47 = vpop.xlane.xlu1 %693 }
 0x4c1   :  { %v716_v48 = vsub.f32 %v544_v11, %v694_v47 }
 0x4c2   :  { %v697_v49 = vpop.xlane.xlu0 %696 }
 0x4c3   :  { %v724_v50 = vmul.f32 1.442695, %v716_v48  ;;  %v717_v51 = vsub.f32 %v547_v17, %v697_v49 }
 0x4c4   :  { %v700_v52 = vpop.xlane.xlu1 %699 }
 0x4c5   :  { %5396 = vpow2.f32 %v724_v50  ;;  %v726_v53 = vmul.f32 1.442695, %v717_v51  ;;  %v718_v54 = vsub.f32 %v591_v16, %v700_v52 }
 0x4c7   :  { %5398 = vpow2.f32 %v726_v53  ;;  %v728_v55 = vmul.f32 1.442695, %v718_v54 }
 0x4c8   :  { %v706_v56 = vpop.xlane.xlu0 %705  ;;  %v703_v57 = vpop.xlane.xlu1 %702 }
 0x4c9   :  { %v719_v58 = vsub.f32 %v594_v24, %v703_v57  ;;  %5400 = vpow2.f32 %v728_v55  ;;  %v720_v59 = vsub.f32 %v638_v30, %v706_v56 }
 0x4cb   :  { %v730_v60 = vmul.f32 1.442695, %v719_v58  ;;  %v732_v62 = vmul.f32 1.442695, %v720_v59 }
 0x4cc   :  { %v712_v61 = vpop.xlane.xlu0 %711  ;;  %v709_v28 = vpop.xlane.xlu1 %708 }
 0x4cd   :  { %v721_v31 = vsub.f32 %v641_v38, %v709_v28  ;;  %5402 = vpow2.f32 %v730_v60  ;;  %v722_v63 = vsub.f32 %v685_v32, %v712_v61 }
 0x4cf   :  { %v5397_v33 = vpop.eup %5396  ;;  %v734_v0 = vmul.f32 1.442695, %v721_v31  ;;  %v736_v5 = vmul.f32 1.442695, %v722_v63 }
 0x4d0   :  { %v715_v1 = vpop.xlane.xlu1 %714  ;;  %v740_v3 = vsel %vm691_vm7, %v5397_v33, 0.0  ;;  %v5268_v26 = vpop.permute.xlu0 %5267 }
 0x4d1   :  { %v5399_v4 = vpop.eup %5398  ;;  %741 = vadd.xlane.f32.xlu1 %v740_v3  ;;  %5404 = vpow2.f32 %v734_v0  ;;  %v723_v6 = vsub.f32 %v688_v45, %v715_v1  ;;  %v5269_v27 = vunpack.i.l.bf16 %v5268_v26  ;;  %v5270_v29 = vunpack.i.h.bf16 %v5268_v26 }
 0x4d2   :  { %5406 = vpow2.f32 %v732_v62  ;;  %v743_v8 = vsel %vm691_vm7, %v5399_v4, 0.0 }
 0x4d3   :  { %v5401_v9 = vpop.eup %5400  ;;  %5408 = vpow2.f32 %v736_v5  ;;  %v738_v11 = vmul.f32 1.442695, %v723_v6  ;;  %v5364_v6 = vld [vmem:[%s6501_s0] sm:$0xff]  }
 0x4d4   :  { %v746_v12 = vsel %vm691_vm7, %v5401_v9, 0.0 }
 0x4d5   :  { %744 = vadd.xlane.f32.xlu1 %v743_v8  ;;  %5410 = vpow2.f32 %v738_v11  ;;  %v5365_v11 = vld [vmem:[%s6501_s0 + $0x8] sm:$0xff]  }
 0x4d7   :  { %v5403_v13 = vpop.eup %5402 }
 0x4d8   :  { %v749_v15 = vsel %vm691_vm7, %v5403_v13, 0.0 }
 0x4d9   :  { %747 = vadd.xlane.f32.xlu1 %v746_v12 }
 0x4db   :  { %v5405_v14 = vpop.eup %5404 }
 0x4dc   :  { %v5407_v16 = vpop.eup %5406  ;;  %v755_v17 = vsel %vm691_vm7, %v5405_v14, 0.0 }
 0x4dd   :  { %750 = vadd.xlane.f32.xlu1 %v749_v15  ;;  %756 = vadd.xlane.f32.xlu0 %v755_v17  ;;  %v752_v18 = vsel %vm691_vm7, %v5407_v16, 0.0  ;;  %v5409_v19 = vpop.eup %5408 }
 0x4de   :  { %v758_v20 = vsel %vm691_vm7, %v5409_v19, 0.0 }
 0x4df   :  { %v5411_v21 = vpop.eup %5410 }
 0x4e0   :  { %v761_v24 = vsel %vm691_vm7, %v5411_v21, 0.0 }
 0x4e1   :  { %753 = vadd.xlane.f32.xlu1 %v752_v18 }
 0x4e5   :  { %759 = vadd.xlane.f32.xlu1 %v758_v20 }
 0x4e9   :  { %762 = vadd.xlane.f32.xlu1 %v761_v24 }
 0x51c   :  { %333 = vxpose.xlu1.b32.start [1/2] (short) (narrow) %v5269_v27, 32 }
 0x520   :  { %334 = vxpose.xlu1.b32.end [2/2] (short) (narrow) %v5270_v29, 32 }
 0x55e   :  { %v742_v30 = vpop.xlane.xlu1 %741 }
 0x55f   :  { %5412 = vrcp.f32 %v742_v30 }
 0x562   :  { %v745_v32 = vpop.xlane.xlu1 %744 }
 0x563   :  { %5414 = vrcp.f32 %v745_v32 }
 0x566   :  { %v748_v34 = vpop.xlane.xlu1 %747 }
 0x567   :  { %5416 = vrcp.f32 %v748_v34  ;;  %v5366_v34 = vld [vmem:[%s6457_s13] sm:$0xff]  }
 0x569   :  { %v5413_v36 = vpop.eup %5412 }
 0x56a   :  { %v751_v35 = vpop.xlane.xlu1 %750  ;;  %v772_v38 = vmul.f32 %v5413_v36, %v5397_v33  ;;  %v757_v50 = vpop.xlane.xlu0 %756  ;;  %v5367_v36 = vld [vmem:[%s6457_s13 + $0x8] sm:$0xff]  }
 0x56b   :  { %5418 = vrcp.f32 %v751_v35 }
 0x56d   :  { %v5415_v37 = vpop.eup %5414 }
 0x56e   :  { %v773_v39 = vmul.f32 %v5415_v37, %v5399_v4  ;;  %v754_v48 = vpop.xlane.xlu1 %753  ;;  %v4641_v37 = vld [vmem:[%s6502_s28] ss:$0 sm:$0xff] }
 0x56f   :  { %5420 = vrcp.f32 %v754_v48  ;;  %v4651_v48 = vld [vmem:[%s6458_s14] ss:$0 sm:$0xff] }
 0x570   :  { %v784_v40 = vpack.c.bf16 %v773_v39, %v772_v38  ;;  %5422 = vrcp.f32 %v757_v50 }
 0x571   :  { %v5417_v42 = vpop.eup %5416 }
 0x572   :  { %v792_v41 = vsel %vm691_vm7, %v784_v40, 0  ;;  %v774_v44 = vmul.f32 %v5417_v42, %v5401_v9  ;;  %v760_v49 = vpop.xlane.xlu1 %759 }
 0x573   :  { %4946 = vmatpush3.bf16.xpose.msra.mxu1 %v792_v41 }
 0x574   :  { %4957 = vmatprep.subr.bf16.mxu1 %v5587_v2 }
 0x575   :  { %v5419_v43 = vpop.eup %5418 }
 0x576   :  { %v775_v45 = vmul.f32 %v5419_v43, %v5403_v13  ;;  %v763_v51 = vpop.xlane.xlu1 %762 }
 0x577   :  { %5424 = vrcp.f32 %v763_v51 }
 0x578   :  { %v785_v46 = vpack.c.bf16 %v775_v45, %v774_v44  ;;  %5426 = vrcp.f32 %v760_v49 }
 0x579   :  { %v5421_v52 = vpop.eup %5420 }
 0x57a   :  { %v838_v47 = vsel %vm691_vm7, %v785_v46, 0  ;;  %v5423_v53 = vpop.eup %5422  ;;  %v776_v54 = vmul.f32 %v5421_v52, %v5407_v16 }
 0x57b   :  { %4952 = vmatpush3.bf16.xpose.msra.mxu0 %v838_v47  ;;  %v777_v56 = vmul.f32 %v5423_v53, %v5405_v14 }
 0x57c   :  { %4963 = vmatprep.subr.bf16.mxu0 %v5587_v2 }
 0x57d   :  { %v786_v58 = vpack.c.bf16 %v777_v56, %v776_v54 }
 0x57f   :  { %v884_v31 = vsel %vm691_vm7, %v786_v58, 0  ;;  %v5369_v58 = vld [vmem:[%s6503_s3 + $0x8] sm:$0xff]  }
 0x581   :  { %v5425_v55 = vpop.eup %5424 }
 0x582   :  { %v5427_v57 = vpop.eup %5426  ;;  %v779_v59 = vmul.f32 %v5425_v55, %v5411_v21 }
 0x583   :  { %v778_v28 = vmul.f32 %v5427_v57, %v5409_v19  ;;  %v5368_v57 = vld [vmem:[%s6503_s3] sm:$0xff]  }
 0x585   :  { %v787_v33 = vpack.c.bf16 %v779_v59, %v778_v28 }
 0x587   :  { %v930_v0 = vsel %vm691_vm7, %v787_v33, 0 }
 0x59c   :  { %v349_v60 = vpop.trf.xlu1 }
 0x59d   :  { %v780_v61 = vpack.c.bf16 %v349_v60, %v349_v60 }
 0x59f   :  { %4948 = vmatmul.mubr.msk.bf16.vlgmr.msra.gmra.mrb[12].mxu1 %vm691_vm7, %v780_v61 }
 0x5a0   :  { %4958 = vmatpush3.bf16.xpose.msra.mxu1 %v884_v31  ;;  %v350_v62 = vpop.trf.xlu1  ;;  %4959 = vmatprep.mubr.msk.bf16.mxu1 %vm5588_vm0, %v5587_v2 }
 0x5a1   :  { %v781_v63 = vpack.c.bf16 %v350_v62, %v350_v62  ;;  %4969 = vmatprep.subr.bf16.mxu1 %v5587_v2 }
 0x5a3   :  { %4954 = vmatmul.mubr.msk.bf16.vlgmr.msra.gmra.mrb[12].mxu0 %vm691_vm7, %v781_v63 }
 0x5a4   :  { %4964 = vmatpush3.bf16.xpose.msra.mxu0 %v930_v0  ;;  %v351_v1 = vpop.trf.xlu1  ;;  %4965 = vmatprep.mubr.msk.bf16.mxu0 %vm5588_vm0, %v5587_v2 }
 0x5a5   :  { %v782_v3 = vpack.c.bf16 %v351_v1, %v351_v1  ;;  %4977 = vmatprep.subr.bf16.mxu0 %v5587_v2 }
 0x5a7   :  { %4960 = vmatmul.mubr.msk.bf16.vlgmr.msra.gmra.mrb[16].mxu1 %vm691_vm7, %v782_v3 }
 0x5a8   :  { %v352_v4 = vpop.trf.xlu1  ;;  %4973 = vmatprep.mubr.msk.bf16.mxu1 %vm5588_vm0, %v5587_v2  ;;  %4970 = vmatpush3.bf16.msra.mxu1 %v5364_v6 }
 0x5a9   :  { %v783_v5 = vpack.c.bf16 %v352_v4, %v352_v4  ;;  %4971 = vmatprep.subr.bf16.mxu1 %v5587_v2 }
 0x5ab   :  { %4966 = vmatmul.mubr.msk.bf16.vlgmr.msra.gmra.mrb[16].mxu0 %vm691_vm7, %v783_v5 }
 0x5ac   :  { %4981 = vmatprep.mubr.msk.bf16.mxu0 %vm5588_vm0, %v5587_v2  ;;  %4972 = vmatpush3.bf16.msra.mxu1 %v5365_v11 }
 0x5ad   :  { %4985 = vmatprep.subr.bf16.mxu1 %v5587_v2  ;;  %4978 = vmatpush3.bf16.msra.mxu0 %v5368_v57 }
 0x5ae   :  { %4979 = vmatprep.subr.bf16.mxu0 %v5587_v2 }
 0x5b1   :  { %4980 = vmatpush3.bf16.msra.mxu0 %v5369_v58 }
 0x5b2   :  { %4993 = vmatprep.subr.bf16.mxu0 %v5587_v2 }
 0x672   :  { %v828_v8 = vpop.f32.mrb[12].mxu1 }
 0x673   :  { %972 = vxpose.xlu0.b32.start [1/4] (short) (narrow) %v828_v8, 16  ;;  %v4949_v9 = vpop.f32.mrb[13].mxu1 }
 0x674   :  { %v831_v12 = vpop.f32.mrb[14].mxu1 }
 0x675   :  { %v4950_v13 = vpop.f32.mrb[15].mxu1  ;;  %v4645_v12 = vld [vmem:[%s6465_s21] ss:$0 sm:$0xff] }
 0x676   :  { %v874_v14 = vpop.f32.mrb[12].mxu0 }
 0x677   :  { %973 = vxpose.xlu0.b32.cont [2/4] (short) (narrow) %v874_v14, 16  ;;  %v4955_v15 = vpop.f32.mrb[13].mxu0 }
 0x678   :  { %v877_v16 = vpop.f32.mrb[14].mxu0 }
 0x679   :  { %v4956_v17 = vpop.f32.mrb[15].mxu0 }
 0x67a   :  { %v920_v18 = vpop.f32.mrb[16].mxu1  ;;  %v4646_v17 = vld [vmem:[%s6466_s22] ss:$0 sm:$0xff] }
 0x67b   :  { %974 = vxpose.xlu0.b32.cont [3/4] (short) (narrow) %v920_v18, 16  ;;  %v4961_v19 = vpop.f32.mrb[17].mxu1 }
 0x67c   :  { %v923_v20 = vpop.f32.mrb[18].mxu1 }
 0x67d   :  { %v4962_v21 = vpop.f32.mrb[19].mxu1 }
 0x67e   :  { %v966_v24 = vpop.f32.mrb[16].mxu0 }
 0x67f   :  { %975 = vxpose.xlu0.b32.end [4/4] (short) (narrow) %v966_v24, 16  ;;  %v4967_v26 = vpop.f32.mrb[17].mxu0  ;;  %v4647_v24 = vld [vmem:[%s6456_s12] ss:$0 sm:$0xff] }
 0x680   :  { %v969_v27 = vpop.f32.mrb[18].mxu0 }
 0x681   :  { %v4968_v29 = vpop.f32.mrb[19].mxu0 }
 0x6f3   :  { %v988_v30 = vpop.trf.xlu0 }
 0x6f7   :  { %v989_v32 = vpop.trf.xlu0 }
 0x6f8   :  { %v1004_v35 = vpack.c.bf16 %v989_v32, %v988_v30 }
 0x6fa   :  { %4974 = vmatmul.mubr.msk.bf16.vlgmr.msra.gmra.mrb[20].mxu1 %vm210_vm4, %v1004_v35 }
 0x6fb   :  { %4986 = vmatpush3.bf16.msra.mxu1 %v5366_v34  ;;  %4989 = vmatprep.mubr.msk.bf16.mxu1 %vm5588_vm0, %v5587_v2 }
 0x6fc   :  { %4987 = vmatprep.subr.bf16.mxu1 %v5587_v2 }
 0x6ff   :  { %4988 = vmatpush3.bf16.msra.mxu1 %v5367_v36 }
 0x700   :  { %4999 = vmatprep.subr.bf16.mxu1 %v5587_v2 }
 0x702   :  { %4990 = vmatmul.mubr.msk.bf16.vlgmr.msra.gmra.mrb[24].mxu1 %vm210_vm4, %v5787_v25 }
 0x703   :  { %5001 = vmatprep.mubr.msk.bf16.mxu1 %vm5588_vm0, %v5587_v2 }
 0x7cd   :  { %v1065_v38 = vpop.f32.mrb[20].mxu1 }
 0x7ce   :  { %v1066_v39 = vadd.f32 %v4641_v37, %v1065_v38  ;;  %v4975_v40 = vpop.f32.mrb[21].mxu1 }
 0x7cf   :  { %v1068_v41 = vpop.f32.mrb[22].mxu1 }
 0x7d0   :  { %v1072_v42 = vadd.f32 %v1066_v39, %v5781_v22  ;;  %v1069_v43 = vadd.f32 %v4641_v37, %v1068_v41  ;;  %v4976_v44 = vpop.f32.mrb[23].mxu1 }
 0x7d2   :  { %v1073_v45 = vadd.f32 %v1069_v43, %v5783_v23  ;;  %v1076_v46 = vsel %vm210_vm4, %v1072_v42, 0.0  ;;  %v1085_v25 = vmul.f32 %v1072_v42, %v1072_v42 }
 0x7d3   :  { %1077 = vadd.xlane.f32.xlu1 %v1076_v46 }
 0x7d4   :  { %v1079_v47 = vsel %vm210_vm4, %v1073_v45, 0.0  ;;  %v1087_v51 = vsel %vm210_vm4, %v1085_v25, 0.0  ;;  %v1086_v22 = vmul.f32 %v1073_v45, %v1073_v45 }
 0x7d5   :  { %1080 = vadd.xlane.f32.xlu0 %v1079_v47  ;;  %v1248_v49 = vpop.f32.mrb[24].mxu1 }
 0x7d6   :  { %v4991_v50 = vpop.f32.mrb[25].mxu1  ;;  %v5920_v53 = vadd.f32 %v4651_v48, %v1248_v49  ;;  %v1090_v56 = vsel %vm210_vm4, %v1086_v22, 0.0 }
 0x7d7   :  { %1088 = vadd.xlane.f32.xlu1 %v1087_v51  ;;  %v1251_v52 = vpop.f32.mrb[26].mxu1 }
 0x7d8   :  { %v5922_v23 = vadd.f32 %v4651_v48, %v1251_v52  ;;  %v4992_v54 = vpop.f32.mrb[27].mxu1 }
 0x7da   :  { %v5295_v55 = vpack.i.bf16 %v5922_v23, %v5920_v53 }
 0x7db   :  { %1091 = vadd.xlane.f32.xlu1 %v1090_v56 }
 0x802   :  { %1287 = vxpose.xlu0.b32.start [1/2] (short) (narrow) %v5920_v53, 32 }
 0x806   :  { %1288 = vxpose.xlu0.b32.end [2/2] (short) (narrow) %v5922_v23, 32 }
 0x860   :  { %v1078_v59 = vpop.xlane.xlu1 %1077 }
 0x861   :  { %v1083_v60 = vmul.f32 0.03125, %v1078_v59 }
 0x862   :  { %v1081_v61 = vpop.xlane.xlu0 %1080 }
 0x863   :  { %v1095_v31 = vmul.f32 %v1083_v60, %v1083_v60  ;;  %v1084_v33 = vmul.f32 0.03125, %v1081_v61  ;;  %v1099_v8 = vsub.f32 %v1072_v42, %v1083_v60 }
 0x864   :  { %v1089_v28 = vpop.xlane.xlu1 %1088 }
 0x865   :  { %v1093_v62 = vmul.f32 0.03125, %v1089_v28  ;;  %v1096_v1 = vmul.f32 %v1084_v33, %v1084_v33  ;;  %v1100_v13 = vsub.f32 %v1073_v45, %v1084_v33 }
 0x867   :  { %v1097_v63 = vsub.f32 %v1093_v62, %v1095_v31 }
 0x868   :  { %v1092_v0 = vpop.xlane.xlu1 %1091 }
 0x869   :  { %v1101_v3 = vadd.f32 1e-05, %v1097_v63  ;;  %v1094_v4 = vmul.f32 0.03125, %v1092_v0 }
 0x86b   :  { %5428 = vrsqrt.f32 %v1101_v3  ;;  %v1098_v5 = vsub.f32 %v1094_v4, %v1096_v1 }
 0x86d   :  { %v1102_v6 = vadd.f32 1e-05, %v1098_v5 }
 0x86f   :  { %5430 = vrsqrt.f32 %v1102_v6 }
 0x875   :  { %v5429_v9 = vpop.eup %5428 }
 0x876   :  { %v1105_v11 = vmul.f32 %v5429_v9, %v1099_v8 }
 0x878   :  { %v1113_v16 = vmul.f32 %v4645_v12, %v1105_v11 }
 0x879   :  { %v5431_v14 = vpop.eup %5430 }
 0x87a   :  { %v1106_v15 = vmul.f32 %v5431_v14, %v1100_v13  ;;  %v5943_v19 = vadd.f32 %v4646_v17, %v1113_v16 }
 0x87c   :  { %v1114_v18 = vmul.f32 %v4645_v12, %v1106_v15 }
 0x87e   :  { %v5945_v20 = vadd.f32 %v4646_v17, %v1114_v18 }
 0x880   :  { %v1123_v21 = vpack.c.bf16 %v5945_v20, %v5943_v19 }
 0x882   :  { %4982 = vmatmul.mubr.msk.bf16.vlgmr.msra.gmra.mrb[20].mxu0 %vm210_vm4, %v1123_v21  ;;  %v1303_v35 = vpop.trf.xlu0 }
 0x883   :  { %4995 = vmatprep.mubr.msk.bf16.mxu0 %vm5588_vm0, %v5587_v2  ;;  %v1491_v36 = vpack.c.bf16 %v1303_v35, %v1303_v35 }
 0x885   :  { %v1499_v37 = vsel %vm505_vm5, %v1491_v36, 0 }
 0x886   :  { %v1304_v38 = vpop.trf.xlu0  ;;  %4994 = vmatpush3.bf16.msra.mxu0 %v1499_v37 }
 0x887   :  { %v1492_v39 = vpack.c.bf16 %v1304_v38, %v1304_v38  ;;  %5005 = vmatprep.subr.bf16.mxu0 %v5587_v2 }
 0x889   :  { %v1546_v40 = vsel %vm505_vm5, %v1492_v39, 0 }
 0x88a   :  { %5000 = vmatpush3.bf16.msra.mxu1 %v1546_v40  ;;  %v1305_v25 = vpop.trf.xlu0 }
 0x88b   :  { %5011 = vmatprep.subr.bf16.mxu1 %v5587_v2  ;;  %v1493_v49 = vpack.c.bf16 %v1305_v25, %v1305_v25 }
 0x88d   :  { %v1593_v57 = vsel %vm505_vm5, %v1493_v49, 0 }
 0x88e   :  { %v1306_v48 = vpop.trf.xlu0 }
 0x88f   :  { %v1494_v50 = vpack.c.bf16 %v1306_v48, %v1306_v48 }
 0x891   :  { %v1640_v58 = vsel %vm505_vm5, %v1494_v50, 0 }
 0x955   :  { %v1184_v26 = vpop.f32.mrb[20].mxu0 }
 0x956   :  { %v1185_v27 = vadd.f32 %v4647_v24, %v1184_v26  ;;  %v4983_v29 = vpop.f32.mrb[21].mxu0 }
 0x957   :  { %v1187_v30 = vpop.f32.mrb[22].mxu0 }
 0x958   :  { %1255 = vxpose.xlu1.b32.start [1/2] (short) (narrow) %v1185_v27, 32  ;;  %v4984_v32 = vpop.f32.mrb[23].mxu0  ;;  %v1188_v34 = vadd.f32 %v4647_v24, %v1187_v30 }
 0x95c   :  { %1256 = vxpose.xlu1.b32.end [2/2] (short) (narrow) %v1188_v34, 32 }
 0x9d8   :  { %v1271_v41 = vpop.trf.xlu1 }
 0x9dc   :  { %v1272_v42 = vpop.trf.xlu1 }
 0x9dd   :  { %v5271_v43 = vpack.i.bf16 %v1272_v42, %v1271_v41 }
 0x9df   :  { %5272 = vxpose.xlu1.b32.start.end [1/1] (short) (narrow) %v5271_v43, 16 }
 0x9e0   :  { %v1273_v44 = vpop.trf.xlu1 }
 0x9e4   :  { %v1274_v45 = vpop.trf.xlu1 }
 0x9e5   :  { %v5283_v46 = vpack.i.bf16 %v1274_v45, %v1273_v44 }
 0x9e7   :  { %5284 = vxpose.xlu0.b32.start.end [1/1] (short) (narrow) %v5283_v46, 16 }
 0xa5f   :  { %v5273_v47 = vpop.trf.xlu1 }
 0xa60   :  { %v5277_v51 = vunpack.i.h.bf16 %v5273_v47  ;;  %v5274_v22 = vunpack.i.l.bf16 %v5273_v47 }
 0xa63   :  { %v5278_v52 = vpop.trf.xlu1 }
 0xa64   :  { %v5282_v54 = vunpack.i.h.bf16 %v5278_v52  ;;  %v5279_v56 = vunpack.i.l.bf16 %v5278_v52 }
 0xa66   :  { %v1487_v59 = vpack.c.bf16 %v5279_v56, %v5274_v22  ;;  %v1488_v60 = vpack.c.bf16 %v5282_v54, %v5277_v51 }
 0xa67   :  { %v5285_v61 = vpop.trf.xlu0 }
 0xa68   :  { %4996 = vmatmul.mubr.msk.bf16.vlgmr.msra.gmra.mrb[24].mxu0 %vm501_vm6, %v1487_v59  ;;  %5002 = vmatmul.mubr.msk.bf16.vlgmr.msra.gmra.mrb[28].mxu1 %vm501_vm6, %v1488_v60  ;;  %v5289_v28 = vunpack.i.h.bf16 %v5285_v61  ;;  %v5286_v31 = vunpack.i.l.bf16 %v5285_v61 }
 0xa69   :  { %5006 = vmatpush3.bf16.msra.mxu0 %v1593_v57  ;;  %5012 = vmatpush3.bf16.msra.mxu1 %v1640_v58 }
 0xa6a   :  { %5013 = vmatprep.mubr.msk.bf16.mxu1 %vm5588_vm0, %v5587_v2  ;;  %5007 = vmatprep.mubr.msk.bf16.mxu0 %vm5588_vm0, %v5587_v2 }
 0xa6b   :  { %v5290_v33 = vpop.trf.xlu0  ;;  %5017 = vmatprep.subr.bf16.mxu0 %v5587_v2  ;;  %5023 = vmatprep.subr.bf16.mxu1 %v5587_v2 }
 0xa6c   :  { %v5294_v62 = vunpack.i.h.bf16 %v5290_v33  ;;  %v5291_v63 = vunpack.i.l.bf16 %v5290_v33 }
 0xa6e   :  { %v1489_v0 = vpack.c.bf16 %v5291_v63, %v5286_v31  ;;  %v1490_v1 = vpack.c.bf16 %v5294_v62, %v5289_v28 }
 0xa70   :  { %5014 = vmatmul.mubr.msk.bf16.vlgmr.msra.gmra.mrb[32].mxu1 %vm501_vm6, %v1490_v1  ;;  %5008 = vmatmul.mubr.msk.bf16.vlgmr.msra.gmra.mrb[28].mxu0 %vm501_vm6, %v1489_v0 }
 0xa71   :  { %5019 = vmatprep.mubr.msk.bf16.mxu0 %vm5588_vm0, %v5587_v2  ;;  %5025 = vmatprep.mubr.msk.bf16.mxu1 %vm5588_vm0, %v5587_v2 }
 0xb3b   :  { %v1535_v3 = vpop.f32.mrb[24].mxu0  ;;  %v1582_v4 = vpop.f32.mrb[28].mxu1 }
 0xb3c   :  { %v1536_v5 = vadd.f32 %v1535_v3, %v5831_v7  ;;  %v4997_v6 = vpop.f32.mrb[25].mxu0  ;;  %v5003_v8 = vpop.f32.mrb[29].mxu1  ;;  %v1583_v12 = vadd.f32 %v1582_v4, %v5831_v7 }
 0xb3d   :  { %v1538_v9 = vpop.f32.mrb[26].mxu0  ;;  %v1585_v11 = vpop.f32.mrb[30].mxu1 }
 0xb3e   :  { %v1539_v13 = vadd.f32 %v1538_v9, %v5836_v10  ;;  %v4998_v14 = vpop.f32.mrb[27].mxu0  ;;  %v5004_v15 = vpop.f32.mrb[31].mxu1  ;;  %v1683_v16 = vsel %vm691_vm7, %v1536_v5, -inf  ;;  %v1586_v18 = vadd.f32 %v1585_v11, %v5836_v10  ;;  %v1689_v21 = vsel %vm691_vm7, %v1583_v12, -inf }
 0xb3f   :  { %1684 = vmax.xlane.f32.xlu1 %v1683_v16 }
 0xb40   :  { %v1686_v17 = vsel %vm691_vm7, %v1539_v13, -inf  ;;  %v1692_v37 = vsel %vm691_vm7, %v1586_v18, -inf }
 0xb41   :  { %1687 = vmax.xlane.f32.xlu0 %v1686_v17 }
 0xb43   :  { %v1676_v24 = vpop.f32.mrb[32].mxu1  ;;  %1690 = vmax.xlane.f32.xlu1 %v1689_v21  ;;  %v1629_v26 = vpop.f32.mrb[28].mxu0 }
 0xb44   :  { %v1677_v27 = vadd.f32 %v1676_v24, %v5831_v7  ;;  %v1630_v29 = vadd.f32 %v1629_v26, %v5831_v7  ;;  %v5009_v30 = vpop.f32.mrb[29].mxu0  ;;  %v5015_v32 = vpop.f32.mrb[33].mxu1 }
 0xb45   :  { %v1632_v34 = vpop.f32.mrb[30].mxu0  ;;  %v1679_v35 = vpop.f32.mrb[34].mxu1 }
 0xb46   :  { %v5016_v36 = vpop.f32.mrb[35].mxu1  ;;  %v1701_v38 = vsel %vm691_vm7, %v1677_v27, -inf  ;;  %v5010_v39 = vpop.f32.mrb[31].mxu0  ;;  %v1695_v40 = vsel %vm691_vm7, %v1630_v29, -inf  ;;  %v1633_v41 = vadd.f32 %v1632_v34, %v5836_v10  ;;  %v1680_v42 = vadd.f32 %v1679_v35, %v5836_v10 }
 0xb47   :  { %1693 = vmax.xlane.f32.xlu1 %v1692_v37  ;;  %1702 = vmax.xlane.f32.xlu0 %v1701_v38 }
 0xb48   :  { %v1698_v7 = vsel %vm691_vm7, %v1633_v41, -inf  ;;  %v1704_v43 = vsel %vm691_vm7, %v1680_v42, -inf }
 0xb4b   :  { %1696 = vmax.xlane.f32.xlu1 %v1695_v40 }
 0xb4f   :  { %1699 = vmax.xlane.f32.xlu1 %v1698_v7 }
 0xb53   :  { %1705 = vmax.xlane.f32.xlu1 %v1704_v43 }
 0xb5d   :  { %5296 = vrot.lane.b32.xlu0 %v5295_v55, %s5589_s11 }
 0xbcc   :  { %v1685_v44 = vpop.xlane.xlu1 %1684 }
 0xbcd   :  { %v1707_v45 = vsub.f32 %v1536_v5, %v1685_v44 }
 0xbce   :  { %v1688_v46 = vpop.xlane.xlu0 %1687 }
 0xbcf   :  { %v1715_v25 = vmul.f32 1.442695, %v1707_v45  ;;  %v1708_v47 = vsub.f32 %v1539_v13, %v1688_v46 }
 0xbd0   :  { %v1691_v48 = vpop.xlane.xlu1 %1690 }
 0xbd1   :  { %5432 = vpow2.f32 %v1715_v25  ;;  %v1717_v49 = vmul.f32 1.442695, %v1708_v47  ;;  %v1709_v10 = vsub.f32 %v1583_v12, %v1691_v48 }
 0xbd3   :  { %5434 = vpow2.f32 %v1717_v49  ;;  %v1719_v50 = vmul.f32 1.442695, %v1709_v10 }
 0xbd4   :  { %v1694_v51 = vpop.xlane.xlu1 %1693  ;;  %v1703_v54 = vpop.xlane.xlu0 %1702 }
 0xbd5   :  { %v1710_v22 = vsub.f32 %v1586_v18, %v1694_v51  ;;  %5436 = vpow2.f32 %v1719_v50  ;;  %v1713_v23 = vsub.f32 %v1677_v27, %v1703_v54 }
 0xbd7   :  { %v1721_v52 = vmul.f32 1.442695, %v1710_v22  ;;  %v1727_v28 = vmul.f32 1.442695, %v1713_v23 }
 0xbd8   :  { %v1697_v56 = vpop.xlane.xlu1 %1696  ;;  %v5297_v16 = vpop.permute.xlu0 %5296 }
 0xbd9   :  { %v1711_v57 = vsub.f32 %v1630_v29, %v1697_v56  ;;  %5438 = vpow2.f32 %v1721_v52  ;;  %v5298_v17 = vunpack.i.l.bf16 %v5297_v16  ;;  %v5299_v18 = vunpack.i.h.bf16 %v5297_v16 }
 0xbdb   :  { %v5433_v53 = vpop.eup %5432  ;;  %v1723_v55 = vmul.f32 1.442695, %v1711_v57 }
 0xbdc   :  { %v1700_v58 = vpop.xlane.xlu1 %1699  ;;  %v1731_v59 = vsel %vm691_vm7, %v5433_v53, 0.0 }
 0xbdd   :  { %v5435_v60 = vpop.eup %5434  ;;  %v1712_v61 = vsub.f32 %v1633_v41, %v1700_v58  ;;  %1732 = vadd.xlane.f32.xlu1 %v1731_v59  ;;  %5440 = vpow2.f32 %v1723_v55 }
 0xbde   :  { %v1734_v62 = vsel %vm691_vm7, %v5435_v60, 0.0 }
 0xbdf   :  { %v1725_v31 = vmul.f32 1.442695, %v1712_v61  ;;  %v5437_v63 = vpop.eup %5436 }
 0xbe0   :  { %v1706_v33 = vpop.xlane.xlu1 %1705  ;;  %v1737_v3 = vsel %vm691_vm7, %v5437_v63, 0.0 }
 0xbe1   :  { %5442 = vpow2.f32 %v1725_v31  ;;  %v1714_v0 = vsub.f32 %v1680_v42, %v1706_v33  ;;  %1735 = vadd.xlane.f32.xlu1 %v1734_v62  ;;  %v5371_v62 = vld [vmem:[%s6459_s15 + $0x8] sm:$0xff]  }
 0xbe2   :  { %5444 = vpow2.f32 %v1727_v28  ;;  %v5370_v28 = vld [vmem:[%s6459_s15] sm:$0xff]  }
 0xbe3   :  { %v1729_v1 = vmul.f32 1.442695, %v1714_v0  ;;  %v5439_v4 = vpop.eup %5438 }
 0xbe4   :  { %v1740_v5 = vsel %vm691_vm7, %v5439_v4, 0.0 }
 0xbe5   :  { %1738 = vadd.xlane.f32.xlu1 %v1737_v3  ;;  %5446 = vpow2.f32 %v1729_v1 }
 0xbe7   :  { %v5441_v6 = vpop.eup %5440 }
 0xbe8   :  { %v1743_v9 = vsel %vm691_vm7, %v5441_v6, 0.0 }
 0xbe9   :  { %1741 = vadd.xlane.f32.xlu1 %v1740_v5 }
 0xbeb   :  { %v5443_v8 = vpop.eup %5442 }
 0xbec   :  { %v1746_v11 = vsel %vm691_vm7, %v5443_v8, 0.0  ;;  %v5445_v12 = vpop.eup %5444 }
 0xbed   :  { %1744 = vadd.xlane.f32.xlu1 %v1743_v9  ;;  %1747 = vadd.xlane.f32.xlu0 %v1746_v11  ;;  %v1749_v13 = vsel %vm691_vm7, %v5445_v12, 0.0 }
 0xbef   :  { %v5447_v14 = vpop.eup %5446 }
 0xbf0   :  { %v1752_v15 = vsel %vm691_vm7, %v5447_v14, 0.0 }
 0xbf1   :  { %1750 = vadd.xlane.f32.xlu1 %v1749_v13 }
 0xbf5   :  { %1753 = vadd.xlane.f32.xlu1 %v1752_v15 }
 0xc28   :  { %1327 = vxpose.xlu1.b32.start [1/2] (short) (narrow) %v5298_v17, 32 }
 0xc2c   :  { %1328 = vxpose.xlu1.b32.end [2/2] (short) (narrow) %v5299_v18, 32 }
 0xc6a   :  { %v1733_v21 = vpop.xlane.xlu1 %1732 }
 0xc6b   :  { %5448 = vrcp.f32 %v1733_v21  ;;  %v4663_v21 = vld [vmem:[%s6460_s16] ss:$0 sm:$0xff] }
 0xc6e   :  { %v1736_v24 = vpop.xlane.xlu1 %1735 }
 0xc6f   :  { %5450 = vrcp.f32 %v1736_v24 }
 0xc72   :  { %v1739_v26 = vpop.xlane.xlu1 %1738 }
 0xc73   :  { %5452 = vrcp.f32 %v1739_v26 }
 0xc75   :  { %v5449_v29 = vpop.eup %5448 }
 0xc76   :  { %v1742_v27 = vpop.xlane.xlu1 %1741  ;;  %v1763_v32 = vmul.f32 %v5449_v29, %v5433_v53 }
 0xc77   :  { %5454 = vrcp.f32 %v1742_v27 }
 0xc79   :  { %v5451_v30 = vpop.eup %5450 }
 0xc7a   :  { %v1764_v34 = vmul.f32 %v5451_v30, %v5435_v60  ;;  %v1745_v7 = vpop.xlane.xlu1 %1744  ;;  %v1748_v44 = vpop.xlane.xlu0 %1747 }
 0xc7b   :  { %5456 = vrcp.f32 %v1748_v44 }
 0xc7c   :  { %v1775_v35 = vpack.c.bf16 %v1764_v34, %v1763_v32  ;;  %5458 = vrcp.f32 %v1745_v7 }
 0xc7d   :  { %v5453_v37 = vpop.eup %5452 }
 0xc7e   :  { %v1783_v36 = vsel %vm691_vm7, %v1775_v35, 0  ;;  %v1765_v39 = vmul.f32 %v5453_v37, %v5437_v63  ;;  %v1751_v43 = vpop.xlane.xlu1 %1750 }
 0xc7f   :  { %5018 = vmatpush3.bf16.xpose.msra.mxu0 %v1783_v36 }
 0xc80   :  { %5029 = vmatprep.subr.bf16.mxu0 %v5587_v2 }
 0xc81   :  { %v5455_v38 = vpop.eup %5454 }
 0xc82   :  { %v1766_v40 = vmul.f32 %v5455_v38, %v5439_v4  ;;  %v1754_v45 = vpop.xlane.xlu1 %1753 }
 0xc83   :  { %5460 = vrcp.f32 %v1754_v45 }
 0xc84   :  { %v1776_v41 = vpack.c.bf16 %v1766_v40, %v1765_v39  ;;  %5462 = vrcp.f32 %v1751_v43 }
 0xc85   :  { %v5457_v46 = vpop.eup %5456 }
 0xc86   :  { %v1829_v42 = vsel %vm691_vm7, %v1776_v41, 0  ;;  %v5459_v25 = vpop.eup %5458  ;;  %v1768_v48 = vmul.f32 %v5457_v46, %v5443_v8 }
 0xc87   :  { %5024 = vmatpush3.bf16.xpose.msra.mxu1 %v1829_v42  ;;  %v1767_v47 = vmul.f32 %v5459_v25, %v5441_v6 }
 0xc88   :  { %5035 = vmatprep.subr.bf16.mxu1 %v5587_v2 }
 0xc89   :  { %v1777_v50 = vpack.c.bf16 %v1768_v48, %v1767_v47 }
 0xc8b   :  { %v1875_v56 = vsel %vm691_vm7, %v1777_v50, 0 }
 0xc8d   :  { %v5461_v49 = vpop.eup %5460 }
 0xc8e   :  { %v5463_v10 = vpop.eup %5462  ;;  %v1770_v51 = vmul.f32 %v5461_v49, %v5447_v14 }
 0xc8f   :  { %v1769_v54 = vmul.f32 %v5463_v10, %v5445_v12 }
 0xc91   :  { %v1778_v57 = vpack.c.bf16 %v1770_v51, %v1769_v54 }
 0xc93   :  { %v1921_v55 = vsel %vm691_vm7, %v1778_v57, 0  ;;  %v4667_v57 = vld [vmem:[%s6467_s23] ss:$0 sm:$0xff] }
 0xca8   :  { %v1343_v22 = vpop.trf.xlu1 }
 0xca9   :  { %v1771_v52 = vpack.c.bf16 %v1343_v22, %v1343_v22 }
 0xcab   :  { %5020 = vmatmul.mubr.msk.bf16.vlgmr.msra.gmra.mrb[32].mxu0 %vm691_vm7, %v1771_v52 }
 0xcac   :  { %5030 = vmatpush3.bf16.xpose.msra.mxu0 %v1875_v56  ;;  %v1344_v53 = vpop.trf.xlu1  ;;  %5031 = vmatprep.mubr.msk.bf16.mxu0 %vm5588_vm0, %v5587_v2 }
 0xcad   :  { %v1772_v23 = vpack.c.bf16 %v1344_v53, %v1344_v53  ;;  %5041 = vmatprep.subr.bf16.mxu0 %v5587_v2 }
 0xcaf   :  { %5026 = vmatmul.mubr.msk.bf16.vlgmr.msra.gmra.mrb[36].mxu1 %vm691_vm7, %v1772_v23 }
 0xcb0   :  { %5036 = vmatpush3.bf16.xpose.msra.mxu1 %v1921_v55  ;;  %v1345_v58 = vpop.trf.xlu1  ;;  %5037 = vmatprep.mubr.msk.bf16.mxu1 %vm5588_vm0, %v5587_v2 }
 0xcb1   :  { %v1773_v59 = vpack.c.bf16 %v1345_v58, %v1345_v58  ;;  %5049 = vmatprep.subr.bf16.mxu1 %v5587_v2 }
 0xcb3   :  { %5032 = vmatmul.mubr.msk.bf16.vlgmr.msra.gmra.mrb[36].mxu0 %vm691_vm7, %v1773_v59  ;;  %v4668_v59 = vld [vmem:[%s6468_s24] ss:$0 sm:$0xff] }
 0xcb4   :  { %v1346_v60 = vpop.trf.xlu1  ;;  %5045 = vmatprep.mubr.msk.bf16.mxu0 %vm5588_vm0, %v5587_v2  ;;  %5042 = vmatpush3.bf16.msra.mxu0 %v5370_v28 }
 0xcb5   :  { %v1774_v61 = vpack.c.bf16 %v1346_v60, %v1346_v60  ;;  %5043 = vmatprep.subr.bf16.mxu0 %v5587_v2 }
 0xcb7   :  { %5038 = vmatmul.mubr.msk.bf16.vlgmr.msra.gmra.mrb[40].mxu1 %vm691_vm7, %v1774_v61 }
 0xcb8   :  { %5053 = vmatprep.mubr.msk.bf16.mxu1 %vm5588_vm0, %v5587_v2  ;;  %5044 = vmatpush3.bf16.msra.mxu0 %v5371_v62  ;;  %v5375_v62 = vld [vmem:[%s6463_s19 + $0x8] sm:$0xff]  }
 0xcb9   :  { %5057 = vmatprep.subr.bf16.mxu0 %v5587_v2 }
 0xd7e   :  { %v1819_v31 = vpop.f32.mrb[32].mxu0 }
 0xd7f   :  { %1963 = vxpose.xlu0.b32.start [1/4] (short) (narrow) %v1819_v31, 16  ;;  %v5021_v33 = vpop.f32.mrb[33].mxu0 }
 0xd80   :  { %v1822_v63 = vpop.f32.mrb[34].mxu0  ;;  %v5374_v33 = vld [vmem:[%s6463_s19] sm:$0xff]  }
 0xd81   :  { %v5022_v0 = vpop.f32.mrb[35].mxu0  ;;  %v5376_v63 = vld [vmem:[%s6463_s19 + $0x10] sm:$0xff]  }
 0xd82   :  { %v1865_v1 = vpop.f32.mrb[36].mxu1  ;;  %v5377_v0 = vld [vmem:[%s6463_s19 + $0x18] sm:$0xff]  }
 0xd83   :  { %v5027_v3 = vpop.f32.mrb[37].mxu1  ;;  %1964 = vxpose.xlu0.b32.cont [2/4] (short) (narrow) %v1865_v1, 16  ;;  %v4669_v1 = vld [vmem:[%s6462_s18] ss:$0 sm:$0xff] }
 0xd84   :  { %v1868_v4 = vpop.f32.mrb[38].mxu1 }
 0xd85   :  { %v5028_v5 = vpop.f32.mrb[39].mxu1 }
 0xd86   :  { %v1911_v6 = vpop.f32.mrb[36].mxu0 }
 0xd87   :  { %1965 = vxpose.xlu0.b32.cont [3/4] (short) (narrow) %v1911_v6, 16  ;;  %v5033_v8 = vpop.f32.mrb[37].mxu0 }
 0xd88   :  { %v1914_v9 = vpop.f32.mrb[38].mxu0 }
 0xd89   :  { %v5034_v11 = vpop.f32.mrb[39].mxu0 }
 0xd8a   :  { %v1957_v12 = vpop.f32.mrb[40].mxu1 }
 0xd8b   :  { %v5039_v13 = vpop.f32.mrb[41].mxu1  ;;  %1966 = vxpose.xlu0.b32.end [4/4] (short) (narrow) %v1957_v12, 16 }
 0xd8c   :  { %v1960_v14 = vpop.f32.mrb[42].mxu1 }
 0xd8d   :  { %v5040_v15 = vpop.f32.mrb[43].mxu1 }
 0xdff   :  { %v1979_v16 = vpop.trf.xlu0 }
 0xe03   :  { %v1980_v17 = vpop.trf.xlu0 }
 0xe04   :  { %v1995_v18 = vpack.c.bf16 %v1980_v17, %v1979_v16 }
 0xe06   :  { %5046 = vmatmul.mubr.msk.bf16.vlgmr.msra.gmra.mrb[40].mxu0 %vm210_vm4, %v1995_v18 }
 0xe07   :  { %5065 = vmatprep.mubr.msk.bf16.mxu0 %vm5588_vm0, %v5587_v2  ;;  %5058 = vmatpush3.bf16.msra.mxu0 %v5374_v33 }
 0xe08   :  { %5059 = vmatprep.subr.bf16.mxu0 %v5587_v2 }
 0xe0b   :  { %5060 = vmatpush3.bf16.msra.mxu0 %v5375_v62  ;;  %v4679_v62 = vld [vmem:[%s6469_s25] ss:$0 sm:$0xff] }
 0xe0c   :  { %5061 = vmatprep.subr.bf16.mxu0 %v5587_v2 }
 0xe0f   :  { %5062 = vmatpush3.bf16.msra.mxu0 %v5376_v63 }
 0xe10   :  { %5063 = vmatprep.subr.bf16.mxu0 %v5587_v2 }
 0xe13   :  { %5064 = vmatpush3.bf16.msra.mxu0 %v5377_v0 }
 0xe14   :  { %5083 = vmatprep.subr.bf16.mxu0 %v5587_v2 }
 0xed9   :  { %v2056_v24 = vpop.f32.mrb[40].mxu0 }
 0xeda   :  { %v2057_v26 = vadd.f32 %v4663_v21, %v2056_v24  ;;  %v5047_v27 = vpop.f32.mrb[41].mxu0 }
 0xedb   :  { %v2059_v29 = vpop.f32.mrb[42].mxu0 }
 0xedc   :  { %v2063_v30 = vadd.f32 %v2057_v26, %v5943_v19  ;;  %v2060_v32 = vadd.f32 %v4663_v21, %v2059_v29  ;;  %v5048_v34 = vpop.f32.mrb[43].mxu0  ;;  %v5372_v19 = vld [vmem:[%s6461_s17] sm:$0xff]  }
 0xedd   :  { %5050 = vmatpush3.bf16.msra.mxu1 %v5372_v19 }
 0xede   :  { %v2064_v35 = vadd.f32 %v2060_v32, %v5945_v20  ;;  %v2067_v36 = vsel %vm210_vm4, %v2063_v30, 0.0  ;;  %v2075_v37 = vmul.f32 %v2063_v30, %v2063_v30  ;;  %v5373_v20 = vld [vmem:[%s6461_s17 + $0x8] sm:$0xff]   ;;  %5051 = vmatprep.subr.bf16.mxu1 %v5587_v2 }
 0xedf   :  { %2068 = vadd.xlane.f32.xlu1 %v2067_v36 }
 0xee0   :  { %v2070_v38 = vsel %vm210_vm4, %v2064_v35, 0.0  ;;  %v2077_v39 = vsel %vm210_vm4, %v2075_v37, 0.0  ;;  %v2076_v40 = vmul.f32 %v2064_v35, %v2064_v35 }
 0xee1   :  { %2071 = vadd.xlane.f32.xlu0 %v2070_v38  ;;  %5052 = vmatpush3.bf16.msra.mxu1 %v5373_v20  ;;  %v4673_v38 = vld [vmem:[%s6464_s20] ss:$0 sm:$0xff] }
 0xee2   :  { %v2080_v41 = vsel %vm210_vm4, %v2076_v40, 0.0  ;;  %5069 = vmatprep.subr.bf16.mxu1 %v5587_v2 }
 0xee3   :  { %2078 = vadd.xlane.f32.xlu1 %v2077_v39 }
 0xee7   :  { %2081 = vadd.xlane.f32.xlu1 %v2080_v41 }
 0xf6c   :  { %v2069_v42 = vpop.xlane.xlu1 %2068 }
 0xf6d   :  { %v2073_v7 = vmul.f32 0.03125, %v2069_v42 }
 0xf6e   :  { %v2072_v43 = vpop.xlane.xlu0 %2071 }
 0xf6f   :  { %v2085_v45 = vmul.f32 %v2073_v7, %v2073_v7  ;;  %v2074_v46 = vmul.f32 0.03125, %v2072_v43  ;;  %v2089_v52 = vsub.f32 %v2063_v30, %v2073_v7 }
 0xf70   :  { %v2079_v44 = vpop.xlane.xlu1 %2078 }
 0xf71   :  { %v2083_v25 = vmul.f32 0.03125, %v2079_v44  ;;  %v2086_v49 = vmul.f32 %v2074_v46, %v2074_v46  ;;  %v2090_v53 = vsub.f32 %v2064_v35, %v2074_v46 }
 0xf73   :  { %v2087_v47 = vsub.f32 %v2083_v25, %v2085_v45 }
 0xf74   :  { %v2082_v48 = vpop.xlane.xlu1 %2081 }
 0xf75   :  { %v2091_v10 = vadd.f32 1e-05, %v2087_v47  ;;  %v2084_v50 = vmul.f32 0.03125, %v2082_v48 }
 0xf77   :  { %5464 = vrsqrt.f32 %v2091_v10  ;;  %v2088_v51 = vsub.f32 %v2084_v50, %v2086_v49  ;;  %v5378_v49 = vld [vmem:[%s6497_s4 + $0x10] sm:$0xff]   ;;  %v5379_v10 = vld [vmem:[%s6497_s4 + $0x18] sm:$0xff]  }
 0xf79   :  { %v2092_v22 = vadd.f32 1e-05, %v2088_v51 }
 0xf7b   :  { %5466 = vrsqrt.f32 %v2092_v22 }
 0xf81   :  { %v5465_v54 = vpop.eup %5464 }
 0xf82   :  { %v2095_v56 = vmul.f32 %v5465_v54, %v2089_v52 }
 0xf84   :  { %v2103_v58 = vmul.f32 %v4667_v57, %v2095_v56 }
 0xf85   :  { %v5467_v23 = vpop.eup %5466 }
 0xf86   :  { %v2096_v55 = vmul.f32 %v5467_v23, %v2090_v53  ;;  %v2111_v61 = vadd.f32 %v4668_v59, %v2103_v58 }
 0xf88   :  { %v2104_v60 = vmul.f32 %v4667_v57, %v2096_v55 }
 0xf8a   :  { %v2112_v28 = vadd.f32 %v4668_v59, %v2104_v60 }
 0xf8c   :  { %v2113_v31 = vpack.c.bf16 %v2112_v28, %v2111_v61 }
 0xf8e   :  { %5054 = vmatmul.mubr.msk.bf16.vlgmr.msra.gmra.mrb[44].mxu1 %vm210_vm4, %v2113_v31 }
 0xf8f   :  { %5073 = vmatprep.mubr.msk.bf16.mxu1 %vm5588_vm0, %v5587_v2  ;;  %5070 = vmatpush3.bf16.msra.mxu1 %v5378_v49 }
 0xf90   :  { %5071 = vmatprep.subr.bf16.mxu1 %v5587_v2 }
 0xf93   :  { %5072 = vmatpush3.bf16.msra.mxu1 %v5379_v10 }
 0xf94   :  { %5077 = vmatprep.subr.bf16.mxu1 %v5587_v2 }
0x1061   :  { %v2174_v3 = vpop.f32.mrb[44].mxu1 }
0x1062   :  { %v2175_v4 = vadd.f32 %v4669_v1, %v2174_v3  ;;  %v5055_v5 = vpop.f32.mrb[45].mxu1 }
0x1063   :  { %v2177_v6 = vpop.f32.mrb[46].mxu1 }
0x1064   :  { %v2183_v8 = vmul.f32 0.044715, %v2175_v4  ;;  %v2178_v9 = vadd.f32 %v4669_v1, %v2177_v6  ;;  %v5056_v11 = vpop.f32.mrb[47].mxu1  ;;  %v2181_v30 = vmul.f32 0.5, %v2175_v4 }
0x1065   :  { %v4686_v11 = vld [vmem:[%s6499_s6 + $0x1] ss:$0 sm:$0xff]  ;;  %s6506_s6 = sld [smem:[#allocation9_spill]] }
0x1066   :  { %v2185_v12 = vmul.f32 %v2183_v8, %v2175_v4  ;;  %v2184_v13 = vmul.f32 0.044715, %v2178_v9  ;;  %v2182_v32 = vmul.f32 0.5, %v2178_v9 }
0x1068   :  { %v2187_v14 = vmul.f32 %v2185_v12, %v2175_v4  ;;  %v2186_v15 = vmul.f32 %v2184_v13, %v2178_v9 }
0x106a   :  { %v2189_v16 = vadd.f32 %v2187_v14, %v2175_v4  ;;  %v2188_v17 = vmul.f32 %v2186_v15, %v2178_v9  ;;  %v4680_v4 = vld [vmem:[%s6470_s26] ss:$0 sm:$0xff] }
0x106c   :  { %v2191_v18 = vmul.f32 0.7978846, %v2189_v16  ;;  %v2190_v21 = vadd.f32 %v2188_v17, %v2178_v9 }
0x106e   :  { %5468 = vtanh.f32 %v2191_v18  ;;  %v2192_v24 = vmul.f32 0.7978846, %v2190_v21 }
0x1070   :  { %5470 = vtanh.f32 %v2192_v24 }
0x1078   :  { %v5469_v26 = vpop.eup %5468 }
0x1079   :  { %v2195_v27 = vadd.f32 1.0, %v5469_v26 }
0x107a   :  { %v5471_v29 = vpop.eup %5470 }
0x107b   :  { %v2196_v34 = vadd.f32 1.0, %v5471_v29  ;;  %v2197_v35 = vmul.f32 %v2195_v27, %v2181_v30 }
0x107d   :  { %v2198_v36 = vmul.f32 %v2196_v34, %v2182_v32 }
0x107f   :  { %v2199_v37 = vpack.c.bf16 %v2198_v36, %v2197_v35 }
0x1081   :  { %5066 = vmatmul.mubr.msk.bf16.vlgmr.msra.gmra.mrb[44].mxu0 %vm141_vm3, %v2199_v37 }
0x1082   :  { %5085 = vmatprep.mubr.msk.bf16.mxu0 %vm5588_vm0, %v5587_v2 }
0x1154   :  { %v2276_v39 = vpop.f32.mrb[44].mxu0 }
0x1155   :  { %v2277_v40 = vadd.f32 %v4673_v38, %v2276_v39  ;;  %v5067_v41 = vpop.f32.mrb[45].mxu0 }
0x1156   :  { %v2279_v19 = vpop.f32.mrb[46].mxu0 }
0x1157   :  { %v2283_v20 = vadd.f32 %v2277_v40, %v2111_v61  ;;  %v2280_v42 = vadd.f32 %v4673_v38, %v2279_v19  ;;  %v5068_v7 = vpop.f32.mrb[47].mxu0 }
0x1159   :  { %v2284_v43 = vadd.f32 %v2280_v42, %v2112_v28  ;;  %v2287_v44 = vsel %vm210_vm4, %v2283_v20, 0.0  ;;  %v2295_v46 = vmul.f32 %v2283_v20, %v2283_v20 }
0x115a   :  { %2288 = vadd.xlane.f32.xlu1 %v2287_v44 }
0x115b   :  { %v2290_v45 = vsel %vm210_vm4, %v2284_v43, 0.0  ;;  %v2297_v25 = vsel %vm210_vm4, %v2295_v46, 0.0  ;;  %v2296_v47 = vmul.f32 %v2284_v43, %v2284_v43 }
0x115d   :  { %v2300_v48 = vsel %vm210_vm4, %v2296_v47, 0.0 }
0x115e   :  { %2291 = vadd.xlane.f32.xlu1 %v2290_v45 }
0x1162   :  { %2298 = vadd.xlane.f32.xlu1 %v2297_v25 }
0x1166   :  { %2301 = vadd.xlane.f32.xlu1 %v2300_v48 }
0x11e7   :  { %v2289_v50 = vpop.xlane.xlu1 %2288 }
0x11e8   :  { %v2293_v22 = vmul.f32 0.03125, %v2289_v50 }
0x11ea   :  { %v2305_v54 = vmul.f32 %v2293_v22, %v2293_v22  ;;  %v2309_v28 = vsub.f32 %v2283_v20, %v2293_v22 }
0x11eb   :  { %v2292_v51 = vpop.xlane.xlu1 %2291 }
0x11ec   :  { %v2294_v56 = vmul.f32 0.03125, %v2292_v51 }
0x11ee   :  { %v2306_v55 = vmul.f32 %v2294_v56, %v2294_v56  ;;  %v2310_v63 = vsub.f32 %v2284_v43, %v2294_v56 }
0x11ef   :  { %v2299_v52 = vpop.xlane.xlu1 %2298 }
0x11f0   :  { %v2303_v57 = vmul.f32 0.03125, %v2299_v52 }
0x11f2   :  { %v2307_v53 = vsub.f32 %v2303_v57, %v2305_v54 }
0x11f3   :  { %v2302_v23 = vpop.xlane.xlu1 %2301 }
0x11f4   :  { %v2311_v58 = vadd.f32 1e-05, %v2307_v53  ;;  %v2304_v59 = vmul.f32 0.03125, %v2302_v23 }
0x11f6   :  { %5472 = vrsqrt.f32 %v2311_v58  ;;  %v2308_v60 = vsub.f32 %v2304_v59, %v2306_v55  ;;  %v6153_v58 = vld [vmem:[%s6500_s7] sm:$0xff] }
0x11f8   :  { %v2312_v61 = vadd.f32 1e-05, %v2308_v60 }
0x11fa   :  { %5474 = vrsqrt.f32 %v2312_v61 }
0x1200   :  { %v5473_v31 = vpop.eup %5472 }
0x1201   :  { %v2315_v33 = vmul.f32 %v5473_v31, %v2309_v28 }
0x1203   :  { %v2323_v3 = vmul.f32 %v4679_v62, %v2315_v33 }
0x1204   :  { %v5475_v0 = vpop.eup %5474 }
0x1205   :  { %v2316_v1 = vmul.f32 %v5475_v0, %v2310_v63  ;;  %v6103_v6 = vadd.f32 %v4680_v4, %v2323_v3 }
0x1207   :  { %v2324_v5 = vmul.f32 %v4679_v62, %v2316_v1  ;;  %v6160_v62 = vld [vmem:[%s6500_s7 + $0x8] sm:$0xff]  ;;  %s6504_s7 = smov 64  }
0x1209   :  { %v6105_v8 = vadd.f32 %v4680_v4, %v2324_v5 }
0x120b   :  { %v6109_v9 = vpack.c.bf16 %v6105_v8, %v6103_v6 }
0x120d   :  { %5074 = vmatmul.mubr.msk.bf16.vlgmr.msra.gmra.mrb[48].mxu1 %vm210_vm4, %v6109_v9 }
0x120e   :  { %5079 = vmatprep.mubr.msk.bf16.mxu1 %vm5588_vm0, %v5587_v2 }
0x12e0   :  { %v2396_v12 = vpop.f32.mrb[48].mxu1 }
0x12e1   :  { %v6118_v13 = vadd.f32 %v4686_v11, %v2396_v12  ;;  %v5075_v14 = vpop.f32.mrb[49].mxu1 }
0x12e2   :  { %v2399_v15 = vpop.f32.mrb[50].mxu1 }
0x12e3   :  { %v6120_v16 = vadd.f32 %v4686_v11, %v2399_v15  ;;  %2437 = vrot.lane.b32.xlu0 %v6118_v13, %s5589_s11  ;;  %v5076_v17 = vpop.f32.mrb[51].mxu1 }
0x12e5   :  { %2439 = vrot.lane.b32.xlu1 %v6120_v16, %s5589_s11  ;;  %v5324_v18 = vpack.i.bf16 %v6120_v16, %v6118_v13 }
0x130e   :  { %2403 = vxpose.xlu1.b32.start [1/2] (short) (narrow) %v6118_v13, 32 }
0x1312   :  { %2404 = vxpose.xlu1.b32.end [2/2] (short) (narrow) %v6120_v16, 32 }
0x1355   :  { %v2438_v21 = vpop.permute.xlu0 %2437 }
0x1356   :  { %2443 = vxpose.xlu0.b32.start [1/2] (short) (narrow) %v2438_v21, 32 }
0x1357   :  { %v2440_v24 = vpop.permute.xlu1 %2439 }
0x135a   :  { %2444 = vxpose.xlu0.b32.end [2/2] (short) (narrow) %v2440_v24, 32 }
0x138e   :  { %v2419_v26 = vpop.trf.xlu1 }
0x1392   :  { %v2420_v27 = vpop.trf.xlu1 }
0x1393   :  { %v5300_v29 = vpack.i.bf16 %v2420_v27, %v2419_v26 }
0x1395   :  { %5301 = vxpose.xlu0.b32.start.end [1/1] (short) (narrow) %v5300_v29, 16 }
0x1396   :  { %v2421_v30 = vpop.trf.xlu1 }
0x139a   :  { %v2422_v32 = vpop.trf.xlu1 }
0x139b   :  { %v5312_v34 = vpack.i.bf16 %v2422_v32, %v2421_v30 }
0x139d   :  { %5313 = vxpose.xlu1.b32.start.end [1/1] (short) (narrow) %v5312_v34, 16 }
0x13d6   :  { %v2459_v35 = vpop.trf.xlu0 }
0x13d7   :  { %v2645_v36 = vpack.c.bf16 %v2459_v35, %v2459_v35 }
0x13d9   :  { %v2653_v37 = vsel %vm505_vm5, %v2645_v36, 0 }
0x13da   :  { %5078 = vmatpush3.bf16.msra.mxu1 %v2653_v37  ;;  %v2460_v38 = vpop.trf.xlu0 }
0x13db   :  { %v2646_v39 = vpack.c.bf16 %v2460_v38, %v2460_v38  ;;  %5089 = vmatprep.subr.bf16.mxu1 %v5587_v2 }
0x13dd   :  { %v2700_v40 = vsel %vm505_vm5, %v2646_v39, 0 }
0x13de   :  { %5084 = vmatpush3.bf16.msra.mxu0 %v2700_v40  ;;  %v2461_v41 = vpop.trf.xlu0 }
0x13df   :  { %5095 = vmatprep.subr.bf16.mxu0 %v5587_v2  ;;  %v2647_v42 = vpack.c.bf16 %v2461_v41, %v2461_v41 }
0x13e1   :  { %v2747_v10 = vsel %vm505_vm5, %v2647_v42, 0 }
0x13e2   :  { %v2462_v19 = vpop.trf.xlu0 }
0x13e3   :  { %v2648_v7 = vpack.c.bf16 %v2462_v19, %v2462_v19 }
0x13e5   :  { %v2794_v50 = vsel %vm505_vm5, %v2648_v7, 0 }
0x1415   :  { %v5302_v20 = vpop.trf.xlu0 }
0x1416   :  { %v5306_v43 = vunpack.i.h.bf16 %v5302_v20  ;;  %v5303_v44 = vunpack.i.l.bf16 %v5302_v20 }
0x1419   :  { %v5307_v45 = vpop.trf.xlu0 }
0x141a   :  { %v5311_v46 = vunpack.i.h.bf16 %v5307_v45  ;;  %v5308_v25 = vunpack.i.l.bf16 %v5307_v45 }
0x141c   :  { %v2641_v47 = vpack.c.bf16 %v5308_v25, %v5303_v44  ;;  %v2642_v48 = vpack.c.bf16 %v5311_v46, %v5306_v43 }
0x141d   :  { %v5314_v49 = vpop.trf.xlu1 }
0x141e   :  { %5080 = vmatmul.mubr.msk.bf16.vlgmr.msra.gmra.mrb[52].mxu1 %vm501_vm6, %v2641_v47  ;;  %5086 = vmatmul.mubr.msk.bf16.vlgmr.msra.gmra.mrb[48].mxu0 %vm501_vm6, %v2642_v48  ;;  %v5318_v51 = vunpack.i.h.bf16 %v5314_v49  ;;  %v5315_v22 = vunpack.i.l.bf16 %v5314_v49 }
0x141f   :  { %5090 = vmatpush3.bf16.msra.mxu1 %v2747_v10  ;;  %5096 = vmatpush3.bf16.msra.mxu0 %v2794_v50 }
0x1420   :  { %5091 = vmatprep.mubr.msk.bf16.mxu1 %vm5588_vm0, %v5587_v2  ;;  %5097 = vmatprep.mubr.msk.bf16.mxu0 %vm5588_vm0, %v5587_v2 }
0x1421   :  { %v5319_v52 = vpop.trf.xlu1  ;;  %5101 = vmatprep.subr.bf16.mxu1 %v5587_v2  ;;  %5107 = vmatprep.subr.bf16.mxu0 %v5587_v2 }
0x1422   :  { %v5323_v54 = vunpack.i.h.bf16 %v5319_v52  ;;  %v5320_v56 = vunpack.i.l.bf16 %v5319_v52 }
0x1424   :  { %v2643_v57 = vpack.c.bf16 %v5320_v56, %v5315_v22  ;;  %v2644_v53 = vpack.c.bf16 %v5323_v54, %v5318_v51 }
0x1426   :  { %5092 = vmatmul.mubr.msk.bf16.vlgmr.msra.gmra.mrb[56].mxu1 %vm501_vm6, %v2643_v57  ;;  %5098 = vmatmul.mubr.msk.bf16.vlgmr.msra.gmra.mrb[52].mxu0 %vm501_vm6, %v2644_v53 }
0x1427   :  { %5103 = vmatprep.mubr.msk.bf16.mxu1 %vm5588_vm0, %v5587_v2  ;;  %5109 = vmatprep.mubr.msk.bf16.mxu0 %vm5588_vm0, %v5587_v2 }
0x14f1   :  { %v2689_v23 = vpop.f32.mrb[52].mxu1  ;;  %v2736_v55 = vpop.f32.mrb[48].mxu0 }
0x14f2   :  { %v2690_v59 = vadd.f32 %v6153_v58, %v2689_v23  ;;  %v5081_v60 = vpop.f32.mrb[53].mxu1  ;;  %v5087_v61 = vpop.f32.mrb[49].mxu0  ;;  %v2737_v33 = vadd.f32 %v6153_v58, %v2736_v55 }
0x14f3   :  { %v2692_v28 = vpop.f32.mrb[54].mxu1  ;;  %v2739_v31 = vpop.f32.mrb[50].mxu0 }
0x14f4   :  { %v2693_v63 = vadd.f32 %v6160_v62, %v2692_v28  ;;  %v5082_v0 = vpop.f32.mrb[55].mxu1  ;;  %v5088_v1 = vpop.f32.mrb[51].mxu0  ;;  %v2837_v3 = vsel %vm691_vm7, %v2690_v59, -inf  ;;  %v2740_v4 = vadd.f32 %v6160_v62, %v2739_v31  ;;  %v2843_v11 = vsel %vm691_vm7, %v2737_v33, -inf }
0x14f5   :  { %2838 = vmax.xlane.f32.xlu0 %v2837_v3 }
0x14f6   :  { %v2840_v5 = vsel %vm691_vm7, %v2693_v63, -inf  ;;  %v2846_v24 = vsel %vm691_vm7, %v2740_v4, -inf }
0x14f7   :  { %2841 = vmax.xlane.f32.xlu1 %v2840_v5 }
0x14f9   :  { %v2783_v12 = vpop.f32.mrb[56].mxu1  ;;  %2844 = vmax.xlane.f32.xlu0 %v2843_v11  ;;  %v2830_v14 = vpop.f32.mrb[52].mxu0 }
0x14fa   :  { %v2784_v15 = vadd.f32 %v6153_v58, %v2783_v12  ;;  %v5093_v17 = vpop.f32.mrb[57].mxu1  ;;  %v2831_v21 = vadd.f32 %v6153_v58, %v2830_v14  ;;  %v5099_v26 = vpop.f32.mrb[53].mxu0 }
0x14fb   :  { %v2786_v27 = vpop.f32.mrb[58].mxu1  ;;  %2847 = vmax.xlane.f32.xlu1 %v2846_v24  ;;  %v2833_v29 = vpop.f32.mrb[54].mxu0 }
0x14fc   :  { %v2787_v30 = vadd.f32 %v6160_v62, %v2786_v27  ;;  %v5094_v32 = vpop.f32.mrb[59].mxu1  ;;  %v2849_v34 = vsel %vm691_vm7, %v2784_v15, -inf  ;;  %v5100_v35 = vpop.f32.mrb[55].mxu0  ;;  %v2834_v36 = vadd.f32 %v6160_v62, %v2833_v29  ;;  %v2855_v38 = vsel %vm691_vm7, %v2831_v21, -inf }
0x14fd   :  { %2850 = vmax.xlane.f32.xlu0 %v2849_v34 }
0x14fe   :  { %v2852_v37 = vsel %vm691_vm7, %v2787_v30, -inf  ;;  %v2858_v39 = vsel %vm691_vm7, %v2834_v36, -inf }
0x14ff   :  { %2853 = vmax.xlane.f32.xlu1 %v2852_v37 }
0x1501   :  { %2856 = vmax.xlane.f32.xlu0 %v2855_v38 }
0x1503   :  { %2859 = vmax.xlane.f32.xlu1 %v2858_v39 }
0x1517   :  { %5325 = vrot.lane.b32.xlu0 %v5324_v18, %s6504_s7 }
0x1582   :  { %v2839_v40 = vpop.xlane.xlu0 %2838 }
0x1583   :  { %v2861_v41 = vsub.f32 %v2690_v59, %v2839_v40 }
0x1584   :  { %v2842_v19 = vpop.xlane.xlu1 %2841 }
0x1585   :  { %v2869_v20 = vmul.f32 1.442695, %v2861_v41  ;;  %v2862_v42 = vsub.f32 %v2693_v63, %v2842_v19 }
0x1586   :  { %v2845_v7 = vpop.xlane.xlu0 %2844 }
0x1587   :  { %5476 = vpow2.f32 %v2869_v20  ;;  %v2871_v43 = vmul.f32 1.442695, %v2862_v42  ;;  %v2863_v44 = vsub.f32 %v2737_v33, %v2845_v7 }
0x1588   :  { %v2848_v45 = vpop.xlane.xlu1 %2847 }
0x1589   :  { %5478 = vpow2.f32 %v2871_v43  ;;  %v2873_v46 = vmul.f32 1.442695, %v2863_v44  ;;  %v2864_v25 = vsub.f32 %v2740_v4, %v2848_v45 }
0x158a   :  { %v2851_v47 = vpop.xlane.xlu0 %2850 }
0x158b   :  { %5480 = vpow2.f32 %v2873_v46  ;;  %v2875_v49 = vmul.f32 1.442695, %v2864_v25  ;;  %v2865_v10 = vsub.f32 %v2784_v15, %v2851_v47 }
0x158c   :  { %v2854_v48 = vpop.xlane.xlu1 %2853 }
0x158d   :  { %5482 = vpow2.f32 %v2875_v49  ;;  %v2877_v50 = vmul.f32 1.442695, %v2865_v10  ;;  %v2866_v51 = vsub.f32 %v2787_v30, %v2854_v48 }
0x158e   :  { %v2857_v13 = vpop.xlane.xlu0 %2856 }
0x158f   :  { %v2867_v16 = vsub.f32 %v2831_v21, %v2857_v13  ;;  %v2879_v57 = vmul.f32 1.442695, %v2866_v51 }
0x1590   :  { %v2860_v52 = vpop.xlane.xlu1 %2859 }
0x1591   :  { %v5477_v18 = vpop.eup %5476  ;;  %v2881_v22 = vmul.f32 1.442695, %v2867_v16  ;;  %v2868_v53 = vsub.f32 %v2834_v36, %v2860_v52 }
0x1592   :  { %v2885_v54 = vsel %vm691_vm7, %v5477_v18, 0.0  ;;  %v5326_v11 = vpop.permute.xlu0 %5325 }
0x1593   :  { %v5479_v56 = vpop.eup %5478  ;;  %5484 = vpow2.f32 %v2881_v22  ;;  %2886 = vadd.xlane.f32.xlu1 %v2885_v54  ;;  %v2883_v59 = vmul.f32 1.442695, %v2868_v53  ;;  %v5327_v12 = vunpack.i.l.bf16 %v5326_v11  ;;  %v5328_v14 = vunpack.i.h.bf16 %v5326_v11  ;;  %v5380_v53 = vld [vmem:[%s6501_s0 + $0x10] sm:$0xff]  }
0x1594   :  { %5486 = vpow2.f32 %v2877_v50  ;;  %v2888_v23 = vsel %vm691_vm7, %v5479_v56, 0.0 }
0x1595   :  { %v5481_v55 = vpop.eup %5480  ;;  %5488 = vpow2.f32 %v2879_v57 }
0x1596   :  { %v2891_v60 = vsel %vm691_vm7, %v5481_v55, 0.0  ;;  %5490 = vpow2.f32 %v2883_v59  ;;  %v5381_v59 = vld [vmem:[%s6501_s0 + $0x18] sm:$0xff]  }
0x1597   :  { %2889 = vadd.xlane.f32.xlu1 %v2888_v23  ;;  %v5483_v61 = vpop.eup %5482 }
0x1598   :  { %v2894_v33 = vsel %vm691_vm7, %v5483_v61, 0.0 }
0x159b   :  { %2892 = vadd.xlane.f32.xlu1 %v2891_v60 }
0x159d   :  { %v5485_v28 = vpop.eup %5484 }
0x159e   :  { %v2903_v31 = vsel %vm691_vm7, %v5485_v28, 0.0  ;;  %v5487_v63 = vpop.eup %5486 }
0x159f   :  { %2904 = vadd.xlane.f32.xlu0 %v2903_v31  ;;  %2895 = vadd.xlane.f32.xlu1 %v2894_v33  ;;  %v2897_v0 = vsel %vm691_vm7, %v5487_v63, 0.0  ;;  %v5489_v1 = vpop.eup %5488 }
0x15a0   :  { %v2900_v3 = vsel %vm691_vm7, %v5489_v1, 0.0  ;;  %v5491_v4 = vpop.eup %5490 }
0x15a1   :  { %v2906_v5 = vsel %vm691_vm7, %v5491_v4, 0.0 }
0x15a3   :  { %2898 = vadd.xlane.f32.xlu1 %v2897_v0 }
0x15a7   :  { %2901 = vadd.xlane.f32.xlu1 %v2900_v3 }
0x15ab   :  { %2907 = vadd.xlane.f32.xlu1 %v2906_v5 }
0x15de   :  { %2481 = vxpose.xlu1.b32.start [1/2] (short) (narrow) %v5327_v12, 32 }
0x15e2   :  { %2482 = vxpose.xlu1.b32.end [2/2] (short) (narrow) %v5328_v14, 32 }
0x1620   :  { %v2887_v15 = vpop.xlane.xlu1 %2886 }
0x1621   :  { %5492 = vrcp.f32 %v2887_v15 }
0x1624   :  { %v2890_v17 = vpop.xlane.xlu1 %2889 }
0x1625   :  { %5494 = vrcp.f32 %v2890_v17 }
0x1628   :  { %v2893_v21 = vpop.xlane.xlu1 %2892 }
0x1629   :  { %5496 = vrcp.f32 %v2893_v21  ;;  %v5382_v21 = vld [vmem:[%s6457_s13 + $0x10] sm:$0xff]  }
0x162b   :  { %v5493_v26 = vpop.eup %5492 }
0x162c   :  { %v2896_v24 = vpop.xlane.xlu1 %2895  ;;  %v2917_v29 = vmul.f32 %v5493_v26, %v5477_v18  ;;  %v2905_v42 = vpop.xlane.xlu0 %2904  ;;  %v5383_v26 = vld [vmem:[%s6457_s13 + $0x18] sm:$0xff]   ;;  %s5591_s13 = smov [#allocation2]  }
0x162d   :  { %5498 = vrcp.f32 %v2896_v24  ;;  %s4611_s8 = sshll.u32 %s5591_s13, 4  ;;  %s4612_s8 = int_to_ptr.vmem [resolvable:$true] %s4611_s8 }
0x162e   :  { %p5567_p1 = scmp.lt.s32.totalorder %s4612_s8, %s4612_s8 }
0x162f   :  { %v5495_v27 = vpop.eup %5494 }
0x1630   :  { %v2918_v30 = vmul.f32 %v5495_v27, %v5479_v56  ;;  %v2899_v41 = vpop.xlane.xlu1 %2898  ;;  %v4703_v27 = vld [vmem:[%s6502_s28 + $0x1] ss:$0 sm:$0xff]  ;;  %s5562_s28 = scalar_lea.vmem %s4612_s8, 256 }
0x1631   :  { %p5563_p0 = scmp.ne.s32.totalorder %s4612_s8, %s5562_s28  ;;  %p5568_p2 = scmp.lt.s32.totalorder %s5562_s28, %s5562_s28 }
0x1632   :  { %v2929_v32 = vpack.c.bf16 %v2918_v30, %v2917_v29 }
0x1633   :  { %v5497_v35 = vpop.eup %5496  ;;  %p5569_p3 = por %p5568_p2, %p5567_p1 }
0x1634   :  { %v2937_v34 = vsel %vm691_vm7, %v2929_v32, 0  ;;  %v2919_v37 = vmul.f32 %v5497_v35, %v5481_v55  ;;  %v2902_v19 = vpop.xlane.xlu1 %2901 }
0x1635   :  { %5102 = vmatpush3.bf16.xpose.msra.mxu1 %v2937_v34  ;;  %5500 = vrcp.f32 %v2902_v19  ;;  %p5570_p4 = pnand %p5569_p3, %p5563_p0 }
0x1636   :  { %5113 = vmatprep.subr.bf16.mxu1 %v5587_v2  ;;  %5502 = vrcp.f32 %v2899_v41  ;;  %v4725_v41 = vld [vmem:[%s6458_s14 + $0x1] ss:$0 sm:$0xff] }
0x1637   :  { %v5499_v36 = vpop.eup %5498 }
0x1638   :  { %v2920_v38 = vmul.f32 %v5499_v36, %v5483_v61  ;;  %v2908_v20 = vpop.xlane.xlu1 %2907 }
0x1639   :  { %5504 = vrcp.f32 %v2908_v20 }
0x163a   :  { %v2930_v39 = vpack.c.bf16 %v2920_v38, %v2919_v37  ;;  %5506 = vrcp.f32 %v2905_v42 }
0x163c   :  { %v2983_v40 = vsel %vm691_vm7, %v2930_v39, 0 }
0x163d   :  { %5108 = vmatpush3.bf16.xpose.msra.mxu0 %v2983_v40 }
0x163e   :  { %5119 = vmatprep.subr.bf16.mxu0 %v5587_v2 }
0x163f   :  { %v5501_v7 = vpop.eup %5500 }
0x1640   :  { %v5503_v43 = vpop.eup %5502  ;;  %v2922_v44 = vmul.f32 %v5501_v7, %v5489_v1 }
0x1641   :  { %v2921_v46 = vmul.f32 %v5503_v43, %v5487_v63 }
0x1643   :  { %v5505_v45 = vpop.eup %5504  ;;  %v2931_v47 = vpack.c.bf16 %v2922_v44, %v2921_v46 }
0x1644   :  { %v5507_v25 = vpop.eup %5506  ;;  %v2924_v48 = vmul.f32 %v5505_v45, %v5491_v4 }
0x1645   :  { %v2923_v13 = vmul.f32 %v5507_v25, %v5485_v28  ;;  %v3029_v16 = vsel %vm691_vm7, %v2931_v47, 0  ;;  %v5384_v25 = vld [vmem:[%s6503_s3 + $0x10] sm:$0xff]   ;;  %v5385_v47 = vld [vmem:[%s6503_s3 + $0x18] sm:$0xff]  }
0x1647   :  { %v2932_v18 = vpack.c.bf16 %v2924_v48, %v2923_v13 }
0x1649   :  { %v3075_v22 = vsel %vm691_vm7, %v2932_v18, 0 }
0x165e   :  { %v2497_v49 = vpop.trf.xlu1 }
0x165f   :  { %v2925_v10 = vpack.c.bf16 %v2497_v49, %v2497_v49 }
0x1661   :  { %5104 = vmatmul.mubr.msk.bf16.vlgmr.msra.gmra.mrb[60].mxu1 %vm691_vm7, %v2925_v10 }
0x1662   :  { %5114 = vmatpush3.bf16.xpose.msra.mxu1 %v3029_v16  ;;  %v2498_v50 = vpop.trf.xlu1  ;;  %5115 = vmatprep.mubr.msk.bf16.mxu1 %vm5588_vm0, %v5587_v2 }
0x1663   :  { %v2926_v51 = vpack.c.bf16 %v2498_v50, %v2498_v50  ;;  %5125 = vmatprep.subr.bf16.mxu1 %v5587_v2 }
0x1665   :  { %5110 = vmatmul.mubr.msk.bf16.vlgmr.msra.gmra.mrb[56].mxu0 %vm691_vm7, %v2926_v51 }
0x1666   :  { %5120 = vmatpush3.bf16.xpose.msra.mxu0 %v3075_v22  ;;  %v2499_v52 = vpop.trf.xlu1  ;;  %5121 = vmatprep.mubr.msk.bf16.mxu0 %vm5588_vm0, %v5587_v2 }
0x1667   :  { %v2927_v54 = vpack.c.bf16 %v2499_v52, %v2499_v52  ;;  %5133 = vmatprep.subr.bf16.mxu0 %v5587_v2 }
0x1669   :  { %5116 = vmatmul.mubr.msk.bf16.vlgmr.msra.gmra.mrb[64].mxu1 %vm691_vm7, %v2927_v54 }
0x166a   :  { %v2500_v56 = vpop.trf.xlu1  ;;  %5129 = vmatprep.mubr.msk.bf16.mxu1 %vm5588_vm0, %v5587_v2  ;;  %5126 = vmatpush3.bf16.msra.mxu1 %v5380_v53 }
0x166b   :  { %v2928_v57 = vpack.c.bf16 %v2500_v56, %v2500_v56  ;;  %5127 = vmatprep.subr.bf16.mxu1 %v5587_v2 }
0x166d   :  { %5122 = vmatmul.mubr.msk.bf16.vlgmr.msra.gmra.mrb[60].mxu0 %vm691_vm7, %v2928_v57 }
0x166e   :  { %5137 = vmatprep.mubr.msk.bf16.mxu0 %vm5588_vm0, %v5587_v2  ;;  %5128 = vmatpush3.bf16.msra.mxu1 %v5381_v59 }
0x166f   :  { %5141 = vmatprep.subr.bf16.mxu1 %v5587_v2  ;;  %5134 = vmatpush3.bf16.msra.mxu0 %v5384_v25 }
0x1670   :  { %5135 = vmatprep.subr.bf16.mxu0 %v5587_v2 }
0x1673   :  { %5136 = vmatpush3.bf16.msra.mxu0 %v5385_v47 }
0x1674   :  { %5149 = vmatprep.subr.bf16.mxu0 %v5587_v2 }
0x1734   :  { %v2973_v23 = vpop.f32.mrb[60].mxu1 }
0x1735   :  { %3117 = vxpose.xlu0.b32.start [1/4] (short) (narrow) %v2973_v23, 16  ;;  %v5105_v55 = vpop.f32.mrb[61].mxu1 }
0x1736   :  { %v2976_v60 = vpop.f32.mrb[62].mxu1 }
0x1737   :  { %v5106_v61 = vpop.f32.mrb[63].mxu1  ;;  %v4709_v60 = vld [vmem:[%s6465_s21 + $0x1] ss:$0 sm:$0xff] }
0x1738   :  { %v3019_v28 = vpop.f32.mrb[56].mxu0 }
0x1739   :  { %3118 = vxpose.xlu0.b32.cont [2/4] (short) (narrow) %v3019_v28, 16  ;;  %v5111_v31 = vpop.f32.mrb[57].mxu0 }
0x173a   :  { %v3022_v33 = vpop.f32.mrb[58].mxu0 }
0x173b   :  { %v5112_v63 = vpop.f32.mrb[59].mxu0 }
0x173c   :  { %v3065_v0 = vpop.f32.mrb[64].mxu1  ;;  %v4710_v63 = vld [vmem:[%s6466_s22 + $0x1] ss:$0 sm:$0xff] }
0x173d   :  { %v5117_v1 = vpop.f32.mrb[65].mxu1  ;;  %3119 = vxpose.xlu0.b32.cont [3/4] (short) (narrow) %v3065_v0, 16 }
0x173e   :  { %v3068_v3 = vpop.f32.mrb[66].mxu1 }
0x173f   :  { %v5118_v4 = vpop.f32.mrb[67].mxu1 }
0x1740   :  { %v3111_v5 = vpop.f32.mrb[60].mxu0 }
0x1741   :  { %3120 = vxpose.xlu0.b32.end [4/4] (short) (narrow) %v3111_v5, 16  ;;  %v5123_v11 = vpop.f32.mrb[61].mxu0  ;;  %v4716_v5 = vld [vmem:[%s6456_s12 + $0x1] ss:$0 sm:$0xff] }
0x1742   :  { %v3114_v12 = vpop.f32.mrb[62].mxu0 }
0x1743   :  { %v5124_v14 = vpop.f32.mrb[63].mxu0 }
0x17b5   :  { %v3133_v15 = vpop.trf.xlu0 }
0x17b9   :  { %v3134_v17 = vpop.trf.xlu0 }
0x17ba   :  { %v3149_v24 = vpack.c.bf16 %v3134_v17, %v3133_v15 }
0x17bc   :  { %5130 = vmatmul.mubr.msk.bf16.vlgmr.msra.gmra.mrb[68].mxu1 %vm210_vm4, %v3149_v24 }
0x17bd   :  { %5142 = vmatpush3.bf16.msra.mxu1 %v5382_v21  ;;  %5145 = vmatprep.mubr.msk.bf16.mxu1 %vm5588_vm0, %v5587_v2 }
0x17be   :  { %5143 = vmatprep.subr.bf16.mxu1 %v5587_v2 }
0x17c1   :  { %5144 = vmatpush3.bf16.msra.mxu1 %v5383_v26 }
0x17c2   :  { %5155 = vmatprep.subr.bf16.mxu1 %v5587_v2 }
0x17c4   :  { %5146 = vmatmul.mubr.msk.bf16.vlgmr.msra.gmra.mrb[72].mxu1 %vm210_vm4, %v6109_v9 }
0x17c5   :  { %5157 = vmatprep.mubr.msk.bf16.mxu1 %vm5588_vm0, %v5587_v2 }
0x188f   :  { %v3212_v29 = vpop.f32.mrb[68].mxu1 }
0x1890   :  { %v3213_v30 = vadd.f32 %v4703_v27, %v3212_v29  ;;  %v5131_v32 = vpop.f32.mrb[69].mxu1 }
0x1891   :  { %v3215_v34 = vpop.f32.mrb[70].mxu1 }
0x1892   :  { %v3219_v35 = vadd.f32 %v3213_v30, %v6103_v6  ;;  %v3216_v36 = vadd.f32 %v4703_v27, %v3215_v34  ;;  %v5132_v37 = vpop.f32.mrb[71].mxu1 }
0x1894   :  { %v3220_v38 = vadd.f32 %v3216_v36, %v6105_v8  ;;  %v3225_v39 = vsel %vm210_vm4, %v3219_v35, 0.0  ;;  %v3233_v9 = vmul.f32 %v3219_v35, %v3219_v35 }
0x1895   :  { %3226 = vadd.xlane.f32.xlu1 %v3225_v39 }
0x1896   :  { %v3228_v40 = vsel %vm210_vm4, %v3220_v38, 0.0  ;;  %v3235_v42 = vsel %vm210_vm4, %v3233_v9, 0.0  ;;  %v3234_v6 = vmul.f32 %v3220_v38, %v3220_v38 }
0x1897   :  { %3229 = vadd.xlane.f32.xlu0 %v3228_v40  ;;  %v3400_v19 = vpop.f32.mrb[72].mxu1 }
0x1898   :  { %v5147_v20 = vpop.f32.mrb[73].mxu1  ;;  %v6242_v43 = vadd.f32 %v4725_v41, %v3400_v19  ;;  %v3238_v46 = vsel %vm210_vm4, %v3234_v6, 0.0 }
0x1899   :  { %3236 = vadd.xlane.f32.xlu1 %v3235_v42  ;;  %v3403_v7 = vpop.f32.mrb[74].mxu1 }
0x189a   :  { %v6244_v8 = vadd.f32 %v4725_v41, %v3403_v7  ;;  %v5148_v44 = vpop.f32.mrb[75].mxu1 }
0x189c   :  { %v5353_v45 = vpack.i.bf16 %v6244_v8, %v6242_v43 }
0x189d   :  { %3239 = vadd.xlane.f32.xlu1 %v3238_v46 }
0x18c4   :  { %3439 = vxpose.xlu0.b32.start [1/2] (short) (narrow) %v6242_v43, 32 }
0x18c8   :  { %3440 = vxpose.xlu0.b32.end [2/2] (short) (narrow) %v6244_v8, 32 }
0x1922   :  { %v3227_v48 = vpop.xlane.xlu1 %3226 }
0x1923   :  { %v3231_v49 = vmul.f32 0.03125, %v3227_v48 }
0x1924   :  { %v3230_v10 = vpop.xlane.xlu0 %3229 }
0x1925   :  { %v3243_v16 = vmul.f32 %v3231_v49, %v3231_v49  ;;  %v3232_v18 = vmul.f32 0.03125, %v3230_v10  ;;  %v3247_v23 = vsub.f32 %v3219_v35, %v3231_v49 }
0x1926   :  { %v3237_v13 = vpop.xlane.xlu1 %3236 }
0x1927   :  { %v3241_v50 = vmul.f32 0.03125, %v3237_v13  ;;  %v3244_v52 = vmul.f32 %v3232_v18, %v3232_v18  ;;  %v3248_v61 = vsub.f32 %v3220_v38, %v3232_v18 }
0x1929   :  { %v3245_v51 = vsub.f32 %v3241_v50, %v3243_v16 }
0x192a   :  { %v3240_v22 = vpop.xlane.xlu1 %3239 }
0x192b   :  { %v3249_v54 = vadd.f32 1e-05, %v3245_v51  ;;  %v3242_v56 = vmul.f32 0.03125, %v3240_v22 }
0x192d   :  { %5508 = vrsqrt.f32 %v3249_v54  ;;  %v3246_v57 = vsub.f32 %v3242_v56, %v3244_v52 }
0x192f   :  { %v3250_v53 = vadd.f32 1e-05, %v3246_v57 }
0x1931   :  { %5510 = vrsqrt.f32 %v3250_v53 }
0x1937   :  { %v5509_v55 = vpop.eup %5508 }
0x1938   :  { %v3253_v59 = vmul.f32 %v5509_v55, %v3247_v23 }
0x193a   :  { %v3261_v33 = vmul.f32 %v4709_v60, %v3253_v59 }
0x193b   :  { %v5511_v28 = vpop.eup %5510 }
0x193c   :  { %v3254_v31 = vmul.f32 %v5511_v28, %v3248_v61  ;;  %v6265_v1 = vadd.f32 %v4710_v63, %v3261_v33 }
0x193e   :  { %v3262_v0 = vmul.f32 %v4709_v60, %v3254_v31 }
0x1940   :  { %v6267_v3 = vadd.f32 %v4710_v63, %v3262_v0 }
0x1942   :  { %v3271_v4 = vpack.c.bf16 %v6267_v3, %v6265_v1 }
0x1944   :  { %5138 = vmatmul.mubr.msk.bf16.vlgmr.msra.gmra.mrb[64].mxu0 %vm210_vm4, %v3271_v4  ;;  %v3455_v24 = vpop.trf.xlu0 }
0x1945   :  { %5151 = vmatprep.mubr.msk.bf16.mxu0 %vm5588_vm0, %v5587_v2  ;;  %v3643_v26 = vpack.c.bf16 %v3455_v24, %v3455_v24 }
0x1947   :  { %v3651_v27 = vsel %vm505_vm5, %v3643_v26, 0 }
0x1948   :  { %5150 = vmatpush3.bf16.msra.mxu0 %v3651_v27  ;;  %v3456_v35 = vpop.trf.xlu0 }
0x1949   :  { %5161 = vmatprep.subr.bf16.mxu0 %v5587_v2  ;;  %v3644_v36 = vpack.c.bf16 %v3456_v35, %v3456_v35 }
0x194b   :  { %v3698_v37 = vsel %vm505_vm5, %v3644_v36, 0 }
0x194c   :  { %5156 = vmatpush3.bf16.msra.mxu1 %v3698_v37  ;;  %v3457_v9 = vpop.trf.xlu0 }
0x194d   :  { %5167 = vmatprep.subr.bf16.mxu1 %v5587_v2  ;;  %v3645_v19 = vpack.c.bf16 %v3457_v9, %v3457_v9 }
0x194f   :  { %v3745_v48 = vsel %vm505_vm5, %v3645_v19, 0 }
0x1950   :  { %v3458_v41 = vpop.trf.xlu0 }
0x1951   :  { %v3646_v20 = vpack.c.bf16 %v3458_v41, %v3458_v41 }
0x1953   :  { %v3792_v49 = vsel %vm505_vm5, %v3646_v20, 0 }
0x1a17   :  { %v3334_v11 = vpop.f32.mrb[64].mxu0 }
0x1a18   :  { %v3335_v12 = vadd.f32 %v4716_v5, %v3334_v11  ;;  %v5139_v14 = vpop.f32.mrb[65].mxu0 }
0x1a19   :  { %v3337_v15 = vpop.f32.mrb[66].mxu0 }
0x1a1a   :  { %3407 = vxpose.xlu1.b32.start [1/2] (short) (narrow) %v3335_v12, 32  ;;  %v5140_v17 = vpop.f32.mrb[67].mxu0  ;;  %v3338_v21 = vadd.f32 %v4716_v5, %v3337_v15 }
0x1a1e   :  { %3408 = vxpose.xlu1.b32.end [2/2] (short) (narrow) %v3338_v21, 32 }
0x1a9a   :  { %v3423_v29 = vpop.trf.xlu1 }
0x1a9e   :  { %v3424_v30 = vpop.trf.xlu1 }
0x1a9f   :  { %v5329_v32 = vpack.i.bf16 %v3424_v30, %v3423_v29 }
0x1aa1   :  { %5330 = vxpose.xlu1.b32.start.end [1/1] (short) (narrow) %v5329_v32, 16 }
0x1aa2   :  { %v3425_v34 = vpop.trf.xlu1 }
0x1aa6   :  { %v3426_v38 = vpop.trf.xlu1 }
0x1aa7   :  { %v5341_v39 = vpack.i.bf16 %v3426_v38, %v3425_v34 }
0x1aa9   :  { %5342 = vxpose.xlu1.b32.start.end [1/1] (short) (narrow) %v5341_v39, 16 }
0x1b21   :  { %v5331_v40 = vpop.trf.xlu1 }
0x1b22   :  { %v5335_v42 = vunpack.i.h.bf16 %v5331_v40  ;;  %v5332_v6 = vunpack.i.l.bf16 %v5331_v40 }
0x1b25   :  { %v5336_v7 = vpop.trf.xlu1 }
0x1b26   :  { %v5340_v44 = vunpack.i.h.bf16 %v5336_v7  ;;  %v5337_v46 = vunpack.i.l.bf16 %v5336_v7 }
0x1b28   :  { %v3639_v25 = vpack.c.bf16 %v5337_v46, %v5332_v6  ;;  %v3640_v47 = vpack.c.bf16 %v5340_v44, %v5335_v42 }
0x1b29   :  { %v5343_v10 = vpop.trf.xlu1 }
0x1b2a   :  { %5152 = vmatmul.mubr.msk.bf16.vlgmr.msra.gmra.mrb[68].mxu0 %vm501_vm6, %v3639_v25  ;;  %5158 = vmatmul.mubr.msk.bf16.vlgmr.msra.gmra.mrb[76].mxu1 %vm501_vm6, %v3640_v47  ;;  %v5347_v13 = vunpack.i.h.bf16 %v5343_v10  ;;  %v5344_v16 = vunpack.i.l.bf16 %v5343_v10 }
0x1b2b   :  { %5162 = vmatpush3.bf16.msra.mxu0 %v3745_v48  ;;  %5168 = vmatpush3.bf16.msra.mxu1 %v3792_v49 }
0x1b2c   :  { %5163 = vmatprep.mubr.msk.bf16.mxu0 %vm5588_vm0, %v5587_v2  ;;  %5169 = vmatprep.mubr.msk.bf16.mxu1 %vm5588_vm0, %v5587_v2 }
0x1b2d   :  { %v5348_v18 = vpop.trf.xlu1  ;;  %5173 = vmatprep.subr.bf16.mxu0 %v5587_v2  ;;  %5179 = vmatprep.subr.bf16.mxu1 %v5587_v2 }
0x1b2e   :  { %v5352_v50 = vunpack.i.h.bf16 %v5348_v18  ;;  %v5349_v51 = vunpack.i.l.bf16 %v5348_v18 }
0x1b30   :  { %v3641_v22 = vpack.c.bf16 %v5349_v51, %v5344_v16  ;;  %v3642_v52 = vpack.c.bf16 %v5352_v50, %v5347_v13 }
0x1b32   :  { %5164 = vmatmul.mubr.msk.bf16.vlgmr.msra.gmra.mrb[72].mxu0 %vm501_vm6, %v3641_v22  ;;  %5170 = vmatmul.mubr.msk.bf16.vlgmr.msra.gmra.mrb[80].mxu1 %vm501_vm6, %v3642_v52 }
0x1b33   :  { %5175 = vmatprep.mubr.msk.bf16.mxu0 %vm5588_vm0, %v5587_v2  ;;  %5181 = vmatprep.mubr.msk.bf16.mxu1 %vm5588_vm0, %v5587_v2 }
0x1bfd   :  { %v3687_v54 = vpop.f32.mrb[68].mxu0  ;;  %v3734_v56 = vpop.f32.mrb[76].mxu1 }
0x1bfe   :  { %v3688_v57 = vadd.f32 %v6153_v58, %v3687_v54  ;;  %v5153_v53 = vpop.f32.mrb[69].mxu0  ;;  %v5159_v23 = vpop.f32.mrb[77].mxu1  ;;  %v3735_v33 = vadd.f32 %v6153_v58, %v3734_v56 }
0x1bff   :  { %v3690_v55 = vpop.f32.mrb[70].mxu0  ;;  %v3737_v59 = vpop.f32.mrb[78].mxu1 }
0x1c00   :  { %v3691_v60 = vadd.f32 %v6160_v62, %v3690_v55  ;;  %v5154_v61 = vpop.f32.mrb[71].mxu0  ;;  %v5160_v28 = vpop.f32.mrb[79].mxu1  ;;  %v3835_v31 = vsel %vm691_vm7, %v3688_v57, -inf  ;;  %v3738_v5 = vadd.f32 %v6160_v62, %v3737_v59  ;;  %v3841_v15 = vsel %vm691_vm7, %v3735_v33, -inf }
0x1c01   :  { %3836 = vmax.xlane.f32.xlu0 %v3835_v31 }
0x1c02   :  { %v3838_v63 = vsel %vm691_vm7, %v3691_v60, -inf  ;;  %v3844_v32 = vsel %vm691_vm7, %v3738_v5, -inf }
0x1c03   :  { %3839 = vmax.xlane.f32.xlu1 %v3838_v63 }
0x1c05   :  { %v3781_v0 = vpop.f32.mrb[72].mxu0  ;;  %v3828_v4 = vpop.f32.mrb[80].mxu1 }
0x1c06   :  { %v3782_v11 = vadd.f32 %v6153_v58, %v3781_v0  ;;  %v3829_v12 = vadd.f32 %v6153_v58, %v3828_v4  ;;  %v5171_v14 = vpop.f32.mrb[81].mxu1  ;;  %v5165_v17 = vpop.f32.mrb[73].mxu0 }
0x1c07   :  { %3842 = vmax.xlane.f32.xlu1 %v3841_v15  ;;  %v3784_v21 = vpop.f32.mrb[74].mxu0  ;;  %v3831_v24 = vpop.f32.mrb[82].mxu1 }
0x1c08   :  { %v5172_v26 = vpop.f32.mrb[83].mxu1  ;;  %v3847_v27 = vsel %vm691_vm7, %v3782_v11, -inf  ;;  %v5166_v29 = vpop.f32.mrb[75].mxu0  ;;  %v3785_v30 = vadd.f32 %v6160_v62, %v3784_v21  ;;  %v3853_v34 = vsel %vm691_vm7, %v3829_v12, -inf  ;;  %v3832_v58 = vadd.f32 %v6160_v62, %v3831_v24 }
0x1c09   :  { %3848 = vmax.xlane.f32.xlu0 %v3847_v27 }
0x1c0a   :  { %v3850_v35 = vsel %vm691_vm7, %v3785_v30, -inf  ;;  %v3856_v36 = vsel %vm691_vm7, %v3832_v58, -inf }
0x1c0b   :  { %3845 = vmax.xlane.f32.xlu1 %v3844_v32 }
0x1c0d   :  { %3854 = vmax.xlane.f32.xlu0 %v3853_v34 }
0x1c0f   :  { %3851 = vmax.xlane.f32.xlu1 %v3850_v35 }
0x1c13   :  { %3857 = vmax.xlane.f32.xlu1 %v3856_v36 }
0x1c23   :  { %5354 = vrot.lane.b32.xlu0 %v5353_v45, %s5589_s11  ;;  %s6505_s11 = sld [smem:[#allocation11_spill]] }
0x1c8e   :  { %v3837_v37 = vpop.xlane.xlu0 %3836 }
0x1c8f   :  { %v3859_v38 = vsub.f32 %v3688_v57, %v3837_v37 }
0x1c90   :  { %v3840_v39 = vpop.xlane.xlu1 %3839 }
0x1c91   :  { %v3867_v9 = vmul.f32 1.442695, %v3859_v38  ;;  %v3860_v40 = vsub.f32 %v3691_v60, %v3840_v39 }
0x1c93   :  { %5512 = vpow2.f32 %v3867_v9  ;;  %v3869_v41 = vmul.f32 1.442695, %v3860_v40 }
0x1c94   :  { %v3843_v19 = vpop.xlane.xlu1 %3842 }
0x1c95   :  { %5514 = vpow2.f32 %v3869_v41  ;;  %v3861_v62 = vsub.f32 %v3735_v33, %v3843_v19 }
0x1c96   :  { %v3849_v20 = vpop.xlane.xlu0 %3848 }
0x1c97   :  { %v3871_v42 = vmul.f32 1.442695, %v3861_v62  ;;  %v3863_v6 = vsub.f32 %v3782_v11, %v3849_v20 }
0x1c98   :  { %v3846_v7 = vpop.xlane.xlu1 %3845 }
0x1c99   :  { %5516 = vpow2.f32 %v3871_v42  ;;  %v3862_v44 = vsub.f32 %v3738_v5, %v3846_v7  ;;  %v3875_v43 = vmul.f32 1.442695, %v3863_v6 }
0x1c9a   :  { %v3855_v46 = vpop.xlane.xlu0 %3854 }
0x1c9b   :  { %v3873_v25 = vmul.f32 1.442695, %v3862_v44  ;;  %v3865_v47 = vsub.f32 %v3829_v12, %v3855_v46 }
0x1c9c   :  { %v3852_v8 = vpop.xlane.xlu1 %3851 }
0x1c9d   :  { %v5513_v45 = vpop.eup %5512  ;;  %5518 = vpow2.f32 %v3873_v25  ;;  %v3864_v48 = vsub.f32 %v3785_v30, %v3852_v8  ;;  %v3879_v18 = vmul.f32 1.442695, %v3865_v47 }
0x1c9e   :  { %v3883_v49 = vsel %vm691_vm7, %v5513_v45, 0.0  ;;  %5520 = vpow2.f32 %v3875_v43  ;;  %v5355_v33 = vpop.permute.xlu0 %5354 }
0x1c9f   :  { %v5515_v10 = vpop.eup %5514  ;;  %v3877_v13 = vmul.f32 1.442695, %v3864_v48  ;;  %3884 = vadd.xlane.f32.xlu1 %v3883_v49  ;;  %v5356_v63 = vunpack.i.l.bf16 %v5355_v33  ;;  %v5357_v0 = vunpack.i.h.bf16 %v5355_v33 }
0x1ca0   :  { %v3858_v16 = vpop.xlane.xlu1 %3857  ;;  %v3886_v51 = vsel %vm691_vm7, %v5515_v10, 0.0 }
0x1ca1   :  { %5522 = vpow2.f32 %v3877_v13  ;;  %v3866_v50 = vsub.f32 %v3832_v58, %v3858_v16  ;;  %v5386_v13 = vld [vmem:[%s6459_s15 + $0x10] sm:$0xff]  }
0x1ca2   :  { %5524 = vpow2.f32 %v3879_v18 }
0x1ca3   :  { %v5517_v22 = vpop.eup %5516  ;;  %3887 = vadd.xlane.f32.xlu1 %v3886_v51  ;;  %v3881_v52 = vmul.f32 1.442695, %v3866_v50  ;;  %v5387_v50 = vld [vmem:[%s6459_s15 + $0x18] sm:$0xff]  }
0x1ca4   :  { %v3889_v54 = vsel %vm691_vm7, %v5517_v22, 0.0 }
0x1ca5   :  { %5526 = vpow2.f32 %v3881_v52 }
0x1ca7   :  { %v5519_v56 = vpop.eup %5518  ;;  %3890 = vadd.xlane.f32.xlu1 %v3889_v54 }
0x1ca8   :  { %v5521_v57 = vpop.eup %5520  ;;  %v3892_v53 = vsel %vm691_vm7, %v5519_v56, 0.0 }
0x1ca9   :  { %v3895_v59 = vsel %vm691_vm7, %v5521_v57, 0.0 }
0x1cab   :  { %v5523_v23 = vpop.eup %5522  ;;  %3893 = vadd.xlane.f32.xlu1 %v3892_v53 }
0x1cac   :  { %v3898_v55 = vsel %vm691_vm7, %v5523_v23, 0.0  ;;  %v5525_v60 = vpop.eup %5524 }
0x1cad   :  { %3899 = vadd.xlane.f32.xlu0 %v3898_v55  ;;  %v3901_v61 = vsel %vm691_vm7, %v5525_v60, 0.0 }
0x1caf   :  { %3896 = vadd.xlane.f32.xlu1 %v3895_v59  ;;  %v5527_v28 = vpop.eup %5526 }
0x1cb0   :  { %v3904_v31 = vsel %vm691_vm7, %v5527_v28, 0.0 }
0x1cb3   :  { %3902 = vadd.xlane.f32.xlu1 %v3901_v61 }
0x1cb7   :  { %3905 = vadd.xlane.f32.xlu1 %v3904_v31 }
0x1cea   :  { %3479 = vxpose.xlu1.b32.start [1/2] (short) (narrow) %v5356_v63, 32 }
0x1cee   :  { %3480 = vxpose.xlu1.b32.end [2/2] (short) (narrow) %v5357_v0, 32 }
0x1d2c   :  { %v3885_v4 = vpop.xlane.xlu1 %3884 }
0x1d2d   :  { %5528 = vrcp.f32 %v3885_v4  ;;  %v4742_v4 = vld [vmem:[%s6460_s16 + $0x1] ss:$0 sm:$0xff] }
0x1d30   :  { %v3888_v5 = vpop.xlane.xlu1 %3887 }
0x1d31   :  { %5530 = vrcp.f32 %v3888_v5 }
0x1d34   :  { %v3891_v11 = vpop.xlane.xlu1 %3890 }
0x1d35   :  { %5532 = vrcp.f32 %v3891_v11 }
0x1d37   :  { %v5529_v14 = vpop.eup %5528 }
0x1d38   :  { %v3894_v12 = vpop.xlane.xlu1 %3893  ;;  %v3915_v17 = vmul.f32 %v5529_v14, %v5513_v45 }
0x1d39   :  { %5534 = vrcp.f32 %v3894_v12 }
0x1d3a   :  { %v3900_v37 = vpop.xlane.xlu0 %3899 }
0x1d3b   :  { %v5531_v15 = vpop.eup %5530 }
0x1d3c   :  { %v3916_v21 = vmul.f32 %v5531_v15, %v5515_v10  ;;  %v3897_v35 = vpop.xlane.xlu1 %3896 }
0x1d3d   :  { %5536 = vrcp.f32 %v3897_v35 }
0x1d3e   :  { %v3927_v24 = vpack.c.bf16 %v3916_v21, %v3915_v17  ;;  %5538 = vrcp.f32 %v3900_v37 }
0x1d3f   :  { %v5533_v27 = vpop.eup %5532 }
0x1d40   :  { %v3935_v26 = vsel %vm691_vm7, %v3927_v24, 0  ;;  %v3917_v30 = vmul.f32 %v5533_v27, %v5517_v22  ;;  %v3903_v36 = vpop.xlane.xlu1 %3902 }
0x1d41   :  { %5174 = vmatpush3.bf16.xpose.msra.mxu0 %v3935_v26 }
0x1d42   :  { %5185 = vmatprep.subr.bf16.mxu0 %v5587_v2 }
0x1d43   :  { %v5535_v29 = vpop.eup %5534 }
0x1d44   :  { %v3918_v32 = vmul.f32 %v5535_v29, %v5519_v56  ;;  %v3906_v38 = vpop.xlane.xlu1 %3905 }
0x1d45   :  { %5540 = vrcp.f32 %v3906_v38 }
0x1d46   :  { %v3928_v34 = vpack.c.bf16 %v3918_v32, %v3917_v30  ;;  %5542 = vrcp.f32 %v3903_v36 }
0x1d47   :  { %v5537_v39 = vpop.eup %5536 }
0x1d48   :  { %v3981_v58 = vsel %vm691_vm7, %v3928_v34, 0  ;;  %v5539_v9 = vpop.eup %5538  ;;  %v3919_v40 = vmul.f32 %v5537_v39, %v5521_v57 }
0x1d49   :  { %5180 = vmatpush3.bf16.xpose.msra.mxu1 %v3981_v58  ;;  %v3920_v19 = vmul.f32 %v5539_v9, %v5523_v23 }
0x1d4a   :  { %5191 = vmatprep.subr.bf16.mxu1 %v5587_v2 }
0x1d4b   :  { %v3929_v20 = vpack.c.bf16 %v3920_v19, %v3919_v40 }
0x1d4d   :  { %v4027_v46 = vsel %vm691_vm7, %v3929_v20, 0 }
0x1d4f   :  { %v5541_v41 = vpop.eup %5540 }
0x1d50   :  { %v5543_v62 = vpop.eup %5542  ;;  %v3922_v42 = vmul.f32 %v5541_v41, %v5527_v28 }
0x1d51   :  { %v3921_v44 = vmul.f32 %v5543_v62, %v5525_v60 }
0x1d53   :  { %v3930_v25 = vpack.c.bf16 %v3922_v42, %v3921_v44 }
0x1d55   :  { %v4073_v45 = vsel %vm691_vm7, %v3930_v25, 0  ;;  %v4748_v25 = vld [vmem:[%s6467_s23 + $0x1] ss:$0 sm:$0xff] }
0x1d6a   :  { %v3495_v6 = vpop.trf.xlu1 }
0x1d6b   :  { %v3923_v7 = vpack.c.bf16 %v3495_v6, %v3495_v6 }
0x1d6d   :  { %5176 = vmatmul.mubr.msk.bf16.vlgmr.msra.gmra.mrb[76].mxu0 %vm691_vm7, %v3923_v7 }
0x1d6e   :  { %5186 = vmatpush3.bf16.xpose.msra.mxu0 %v4027_v46  ;;  %v3496_v43 = vpop.trf.xlu1  ;;  %5187 = vmatprep.mubr.msk.bf16.mxu0 %vm5588_vm0, %v5587_v2 }
0x1d6f   :  { %v3924_v8 = vpack.c.bf16 %v3496_v43, %v3496_v43  ;;  %5197 = vmatprep.subr.bf16.mxu0 %v5587_v2 }
0x1d71   :  { %5182 = vmatmul.mubr.msk.bf16.vlgmr.msra.gmra.mrb[84].mxu1 %vm691_vm7, %v3924_v8 }
0x1d72   :  { %5192 = vmatpush3.bf16.xpose.msra.mxu1 %v4073_v45  ;;  %v3497_v47 = vpop.trf.xlu1  ;;  %5193 = vmatprep.mubr.msk.bf16.mxu1 %vm5588_vm0, %v5587_v2 }
0x1d73   :  { %v3925_v48 = vpack.c.bf16 %v3497_v47, %v3497_v47  ;;  %5205 = vmatprep.subr.bf16.mxu1 %v5587_v2 }
0x1d75   :  { %5188 = vmatmul.mubr.msk.bf16.vlgmr.msra.gmra.mrb[80].mxu0 %vm691_vm7, %v3925_v48  ;;  %v4749_v48 = vld [vmem:[%s6468_s24 + $0x1] ss:$0 sm:$0xff] }
0x1d76   :  { %v3498_v49 = vpop.trf.xlu1  ;;  %5201 = vmatprep.mubr.msk.bf16.mxu0 %vm5588_vm0, %v5587_v2  ;;  %5198 = vmatpush3.bf16.msra.mxu0 %v5386_v13 }
0x1d77   :  { %v3926_v10 = vpack.c.bf16 %v3498_v49, %v3498_v49  ;;  %5199 = vmatprep.subr.bf16.mxu0 %v5587_v2 }
0x1d79   :  { %5194 = vmatmul.mubr.msk.bf16.vlgmr.msra.gmra.mrb[88].mxu1 %vm691_vm7, %v3926_v10 }
0x1d7a   :  { %5209 = vmatprep.mubr.msk.bf16.mxu1 %vm5588_vm0, %v5587_v2  ;;  %5200 = vmatpush3.bf16.msra.mxu0 %v5387_v50  ;;  %v5391_v50 = vld [vmem:[%s6463_s19 + $0x28] sm:$0xff]  }
0x1d7b   :  { %5213 = vmatprep.subr.bf16.mxu0 %v5587_v2 }
0x1e40   :  { %v3971_v16 = vpop.f32.mrb[76].mxu0 }
0x1e41   :  { %4115 = vxpose.xlu0.b32.start [1/4] (short) (narrow) %v3971_v16, 16  ;;  %v5177_v18 = vpop.f32.mrb[77].mxu0 }
0x1e42   :  { %v3974_v51 = vpop.f32.mrb[78].mxu0  ;;  %v5390_v18 = vld [vmem:[%s6463_s19 + $0x20] sm:$0xff]  }
0x1e43   :  { %v5178_v22 = vpop.f32.mrb[79].mxu0  ;;  %v5392_v51 = vld [vmem:[%s6463_s19 + $0x30] sm:$0xff]  }
0x1e44   :  { %v4017_v52 = vpop.f32.mrb[84].mxu1  ;;  %v5393_v22 = vld [vmem:[%s6463_s19 + $0x38] sm:$0xff]  }
0x1e45   :  { %v5183_v54 = vpop.f32.mrb[85].mxu1  ;;  %4116 = vxpose.xlu0.b32.cont [2/4] (short) (narrow) %v4017_v52, 16  ;;  %v4755_v52 = vld [vmem:[%s6462_s18 + $0x1] ss:$0 sm:$0xff] }
0x1e46   :  { %v4020_v56 = vpop.f32.mrb[86].mxu1 }
0x1e47   :  { %v5184_v57 = vpop.f32.mrb[87].mxu1 }
0x1e48   :  { %v4063_v53 = vpop.f32.mrb[80].mxu0 }
0x1e49   :  { %4117 = vxpose.xlu0.b32.cont [3/4] (short) (narrow) %v4063_v53, 16  ;;  %v5189_v23 = vpop.f32.mrb[81].mxu0 }
0x1e4a   :  { %v4066_v55 = vpop.f32.mrb[82].mxu0 }
0x1e4b   :  { %v5190_v59 = vpop.f32.mrb[83].mxu0 }
0x1e4c   :  { %v4109_v60 = vpop.f32.mrb[88].mxu1 }
0x1e4d   :  { %v5195_v61 = vpop.f32.mrb[89].mxu1  ;;  %4118 = vxpose.xlu0.b32.end [4/4] (short) (narrow) %v4109_v60, 16 }
0x1e4e   :  { %v4112_v28 = vpop.f32.mrb[90].mxu1 }
0x1e4f   :  { %v5196_v31 = vpop.f32.mrb[91].mxu1 }
0x1ec1   :  { %v4131_v33 = vpop.trf.xlu0 }
0x1ec5   :  { %v4132_v63 = vpop.trf.xlu0 }
0x1ec6   :  { %v4147_v0 = vpack.c.bf16 %v4132_v63, %v4131_v33 }
0x1ec8   :  { %5202 = vmatmul.mubr.msk.bf16.vlgmr.msra.gmra.mrb[84].mxu0 %vm210_vm4, %v4147_v0 }
0x1ec9   :  { %5221 = vmatprep.mubr.msk.bf16.mxu0 %vm5588_vm0, %v5587_v2  ;;  %5214 = vmatpush3.bf16.msra.mxu0 %v5390_v18  ;;  %v4777_v18 = vld [vmem:[%s6470_s26 + $0x1] ss:$0 sm:$0xff] }
0x1eca   :  { %5215 = vmatprep.subr.bf16.mxu0 %v5587_v2 }
0x1ecd   :  { %5216 = vmatpush3.bf16.msra.mxu0 %v5391_v50 }
0x1ece   :  { %5217 = vmatprep.subr.bf16.mxu0 %v5587_v2 }
0x1ed1   :  { %5218 = vmatpush3.bf16.msra.mxu0 %v5392_v51 }
0x1ed2   :  { %5219 = vmatprep.subr.bf16.mxu0 %v5587_v2 }
0x1ed5   :  { %5220 = vmatpush3.bf16.msra.mxu0 %v5393_v22 }
0x1f9b   :  { %v4210_v5 = vpop.f32.mrb[84].mxu0 }
0x1f9c   :  { %v4211_v11 = vadd.f32 %v4742_v4, %v4210_v5  ;;  %v5203_v12 = vpop.f32.mrb[85].mxu0 }
0x1f9d   :  { %v4213_v14 = vpop.f32.mrb[86].mxu0 }
0x1f9e   :  { %v4217_v15 = vadd.f32 %v4211_v11, %v6265_v1  ;;  %v4214_v17 = vadd.f32 %v4742_v4, %v4213_v14  ;;  %v5204_v21 = vpop.f32.mrb[87].mxu0  ;;  %v5388_v1 = vld [vmem:[%s6461_s17 + $0x10] sm:$0xff]  }
0x1f9f   :  { %5206 = vmatpush3.bf16.msra.mxu1 %v5388_v1 }
0x1fa0   :  { %v4218_v24 = vadd.f32 %v4214_v17, %v6267_v3  ;;  %v4223_v26 = vsel %vm210_vm4, %v4217_v15, 0.0  ;;  %v4231_v27 = vmul.f32 %v4217_v15, %v4217_v15  ;;  %v5389_v3 = vld [vmem:[%s6461_s17 + $0x18] sm:$0xff]   ;;  %5207 = vmatprep.subr.bf16.mxu1 %v5587_v2  ;;  %s6507_s17 = sld [smem:[#allocation10_spill]] }
0x1fa1   :  { %4224 = vadd.xlane.f32.xlu1 %v4223_v26 }
0x1fa2   :  { %v4226_v29 = vsel %vm210_vm4, %v4218_v24, 0.0  ;;  %v4233_v30 = vsel %vm210_vm4, %v4231_v27, 0.0  ;;  %v4232_v32 = vmul.f32 %v4218_v24, %v4218_v24 }
0x1fa3   :  { %4227 = vadd.xlane.f32.xlu0 %v4226_v29  ;;  %5208 = vmatpush3.bf16.msra.mxu1 %v5389_v3  ;;  %v4768_v29 = vld [vmem:[%s6464_s20 + $0x1] ss:$0 sm:$0xff] }
0x1fa4   :  { %v4236_v34 = vsel %vm210_vm4, %v4232_v32, 0.0  ;;  %5225 = vmatprep.subr.bf16.mxu1 %v5587_v2 }
0x1fa5   :  { %4234 = vadd.xlane.f32.xlu1 %v4233_v30 }
0x1fa9   :  { %4237 = vadd.xlane.f32.xlu1 %v4236_v34 }
0x202e   :  { %v4225_v58 = vpop.xlane.xlu1 %4224 }
0x202f   :  { %v4229_v35 = vmul.f32 0.03125, %v4225_v58 }
0x2030   :  { %v4228_v36 = vpop.xlane.xlu0 %4227 }
0x2031   :  { %v4241_v38 = vmul.f32 %v4229_v35, %v4229_v35  ;;  %v4230_v39 = vmul.f32 0.03125, %v4228_v36  ;;  %v4245_v7 = vsub.f32 %v4217_v15, %v4229_v35 }
0x2032   :  { %v4235_v37 = vpop.xlane.xlu1 %4234 }
0x2033   :  { %v4239_v9 = vmul.f32 0.03125, %v4235_v37  ;;  %v4242_v19 = vmul.f32 %v4230_v39, %v4230_v39  ;;  %v4246_v43 = vsub.f32 %v4218_v24, %v4230_v39 }
0x2035   :  { %v4243_v40 = vsub.f32 %v4239_v9, %v4241_v38 }
0x2036   :  { %v4238_v41 = vpop.xlane.xlu1 %4237 }
0x2037   :  { %v4247_v62 = vadd.f32 1e-05, %v4243_v40  ;;  %v4240_v20 = vmul.f32 0.03125, %v4238_v41 }
0x2039   :  { %5544 = vrsqrt.f32 %v4247_v62  ;;  %v4244_v42 = vsub.f32 %v4240_v20, %v4242_v19 }
0x203b   :  { %v4248_v6 = vadd.f32 1e-05, %v4244_v42 }
0x203d   :  { %5546 = vrsqrt.f32 %v4248_v6 }
0x2043   :  { %v5545_v44 = vpop.eup %5544 }
0x2044   :  { %v4251_v46 = vmul.f32 %v5545_v44, %v4245_v7 }
0x2046   :  { %v4259_v47 = vmul.f32 %v4748_v25, %v4251_v46 }
0x2047   :  { %v5547_v8 = vpop.eup %5546 }
0x2048   :  { %v4252_v45 = vmul.f32 %v5547_v8, %v4246_v43  ;;  %v4267_v10 = vadd.f32 %v4749_v48, %v4259_v47 }
0x204a   :  { %v4260_v49 = vmul.f32 %v4748_v25, %v4252_v45 }
0x204c   :  { %v4268_v13 = vadd.f32 %v4749_v48, %v4260_v49 }
0x204e   :  { %v4269_v16 = vpack.c.bf16 %v4268_v13, %v4267_v10 }
0x2050   :  { %5210 = vmatmul.mubr.msk.bf16.vlgmr.msra.gmra.mrb[92].mxu1 %vm210_vm4, %v4269_v16 }
0x2051   :  { %5229 = vmatprep.mubr.msk.bf16.mxu1 %vm5588_vm0, %v5587_v2 }
0x2123   :  { %v4332_v54 = vpop.f32.mrb[92].mxu1 }
0x2124   :  { %v4333_v56 = vadd.f32 %v4755_v52, %v4332_v54  ;;  %v5211_v57 = vpop.f32.mrb[93].mxu1 }
0x2125   :  { %v4335_v53 = vpop.f32.mrb[94].mxu1 }
0x2126   :  { %v4341_v23 = vmul.f32 0.044715, %v4333_v56  ;;  %v4336_v55 = vadd.f32 %v4755_v52, %v4335_v53  ;;  %v5212_v59 = vpop.f32.mrb[95].mxu1  ;;  %v4339_v15 = vmul.f32 0.5, %v4333_v56 }
0x2128   :  { %v4343_v60 = vmul.f32 %v4341_v23, %v4333_v56  ;;  %v4342_v61 = vmul.f32 0.044715, %v4336_v55  ;;  %v4340_v17 = vmul.f32 0.5, %v4336_v55 }
0x212a   :  { %v4345_v28 = vmul.f32 %v4343_v60, %v4333_v56  ;;  %v4344_v31 = vmul.f32 %v4342_v61, %v4336_v55 }
0x212c   :  { %v4347_v33 = vadd.f32 %v4345_v28, %v4333_v56  ;;  %v4346_v63 = vmul.f32 %v4344_v31, %v4336_v55  ;;  %v5394_v28 = vld [vmem:[%s6505_s11] sm:$0xff]   ;;  %v5395_v31 = vld [vmem:[%s6505_s11 + $0x8] sm:$0xff]  }
0x212d   :  { %5226 = vmatpush3.bf16.msra.mxu1 %v5394_v28 }
0x212e   :  { %v4349_v0 = vmul.f32 0.7978846, %v4347_v33  ;;  %v4348_v4 = vadd.f32 %v4346_v63, %v4336_v55  ;;  %5227 = vmatprep.subr.bf16.mxu1 %v5587_v2 }
0x2130   :  { %5548 = vtanh.f32 %v4349_v0  ;;  %v4350_v5 = vmul.f32 0.7978846, %v4348_v4 }
0x2131   :  { %5228 = vmatpush3.bf16.msra.mxu1 %v5395_v31 }
0x2132   :  { %5550 = vtanh.f32 %v4350_v5 }
0x213a   :  { %v5549_v11 = vpop.eup %5548 }
0x213b   :  { %v4353_v12 = vadd.f32 1.0, %v5549_v11 }
0x213c   :  { %v5551_v14 = vpop.eup %5550 }
0x213d   :  { %v4354_v21 = vadd.f32 1.0, %v5551_v14  ;;  %v4355_v24 = vmul.f32 %v4353_v12, %v4339_v15 }
0x213f   :  { %v4356_v26 = vmul.f32 %v4354_v21, %v4340_v17 }
0x2141   :  { %v4357_v27 = vpack.c.bf16 %v4356_v26, %v4355_v24 }
0x2143   :  { %5222 = vmatmul.mubr.msk.bf16.vlgmr.msra.gmra.mrb[88].mxu0 %vm141_vm3, %v4357_v27 }
0x2216   :  { %v4436_v30 = vpop.f32.mrb[88].mxu0 }
0x2217   :  { %v4437_v32 = vadd.f32 %v4768_v29, %v4436_v30  ;;  %v5223_v34 = vpop.f32.mrb[89].mxu0 }
0x2218   :  { %v4439_v1 = vpop.f32.mrb[90].mxu0 }
0x2219   :  { %v4443_v3 = vadd.f32 %v4437_v32, %v4267_v10  ;;  %v4440_v58 = vadd.f32 %v4768_v29, %v4439_v1  ;;  %v5224_v35 = vpop.f32.mrb[91].mxu0  ;;  %v4778_v32 = vld [vmem:[%s6506_s6] ss:$0 sm:$0xff] }
0x221a   :  { %v4779_v35 = vld [vmem:[%s6507_s17] ss:$0 sm:$0xff] }
0x221b   :  { %v4444_v36 = vadd.f32 %v4440_v58, %v4268_v13  ;;  %v4449_v37 = vsel %vm210_vm4, %v4443_v3, 0.0  ;;  %v4457_v39 = vmul.f32 %v4443_v3, %v4443_v3  ;;  %v4776_v13 = vld [vmem:[%s6469_s25 + $0x1] ss:$0 sm:$0xff] }
0x221c   :  { %4450 = vadd.xlane.f32.xlu1 %v4449_v37 }
0x221d   :  { %v4452_v38 = vsel %vm210_vm4, %v4444_v36, 0.0  ;;  %v4459_v9 = vsel %vm210_vm4, %v4457_v39, 0.0  ;;  %v4458_v40 = vmul.f32 %v4444_v36, %v4444_v36 }
0x221f   :  { %v4462_v41 = vsel %vm210_vm4, %v4458_v40, 0.0 }
0x2220   :  { %4453 = vadd.xlane.f32.xlu1 %v4452_v38 }
0x2224   :  { %4460 = vadd.xlane.f32.xlu1 %v4459_v9 }
0x2228   :  { %4463 = vadd.xlane.f32.xlu1 %v4462_v41 }
0x22a9   :  { %v4451_v19 = vpop.xlane.xlu1 %4450 }
0x22aa   :  { %v4455_v20 = vmul.f32 0.03125, %v4451_v19 }
0x22ac   :  { %v4467_v6 = vmul.f32 %v4455_v20, %v4455_v20  ;;  %v4471_v49 = vsub.f32 %v4443_v3, %v4455_v20 }
0x22ad   :  { %v4454_v62 = vpop.xlane.xlu1 %4453 }
0x22ae   :  { %v4456_v7 = vmul.f32 0.03125, %v4454_v62 }
0x22b0   :  { %v4468_v43 = vmul.f32 %v4456_v7, %v4456_v7  ;;  %v4472_v50 = vsub.f32 %v4444_v36, %v4456_v7 }
0x22b1   :  { %v4461_v42 = vpop.xlane.xlu1 %4460 }
0x22b2   :  { %v4465_v44 = vmul.f32 0.03125, %v4461_v42 }
0x22b4   :  { %v4469_v46 = vsub.f32 %v4465_v44, %v4467_v6 }
0x22b5   :  { %v4464_v25 = vpop.xlane.xlu1 %4463 }
0x22b6   :  { %v4473_v8 = vadd.f32 1e-05, %v4469_v46  ;;  %v4466_v45 = vmul.f32 0.03125, %v4464_v25 }
0x22b8   :  { %5552 = vrsqrt.f32 %v4473_v8  ;;  %v4470_v47 = vsub.f32 %v4466_v45, %v4468_v43 }
0x22ba   :  { %v4474_v48 = vadd.f32 1e-05, %v4470_v47 }
0x22bc   :  { %5554 = vrsqrt.f32 %v4474_v48 }
0x22c2   :  { %v5553_v10 = vpop.eup %5552 }
0x22c3   :  { %v4477_v16 = vmul.f32 %v5553_v10, %v4471_v49 }
0x22c5   :  { %v4485_v51 = vmul.f32 %v4776_v13, %v4477_v16 }
0x22c6   :  { %v5555_v22 = vpop.eup %5554 }
0x22c7   :  { %v4493_v52 = vadd.f32 %v4777_v18, %v4485_v51  ;;  %v4478_v54 = vmul.f32 %v5555_v22, %v4472_v50 }
0x22c9   :  { %v4497_v56 = vsel %vm210_vm4, %v4493_v52, 0.0  ;;  %v4505_v57 = vmul.f32 %v4493_v52, %v4493_v52  ;;  %v4486_v53 = vmul.f32 %v4776_v13, %v4478_v54 }
0x22ca   :  { %4498 = vadd.xlane.f32.xlu0 %v4497_v56 }
0x22cb   :  { %v4494_v23 = vadd.f32 %v4777_v18, %v4486_v53  ;;  %v4507_v55 = vsel %vm210_vm4, %v4505_v57, 0.0 }
0x22cd   :  { %v4500_v59 = vsel %vm210_vm4, %v4494_v23, 0.0  ;;  %v4506_v60 = vmul.f32 %v4494_v23, %v4494_v23 }
0x22ce   :  { %4508 = vadd.xlane.f32.xlu0 %v4507_v55  ;;  %4501 = vadd.xlane.f32.xlu1 %v4500_v59 }
0x22cf   :  { %v4510_v61 = vsel %vm210_vm4, %v4506_v60, 0.0 }
0x22d2   :  { %4511 = vadd.xlane.f32.xlu1 %v4510_v61 }
0x2357   :  { %v4499_v33 = vpop.xlane.xlu0 %4498 }
0x2358   :  { %v4503_v63 = vmul.f32 0.03125, %v4499_v33 }
0x235a   :  { %v4515_v5 = vmul.f32 %v4503_v63, %v4503_v63  ;;  %v4519_v29 = vsub.f32 %v4493_v52, %v4503_v63 }
0x235b   :  { %v4509_v0 = vpop.xlane.xlu0 %4508  ;;  %v4502_v4 = vpop.xlane.xlu1 %4501 }
0x235c   :  { %v4513_v11 = vmul.f32 0.03125, %v4509_v0  ;;  %v4504_v12 = vmul.f32 0.03125, %v4502_v4 }
0x235e   :  { %v4517_v14 = vsub.f32 %v4513_v11, %v4515_v5  ;;  %v4516_v21 = vmul.f32 %v4504_v12, %v4504_v12  ;;  %v4520_v34 = vsub.f32 %v4494_v23, %v4504_v12 }
0x235f   :  { %v4512_v15 = vpop.xlane.xlu1 %4511 }
0x2360   :  { %v4521_v17 = vadd.f32 1e-05, %v4517_v14  ;;  %v4514_v24 = vmul.f32 0.03125, %v4512_v15 }
0x2362   :  { %5556 = vrsqrt.f32 %v4521_v17  ;;  %v4518_v26 = vsub.f32 %v4514_v24, %v4516_v21 }
0x2364   :  { %v4522_v27 = vadd.f32 1e-05, %v4518_v26 }
0x2366   :  { %5558 = vrsqrt.f32 %v4522_v27 }
0x236c   :  { %v5557_v30 = vpop.eup %5556 }
0x236d   :  { %v4525_v2 = vmul.f32 %v5557_v30, %v4519_v29 }
0x236f   :  { %v4533_v3 = vmul.f32 %v4778_v32, %v4525_v2 }
0x2370   :  { %v5559_v1 = vpop.eup %5558 }
0x2371   :  { %v4526_v58 = vmul.f32 %v5559_v1, %v4520_v34  ;;  %v4541_v37 = vadd.f32 %v4779_v35, %v4533_v3 }
0x2373   :  { %v4534_v36 = vmul.f32 %v4778_v32, %v4526_v58 }
0x2375   :  { %v4542_v38 = vadd.f32 %v4779_v35, %v4534_v36 }
0x2377   :  { %v4543_v39 = vpack.c.bf16 %v4542_v38, %v4541_v37 }
0x2379   :  { %5230 = vmatmul.mubr.msk.bf16.vlgmr.msra.gmra.mrb[96].mxu1 %vm210_vm4, %v4543_v39 }
0x244c   :  { %v4597_v9 = vpop.f32.mrb[96].mxu1 }
0x244d   :  { %4604 = vst [vmem:[#allocation2] sm:$0xff] %v4597_v9  ;;  %v5231_v40 = vpop.f32.mrb[97].mxu1 }
0x244e   :  { %v4600_v41 = vpop.f32.mrb[98].mxu1 }
0x244f   :  { %4605 = vst [vmem:[#allocation2 + $0x8] sm:$0xff] %v4600_v41  ;;  %v5232_v19 = vpop.f32.mrb[99].mxu1 }
0x2450   :  { %5573 = shalt.err (!%p5570_p4)
}
0x2451   :  { %s5574_s23 = scalar_lea.hbm %s6471_s27, 256 }
0x2452   :  { %p5575_p5 = scmp.ne.s32.totalorder %s6471_s27, %s5574_s23  ;;  %p5578_p6 = scmp.lt.u32.totalorder %s5574_s23, %s6471_s27 }
0x2454   :  { %p5580_p7 = pnand %p5578_p6, %p5575_p5 }
0x2456   :  { %5583 = shalt.err (!%p5580_p7)
}
0x2457   :  { %s5592_s5 = smov 128   ;;  %s5593_s9 = smov 8  }
0x2458   :  { %4617 = dma.vmem_to_hbm [thread:$0]  %s4612_s8, 256, %s6471_s27, [#allocation3], %s5592_s5, %s5592_s5, %s5593_s9  }
0x2459   :  { %5584 = dma.done.wait [#allocation3], 256  }
0x245a   :  { %5585 = vsyncadd [#allocation3], 4294967040 }
0x245b   :  { %4621 = vsyncpa [#allocation3], 1 }

</bundles_post_ra>
